<compile_context>
chip_gen: v6e
topology: v6e:2x2x1
jax: 0.10.0
libtpu: 0.0.40
codegen_flags: <defaults>
</compile_context>

<pallas_src>
import functools

import jax
import jax.numpy as jnp
from jax import lax
from jax.experimental import pallas as pl
from jax.experimental.pallas import tpu as pltpu


def _round_up(x, m):
    return (x + m - 1) // m * m


def _res_block_kernel(x_ref, m_ref, w1_ref, b1_ref, w2_ref, b2_ref, o_ref,
                      xb_ref, y_ref, *, TH, WP, C):
    """One (batch, row-tile) slab per grid step.

    Slab geometry (flattened row-major over a (TH+4, WP) padded grid):
      slab row lr corresponds to global padded row t*TH + lr; padded row r+2 holds
      original image row r; padded col c+1 holds original image col c.

    x_ref  : (NS, C)  f32   slab, NS = (TH+4)*WP
    m_ref  : (M1, 1)  f32   interior mask for conv1's output, M1 = (TH+2)*WP
    w1_ref : (9C, C)  bf16  conv1 im2col weight
    b1_ref : (1, C)   f32   conv1 bias
    w2_ref : (9C, C)  bf16  conv2 im2col weight (pre-scaled by res_scale)
    b2_ref : (1, C)   f32   conv2 bias (pre-scaled by res_scale)
    o_ref  : (M2, C)        output rows of this tile, M2 = TH*WP
    xb_ref : VMEM (NS+8, C) bf16 scratch (bf16 copy of the slab + zero tail)
    y_ref  : VMEM (NS, C)   bf16 scratch (zero-bordered conv1 output)
    """
    M1 = (TH + 2) * WP
    M2 = TH * WP
    NS = (TH + 4) * WP
    taps = [dh * WP + dw for dh in range(3) for dw in range(3)]

    # Hoisted single f32 -> bf16 cast of the slab; 8 extra zero rows keep every
    # conv1 tap slice below in bounds.
    xb_ref[pl.ds(0, NS), :] = x_ref[...].astype(jnp.bfloat16)
    xb_ref[pl.ds(NS, 8), :] = jnp.zeros((8, C), jnp.bfloat16)

    # conv1: one im2col contraction over 9 taps x C real channels.
    lhs1 = jnp.concatenate([xb_ref[pl.ds(k, M1), :] for k in taps], axis=1)
    y1 = jnp.dot(lhs1, w1_ref[...], preferred_element_type=jnp.float32)
    # bias + ReLU + interior mask (zero outside the original HxW box, which is
    # exactly the zero padding conv2 expects on conv1's output).
    y1 = jnp.maximum(y1 + b1_ref[...], 0.0) * m_ref[...]

    # Re-pad conv1's output on the slab grid for conv2's taps: masked conv1 row j
    # lands at scratch row j+1 (aligned store at offset WP); the zero head row
    # supplies the top/left zero border, the zero tail keeps the out-of-range tap
    # reads of discarded columns initialised.
    y_ref[pl.ds(0, WP), :] = jnp.zeros((WP, C), jnp.bfloat16)
    y_ref[pl.ds((TH + 3) * WP, WP), :] = jnp.zeros((WP, C), jnp.bfloat16)
    y_ref[pl.ds(WP, M1), :] = y1.astype(jnp.bfloat16)

    # conv2 (res_scale already folded into w2/b2 by the wrapper).
    lhs2 = jnp.concatenate([y_ref[pl.ds(WP + k - 1, M2), :] for k in taps], axis=1)
    c2 = jnp.dot(lhs2, w2_ref[...], preferred_element_type=jnp.float32) + b2_ref[...]

    # Residual add against the untouched f32 identity rows of the slab.
    identity = x_ref[pl.ds(2 * WP + 1, M2), :]
    o_ref[...] = (identity + c2).astype(o_ref.dtype)


def residual_block_no_bn(x_nchw, w1, b1, w2, b2, *, res_scale=1.0, row_tile=None):
    """x_nchw: (B, C, H, W) f32.  w1, w2: (3, 3, C, C) HWIO.  b1, b2: (C,)."""
    B, C, H, W = x_nchw.shape
    if row_tile is None:
        # Size the row tile so the double-buffered blocks + scratches + live im2col
        # temporaries stay well inside v7x's 64 MiB VMEM; v5e/v6e can go larger.
        row_tile = min(32, H)
    TH = int(row_tile)
    NT = -(-H // TH)                      # ceil(H / TH)
    Hr = NT * TH
    WP = _round_up(W + 2, 8)              # padded width, sublane aligned
    NS = (TH + 4) * WP
    M1 = (TH + 2) * WP
    M2 = TH * WP

    # NCHW -> NHWC; pad rows (+2 top halo, Hr-H+2 bottom) and cols (1 left,
    # WP-W-1 right) with zeros.  Channels stay at the real C (no 128 padding).
    x_nhwc = jnp.transpose(x_nchw, (0, 2, 3, 1))
    x_pad = jnp.pad(x_nhwc, ((0, 0), (2, Hr - H + 2), (1, WP - W - 1), (0, 0)))

    # Overlapping row slabs (4 halo rows shared between neighbouring tiles).
    x_tiles = jnp.stack(
        [x_pad[:, t * TH: t * TH + TH + 4] for t in range(NT)], axis=1)
    x_tiles = x_tiles.reshape(B, NT, NS, C)

    # Interior mask for conv1's output: conv1 row j of tile t is original row
    # r1 = t*TH + j - 1; keep only r1 in [0, H) and columns < W.
    jj = jnp.arange(TH + 2)
    r1 = jnp.arange(NT)[:, None] * TH + jj[None, :] - 1           # (NT, TH+2)
    row_ok = (r1 >= 0) & (r1 < H)
    col_ok = jnp.arange(WP) < W
    mask = (row_ok[:, :, None] & col_ok[None, None, :]).astype(jnp.float32)
    mask = mask.reshape(NT, M1, 1)

    # im2col weights (tap-major, channel-minor = reshape of HWIO); fold res_scale
    # into conv2's weight & bias before the bf16 cast.
    w1r = w1.reshape(9 * C, C).astype(jnp.bfloat16)
    w2r = (w2 * res_scale).reshape(9 * C, C).astype(jnp.bfloat16)
    b1r = b1.reshape(1, C).astype(jnp.float32)
    b2r = (b2 * res_scale).reshape(1, C).astype(jnp.float32)

    kernel = functools.partial(_res_block_kernel, TH=TH, WP=WP, C=C)

    out_tiles = pl.pallas_call(
        kernel,
        out_shape=jax.ShapeDtypeStruct((B, NT, M2, C), x_nchw.dtype),
        grid_spec=pltpu.PrefetchScalarGridSpec(
            num_scalar_prefetch=0,
            grid=(B, NT),
            in_specs=[
                pl.BlockSpec((None, None, NS, C), lambda b, t: (b, t, 0, 0)),
                pl.BlockSpec((None, M1, 1), lambda b, t: (t, 0, 0)),
                pl.BlockSpec((9 * C, C), lambda b, t: (0, 0)),
                pl.BlockSpec((1, C), lambda b, t: (0, 0)),
                pl.BlockSpec((9 * C, C), lambda b, t: (0, 0)),
                pl.BlockSpec((1, C), lambda b, t: (0, 0)),
            ],
            out_specs=pl.BlockSpec((None, None, M2, C), lambda b, t: (b, t, 0, 0)),
            scratch_shapes=[
                pltpu.VMEM((NS + 8, C), jnp.bfloat16),   # bf16 slab copy
                pltpu.VMEM((NS, C), jnp.bfloat16),       # zero-bordered conv1 out
            ],
        ),
        compiler_params=pltpu.CompilerParams(
            dimension_semantics=("parallel", "parallel"),
            vmem_limit_bytes=48 * 1024 * 1024),
    )(x_tiles, mask, w1r, b1r, w2r, b2r)

    # (B, NT, TH*WP, C) -> (B, Hr, WP, C) -> valid HxW pixels -> NCHW.
    out = out_tiles.reshape(B, Hr, WP, C)[:, :H, :W, :]
    return jnp.transpose(out, (0, 3, 1, 2))


def _reference_nchw(x, w1, b1, w2, b2, res_scale):
    """Pure-JAX f32 reference (same math as the PyTorch module)."""
    dn = lax.conv_dimension_numbers(x.shape, (3, 3, x.shape[1], x.shape[1]),
                                    ("NCHW", "HWIO", "NCHW"))
    c1 = lax.conv_general_dilated(x, w1, (1, 1), ((1, 1), (1, 1)),
                                  dimension_numbers=dn)
    c1 = c1 + b1[None, :, None, None]
    r = jnp.maximum(c1, 0.0)
    c2 = lax.conv_general_dilated(r, w2, (1, 1), ((1, 1), (1, 1)),
                                  dimension_numbers=dn)
    c2 = c2 + b2[None, :, None, None]
    return x + res_scale * c2


if __name__ == "__main__":
    key = jax.random.PRNGKey(0)
    keys = jax.random.split(key, 8)

    # ---- case 1: B=2, C=16, 16x16, res_scale=1, two row tiles (exercises halo).
    B, C, H, W = 2, 16, 16, 16
    res_scale = 1.0
    x = jax.random.normal(keys[0], (B, C, H, W), dtype=jnp.float32)
    # default_init_weights: kaiming_normal_ (fan_in = C*3*3, gain=sqrt(2)) * 0.1,
    # bias filled with 0.  Weights stored HWIO for the NHWC kernel.
    std = (2.0 / (C * 9)) ** 0.5
    w1 = jax.random.normal(keys[1], (3, 3, C, C), dtype=jnp.float32) * std * 0.1
    w2 = jax.random.normal(keys[2], (3, 3, C, C), dtype=jnp.float32) * std * 0.1
    b1 = jnp.zeros((C,), jnp.float32)
    b2 = jnp.zeros((C,), jnp.float32)

    out = residual_block_no_bn(x, w1, b1, w2, b2, res_scale=res_scale, row_tile=8)
    out = jax.block_until_ready(out)
    ref = _reference_nchw(x, w1, b1, w2, b2, res_scale)
    assert out.shape == (B, C, H, W)
    # bf16 MXU operands (f32 accumulation) loosen the tolerance vs the f32 reference.
    assert jnp.allclose(out, ref, atol=5e-3, rtol=5e-3), "case 1 mismatch vs reference"

    # ---- case 2: odd shapes (ragged last row tile, non-16 channels, res_scale!=1,
    # ---- nonzero biases) to exercise the masking / res_scale folding paths.
    B2, C2, H2, W2 = 1, 8, 13, 11
    rs2 = 0.3
    x2 = jax.random.normal(keys[3], (B2, C2, H2, W2), dtype=jnp.float32)
    std2 = (2.0 / (C2 * 9)) ** 0.5
    w21 = jax.random.normal(keys[4], (3, 3, C2, C2), dtype=jnp.float32) * std2 * 0.1
    w22 = jax.random.normal(keys[5], (3, 3, C2, C2), dtype=jnp.float32) * std2 * 0.1
    b21 = jnp.full((C2,), 0.01, jnp.float32)
    b22 = jnp.full((C2,), -0.02, jnp.float32)

    out2 = residual_block_no_bn(x2, w21, b21, w22, b22, res_scale=rs2, row_tile=8)
    out2 = jax.block_until_ready(out2)
    ref2 = _reference_nchw(x2, w21, b21, w22, b22, rs2)
    assert out2.shape == (B2, C2, H2, W2)
    assert jnp.allclose(out2, ref2, atol=5e-3, rtol=5e-3), "case 2 mismatch vs reference"

    print("KERNEL_OK")
</pallas_src>

<mosaic_0001>
module attributes {stable_mosaic.version = 11 : i64} {
  func.func @_res_block_kernel(%arg0: i32, %arg1: i32, %arg2: memref<1x1x288x16xf32, #tpu.memory_space<vmem>>, %arg3: memref<1x240x1xf32, #tpu.memory_space<vmem>>, %arg4: memref<144x16xbf16, #tpu.memory_space<vmem>>, %arg5: memref<1x16xf32, #tpu.memory_space<vmem>>, %arg6: memref<144x16xbf16, #tpu.memory_space<vmem>>, %arg7: memref<1x16xf32, #tpu.memory_space<vmem>>, %arg8: memref<1x1x192x16xf32, #tpu.memory_space<vmem>>, %arg9: memref<296x16xbf16, #tpu.memory_space<vmem>>, %arg10: memref<288x16xbf16, #tpu.memory_space<vmem>>) attributes {dimension_semantics = [#tpu.dimension_semantics<parallel>, #tpu.dimension_semantics<parallel>], iteration_bounds = array<i64: 2, 2>, scalar_prefetch = 0 : i64, scratch_operands = 2 : i64, tpu.core_type = #tpu.core_type<tc>, window_params = [{transform_indices = @transform_0, window_bounds = array<i64: 1, 1, 288, 16>}, {transform_indices = @transform_1, window_bounds = array<i64: 1, 240, 1>}, {pipeline_mode = #tpu.pipeline_mode<synchronous>, transform_indices = @transform_2, window_bounds = array<i64: 144, 16>}, {pipeline_mode = #tpu.pipeline_mode<synchronous>, transform_indices = @transform_3, window_bounds = array<i64: 1, 16>}, {pipeline_mode = #tpu.pipeline_mode<synchronous>, transform_indices = @transform_4, window_bounds = array<i64: 144, 16>}, {pipeline_mode = #tpu.pipeline_mode<synchronous>, transform_indices = @transform_5, window_bounds = array<i64: 1, 16>}, {transform_indices = @transform_6, window_bounds = array<i64: 1, 1, 192, 16>}]} {
    %c0 = arith.constant 0 : index
    %c0_0 = arith.constant 0 : index
    %c0_1 = arith.constant 0 : index
    %c0_2 = arith.constant 0 : index
    %0 = vector.load %arg2[%c0, %c0_0, %c0_1, %c0_2] : memref<1x1x288x16xf32, #tpu.memory_space<vmem>>, vector<1x1x288x16xf32>
    %1 = vector.shape_cast %0 : vector<1x1x288x16xf32> to vector<288x16xf32>
    %2 = arith.truncf %1 : vector<288x16xf32> to vector<288x16xbf16>
    %c0_3 = arith.constant 0 : index
    %c0_4 = arith.constant 0 : index
    %3 = vector.load %arg9[%c0_3, %c0_4] : memref<296x16xbf16, #tpu.memory_space<vmem>>, vector<288x16xbf16>
    tpu.vector_store %arg9[%c0_3, %c0_4], %2 {strides = array<i32>} : memref<296x16xbf16, #tpu.memory_space<vmem>>, vector<288x16xbf16>,
    %cst = arith.constant 0.000000e+00 : bf16
    %4 = vector.broadcast %cst : bf16 to vector<8x16xbf16>
    %c288 = arith.constant 288 : index
    %c0_5 = arith.constant 0 : index
    %5 = vector.load %arg9[%c288, %c0_5] : memref<296x16xbf16, #tpu.memory_space<vmem>>, vector<8x16xbf16>
    tpu.vector_store %arg9[%c288, %c0_5], %4 {strides = array<i32>} : memref<296x16xbf16, #tpu.memory_space<vmem>>, vector<8x16xbf16>,
    %c0_6 = arith.constant 0 : index
    %c0_7 = arith.constant 0 : index
    %6 = vector.load %arg9[%c0_6, %c0_7] : memref<296x16xbf16, #tpu.memory_space<vmem>>, vector<240x16xbf16>
    %c1 = arith.constant 1 : index
    %c0_8 = arith.constant 0 : index
    %7 = vector.load %arg9[%c1, %c0_8] : memref<296x16xbf16, #tpu.memory_space<vmem>>, vector<240x16xbf16>
    %c2 = arith.constant 2 : index
    %c0_9 = arith.constant 0 : index
    %8 = vector.load %arg9[%c2, %c0_9] : memref<296x16xbf16, #tpu.memory_space<vmem>>, vector<240x16xbf16>
    %c24 = arith.constant 24 : index
    %c0_10 = arith.constant 0 : index
    %9 = vector.load %arg9[%c24, %c0_10] : memref<296x16xbf16, #tpu.memory_space<vmem>>, vector<240x16xbf16>
    %c25 = arith.constant 25 : index
    %c0_11 = arith.constant 0 : index
    %10 = vector.load %arg9[%c25, %c0_11] : memref<296x16xbf16, #tpu.memory_space<vmem>>, vector<240x16xbf16>
    %c26 = arith.constant 26 : index
    %c0_12 = arith.constant 0 : index
    %11 = vector.load %arg9[%c26, %c0_12] : memref<296x16xbf16, #tpu.memory_space<vmem>>, vector<240x16xbf16>
    %c48 = arith.constant 48 : index
    %c0_13 = arith.constant 0 : index
    %12 = vector.load %arg9[%c48, %c0_13] : memref<296x16xbf16, #tpu.memory_space<vmem>>, vector<240x16xbf16>
    %c49 = arith.constant 49 : index
    %c0_14 = arith.constant 0 : index
    %13 = vector.load %arg9[%c49, %c0_14] : memref<296x16xbf16, #tpu.memory_space<vmem>>, vector<240x16xbf16>
    %c50 = arith.constant 50 : index
    %c0_15 = arith.constant 0 : index
    %14 = vector.load %arg9[%c50, %c0_15] : memref<296x16xbf16, #tpu.memory_space<vmem>>, vector<240x16xbf16>
    %15 = tpu.concatenate %6, %7, %8, %9, %10, %11, %12, %13, %14 in 1 : vector<240x16xbf16>, vector<240x16xbf16>, vector<240x16xbf16>, vector<240x16xbf16>, vector<240x16xbf16>, vector<240x16xbf16>, vector<240x16xbf16>, vector<240x16xbf16>, vector<240x16xbf16> -> vector<240x144xbf16>
    %c0_16 = arith.constant 0 : index
    %c0_17 = arith.constant 0 : index
    %16 = vector.load %arg4[%c0_16, %c0_17] : memref<144x16xbf16, #tpu.memory_space<vmem>>, vector<144x16xbf16>
    %cst_18 = arith.constant dense<0.000000e+00> : vector<240x16xf32>
    %17 = tpu.matmul %15, %16, %cst_18 {dimension_numbers = #tpu.dot_dimension_numbers<[1], [0], [0], [1], [0, 0, 1, 1], [], []>} : vector<240x144xbf16>, vector<144x16xbf16>, vector<240x16xf32> -> vector<240x16xf32>
    %c0_19 = arith.constant 0 : index
    %c0_20 = arith.constant 0 : index
    %18 = vector.load %arg5[%c0_19, %c0_20] : memref<1x16xf32, #tpu.memory_space<vmem>>, vector<1x16xf32>
    %19 = vector.broadcast %18 : vector<1x16xf32> to vector<240x16xf32>
    %20 = arith.addf %17, %19 : vector<240x16xf32>
    %cst_21 = arith.constant 0.000000e+00 : f32
    %21 = vector.broadcast %cst_21 : f32 to vector<240x16xf32>
    %22 = arith.maximumf %20, %21 : vector<240x16xf32>
    %c0_22 = arith.constant 0 : index
    %c0_23 = arith.constant 0 : index
    %c0_24 = arith.constant 0 : index
    %23 = vector.load %arg3[%c0_22, %c0_23, %c0_24] : memref<1x240x1xf32, #tpu.memory_space<vmem>>, vector<1x240x1xf32>
    %24 = vector.shape_cast %23 : vector<1x240x1xf32> to vector<240x1xf32>
    %25 = vector.broadcast %24 : vector<240x1xf32> to vector<240x16xf32>
    %26 = arith.mulf %22, %25 : vector<240x16xf32>
    %cst_25 = arith.constant 0.000000e+00 : bf16
    %27 = vector.broadcast %cst_25 : bf16 to vector<24x16xbf16>
    %c0_26 = arith.constant 0 : index
    %c0_27 = arith.constant 0 : index
    %28 = vector.load %arg10[%c0_26, %c0_27] : memref<288x16xbf16, #tpu.memory_space<vmem>>, vector<24x16xbf16>
    tpu.vector_store %arg10[%c0_26, %c0_27], %27 {strides = array<i32>} : memref<288x16xbf16, #tpu.memory_space<vmem>>, vector<24x16xbf16>,
    %cst_28 = arith.constant 0.000000e+00 : bf16
    %29 = vector.broadcast %cst_28 : bf16 to vector<24x16xbf16>
    %c264 = arith.constant 264 : index
    %c0_29 = arith.constant 0 : index
    %30 = vector.load %arg10[%c264, %c0_29] : memref<288x16xbf16, #tpu.memory_space<vmem>>, vector<24x16xbf16>
    tpu.vector_store %arg10[%c264, %c0_29], %29 {strides = array<i32>} : memref<288x16xbf16, #tpu.memory_space<vmem>>, vector<24x16xbf16>,
    %31 = arith.truncf %26 : vector<240x16xf32> to vector<240x16xbf16>
    %c24_30 = arith.constant 24 : index
    %c0_31 = arith.constant 0 : index
    %32 = vector.load %arg10[%c24_30, %c0_31] : memref<288x16xbf16, #tpu.memory_space<vmem>>, vector<240x16xbf16>
    tpu.vector_store %arg10[%c24_30, %c0_31], %31 {strides = array<i32>} : memref<288x16xbf16, #tpu.memory_space<vmem>>, vector<240x16xbf16>,
    %c23 = arith.constant 23 : index
    %c0_32 = arith.constant 0 : index
    %33 = vector.load %arg10[%c23, %c0_32] : memref<288x16xbf16, #tpu.memory_space<vmem>>, vector<192x16xbf16>
    %c24_33 = arith.constant 24 : index
    %c0_34 = arith.constant 0 : index
    %34 = vector.load %arg10[%c24_33, %c0_34] : memref<288x16xbf16, #tpu.memory_space<vmem>>, vector<192x16xbf16>
    %c25_35 = arith.constant 25 : index
    %c0_36 = arith.constant 0 : index
    %35 = vector.load %arg10[%c25_35, %c0_36] : memref<288x16xbf16, #tpu.memory_space<vmem>>, vector<192x16xbf16>
    %c47 = arith.constant 47 : index
    %c0_37 = arith.constant 0 : index
    %36 = vector.load %arg10[%c47, %c0_37] : memref<288x16xbf16, #tpu.memory_space<vmem>>, vector<192x16xbf16>
    %c48_38 = arith.constant 48 : index
    %c0_39 = arith.constant 0 : index
    %37 = vector.load %arg10[%c48_38, %c0_39] : memref<288x16xbf16, #tpu.memory_space<vmem>>, vector<192x16xbf16>
    %c49_40 = arith.constant 49 : index
    %c0_41 = arith.constant 0 : index
    %38 = vector.load %arg10[%c49_40, %c0_41] : memref<288x16xbf16, #tpu.memory_space<vmem>>, vector<192x16xbf16>
    %c71 = arith.constant 71 : index
    %c0_42 = arith.constant 0 : index
    %39 = vector.load %arg10[%c71, %c0_42] : memref<288x16xbf16, #tpu.memory_space<vmem>>, vector<192x16xbf16>
    %c72 = arith.constant 72 : index
    %c0_43 = arith.constant 0 : index
    %40 = vector.load %arg10[%c72, %c0_43] : memref<288x16xbf16, #tpu.memory_space<vmem>>, vector<192x16xbf16>
    %c73 = arith.constant 73 : index
    %c0_44 = arith.constant 0 : index
    %41 = vector.load %arg10[%c73, %c0_44] : memref<288x16xbf16, #tpu.memory_space<vmem>>, vector<192x16xbf16>
    %42 = tpu.concatenate %33, %34, %35, %36, %37, %38, %39, %40, %41 in 1 : vector<192x16xbf16>, vector<192x16xbf16>, vector<192x16xbf16>, vector<192x16xbf16>, vector<192x16xbf16>, vector<192x16xbf16>, vector<192x16xbf16>, vector<192x16xbf16>, vector<192x16xbf16> -> vector<192x144xbf16>
    %c0_45 = arith.constant 0 : index
    %c0_46 = arith.constant 0 : index
    %43 = vector.load %arg6[%c0_45, %c0_46] : memref<144x16xbf16, #tpu.memory_space<vmem>>, vector<144x16xbf16>
    %cst_47 = arith.constant dense<0.000000e+00> : vector<192x16xf32>
    %44 = tpu.matmul %42, %43, %cst_47 {dimension_numbers = #tpu.dot_dimension_numbers<[1], [0], [0], [1], [0, 0, 1, 1], [], []>} : vector<192x144xbf16>, vector<144x16xbf16>, vector<192x16xf32> -> vector<192x16xf32>
    %c0_48 = arith.constant 0 : index
    %c0_49 = arith.constant 0 : index
    %45 = vector.load %arg7[%c0_48, %c0_49] : memref<1x16xf32, #tpu.memory_space<vmem>>, vector<1x16xf32>
    %46 = vector.broadcast %45 : vector<1x16xf32> to vector<192x16xf32>
    %47 = arith.addf %44, %46 : vector<192x16xf32>
    %c0_50 = arith.constant 0 : index
    %c0_51 = arith.constant 0 : index
    %c49_52 = arith.constant 49 : index
    %c0_53 = arith.constant 0 : index
    %48 = vector.load %arg2[%c0_50, %c0_51, %c49_52, %c0_53] : memref<1x1x288x16xf32, #tpu.memory_space<vmem>>, vector<1x1x192x16xf32>
    %49 = vector.shape_cast %48 : vector<1x1x192x16xf32> to vector<192x16xf32>
    %50 = arith.addf %49, %47 : vector<192x16xf32>
    %c0_54 = arith.constant 0 : index
    %c0_55 = arith.constant 0 : index
    %c0_56 = arith.constant 0 : index
    %c0_57 = arith.constant 0 : index
    %51 = vector.load %arg8[%c0_54, %c0_55, %c0_56, %c0_57] : memref<1x1x192x16xf32, #tpu.memory_space<vmem>>, vector<1x1x192x16xf32>
    %52 = vector.shape_cast %51 : vector<1x1x192x16xf32> to vector<192x16xf32>
    %53 = vector.shape_cast %50 : vector<192x16xf32> to vector<1x1x192x16xf32>
    tpu.vector_store %arg8[%c0_54, %c0_55, %c0_56, %c0_57], %53 {strides = array<i32>} : memref<1x1x192x16xf32, #tpu.memory_space<vmem>>, vector<1x1x192x16xf32>,
    return
  }
  func.func @transform_0(%arg0: i32, %arg1: i32) -> (i32, i32, i32, i32) {
    %c0_i32 = arith.constant 0 : i32
    %c0_i32_0 = arith.constant 0 : i32
    %c0_i32_1 = arith.constant 0 : i32
    return %arg0, %arg1, %c0_i32, %c0_i32_0 : i32, i32, i32, i32
  }
  func.func @transform_1(%arg0: i32, %arg1: i32) -> (i32, i32, i32) {
    %c0_i32 = arith.constant 0 : i32
    %c0_i32_0 = arith.constant 0 : i32
    %c0_i32_1 = arith.constant 0 : i32
    return %arg1, %c0_i32, %c0_i32_0 : i32, i32, i32
  }
  func.func @transform_2(%arg0: i32, %arg1: i32) -> (i32, i32) {
    %c0_i32 = arith.constant 0 : i32
    %c0_i32_0 = arith.constant 0 : i32
    %c0_i32_1 = arith.constant 0 : i32
    return %c0_i32, %c0_i32_0 : i32, i32
  }
  func.func @transform_3(%arg0: i32, %arg1: i32) -> (i32, i32) {
    %c0_i32 = arith.constant 0 : i32
    %c0_i32_0 = arith.constant 0 : i32
    %c0_i32_1 = arith.constant 0 : i32
    return %c0_i32, %c0_i32_0 : i32, i32
  }
  func.func @transform_4(%arg0: i32, %arg1: i32) -> (i32, i32) {
    %c0_i32 = arith.constant 0 : i32
    %c0_i32_0 = arith.constant 0 : i32
    %c0_i32_1 = arith.constant 0 : i32
    return %c0_i32, %c0_i32_0 : i32, i32
  }
  func.func @transform_5(%arg0: i32, %arg1: i32) -> (i32, i32) {
    %c0_i32 = arith.constant 0 : i32
    %c0_i32_0 = arith.constant 0 : i32
    %c0_i32_1 = arith.constant 0 : i32
    return %c0_i32, %c0_i32_0 : i32, i32
  }
  func.func @transform_6(%arg0: i32, %arg1: i32) -> (i32, i32, i32, i32) {
    %c0_i32 = arith.constant 0 : i32
    %c0_i32_0 = arith.constant 0 : i32
    %c0_i32_1 = arith.constant 0 : i32
    return %arg0, %arg1, %c0_i32, %c0_i32_0 : i32, i32, i32, i32
  }
}

</mosaic_0001>

<bundles_post_ra>
// kernel: tpu_custom_call.1
= control target key start
LH: loop header
LB: loop body
LE: loop exit
PB: predicated region body
PF: predicated region fallthrough
CT: control target
= control target key end

     0   :  { %s4095_s21 = smov 0   ;;  %s4097_s22 = smov 0   ;;  %s5878_s0 = inlined_call_operand.vmem [shape: f32[2,2,288,16], index: 0, kind: input, shape index: {}]   ;;  %s5879_s1 = inlined_call_operand.vmem [shape: f32[2,240,1], index: 1, kind: input, shape index: {}]   ;;  %s5880_s2 = inlined_call_operand.vmem [shape: bf16[144,16], index: 2, kind: input, shape index: {}]   ;;  %s5881_s3 = inlined_call_operand.vmem [shape: f32[1,16], index: 3, kind: input, shape index: {}]   ;;  %s5882_s4 = inlined_call_operand.vmem [shape: bf16[144,16], index: 4, kind: input, shape index: {}]   ;;  %s5883_s5 = inlined_call_operand.vmem [shape: f32[1,16], index: 5, kind: input, shape index: {}]   ;;  %s5884_s6 = inlined_call_operand.vmem [shape: f32[2,2,192,16], index: 6, kind: output, shape index: {}]  }
   0x1   :  { %s4099_s23 = smov 0   ;;  %s4101_s24 = smov 0  }
   0x2   :  { %s4103_s25 = smov 0  }
   0x3 LB: > { %s25_s26 = sadd.s32 1, %s4042_s23  ;;  %s28_s27 = sadd.s32 1, %s4046_s24  ;;  %s4050_s25 = sphi %s4103_s25, %s16_s25   ;;  %s4046_s24 = sphi %s4101_s24, %s5907_s24   ;;  %s4042_s23 = sphi %s4099_s23, %s5906_s23   ;;  %s4038_s22 = sphi %s4097_s22, %s5905_s22   ;;  %s4034_s21 = sphi %s4095_s21, %s5904_s21  }
   0x4   : > { %p26_p0 = scmp.ge.s32.totalorder %s25_s26, 2  ;;  %p3631_p1 = scmp.ge.s32.totalorder %s4050_s25, 1 }
   0x5   : > { %p242_p2 = scmp.lt.s32.totalorder %s4050_s25, 5 }
   0x6   : > { %s5909_s26 = smov (%p26_p0, %s25_s26), 0  ;;  %s5911_s27 = smov (!%p26_p0, %s28_s27), %s4046_s24 }
   0x7   : > { %p243_p3 = pnand %p3631_p1, %p242_p2  ;;  %p30_p4 = scmp.ge.s32.totalorder %s5911_s27, 2 }
   0x9   : > { %s5913_s27 = smov (%p30_p4, %s5911_s27), 0  ;;  %246 = sbr.rel (%p243_p3) target bundleno = 922 (0x39a), region = 44 }
   0xe   : > { %p285_p5 = scmp.lt.s32.totalorder %s4038_s22, 1  ;;  %p287_p6 = scmp.lt.s32.totalorder %s4034_s21, 1  ;;  %vm489_vm0 = vcmask 125952   ;;  %v3960_v0 = vld [vmem:[%s5880_s2 + $0x38] sm:$0xff]   ;;  %v4052_v1 = vmov 0   ;;  %v3961_v2 = vld [vmem:[%s5880_s2 + $0x30] sm:$0xff]  }
   0xf   : > { %1609 = vmatprep.subr.bf16.mxu0 %v4052_v1  ;;  %526 = vst.msk [vmem:[#allocation2 + $0x90] sm:$0xf] %vm489_vm0, %v4052_v1  ;;  %2004 = vst.msk [vmem:[#allocation3 + $0x8] sm:$0xf] %vm489_vm0, %v4052_v1  ;;  %3946 = vset.pattern.permute.xlu1 %v4052_v1  ;;  %v3963_v3 = vld [vmem:[%s5880_s2 + $0x28] sm:$0xff]   ;;  %v3964_v52 = vld [vmem:[%s5880_s2 + $0x20] sm:$0xff]  }
  0x10   : > { %s5915_s22 = smov (!%p285_p5, %s4038_s22), 1  ;;  %2005 = vst.msk [vmem:[#allocation3 + $0x84] sm:$0xf] %vm489_vm0, %v4052_v1  ;;  %s5917_s21 = smov (!%p287_p6, %s4034_s21), 1  ;;  %1610 = vmatpush1.bf16.msra.mxu0 %v3960_v0  ;;  %3947 = vset.pattern.permute.xlu0 %v4052_v1  ;;  %v3965_v58 = vld [vmem:[%s5880_s2 + $0x18] sm:$0xff]   ;;  %vm805_vm1 = vcmask 1046528  }
  0x11   : > { %s3894_s8 = smul.u32 72, %s5915_s22  ;;  %1611 = vmatprep.subr.bf16.mxu0 %v4052_v1  ;;  %3319 = vmatprep.subr.bf16.mxu1 %v4052_v1  ;;  %s4053_s28 = smov 96   ;;  %vm647_vm2 = vsmask.f32 7424  ;;  %vm1253_vm3 = vcmask 130048   ;;  %vm1284_vm4 = vcmask 261120  }
  0x12   : > { %s3893_s9 = smul.u32 36, %s5917_s21  ;;  %s4054_s7 = smov 48   ;;  %vm1315_vm5 = vcmask 392192   ;;  %vm1346_vm6 = vcmask 523264   ;;  %vm1377_vm7 = vcmask 654336   ;;  %vm1408_vm8 = vcmask 785408  }
  0x13   : > { %s4057_s17 = smov 16   ;;  %s4058_s18 = smov 64   ;;  %vm1439_vm9 = vcmask 916480   ;;  %vm2406_vm10 = vcmask 1042432   ;;  %vm2269_vm11 = vsmask.f32 3328 }
  0x14   : > { %s291_s10 = sadd.s32 %s3894_s8, %s3893_s9  ;;  %1612 = vmatpush1.bf16.msra.mxu0 %v3961_v2  ;;  %s4059_s19 = smov 112   ;;  %vm2997_vm12 = vsmask.f32 4352 }
  0x15   : > { %s3632_s13 = sshll.u32 %s291_s10, 3  ;;  %1613 = vmatprep.subr.bf16.mxu0 %v4052_v1  ;;  %s4055_s10 = smov 32  }
  0x16   : > { %s4155_s16 = scalar_lea.vmem %s5878_s0, %s3632_s13  ;;  %s4056_s13 = smov 80  }
  0x17   : > { %v317_v4 = vld [vmem:[%s4155_s16 + $0x40] sm:$0xff]  ;;  %v318_v5 = vld [vmem:[%s4155_s16 + $0x48] sm:$0xff]  ;;  %v319_v6 = vld [vmem:[%s4155_s16 + $0x50] sm:$0xff]  ;;  %s3895_s20 = smul.u32 240, %s5917_s21 }
  0x18   : > { %v320_v7 = vld [vmem:[%s4155_s16 + $0x58] sm:$0xff]  ;;  %v3835_v8 = vpack.c.bf16 %v317_v4, %v317_v4  ;;  %v3836_v9 = vpack.c.bf16 %v318_v5, %v318_v5  ;;  %v3837_v10 = vpack.c.bf16 %v319_v6, %v319_v6  ;;  %1614 = vmatpush1.bf16.msra.mxu0 %v3963_v3  ;;  %v313_v15 = vld [vmem:[%s4155_s16 + $0x20] sm:$0xff]  ;;  %v314_v16 = vld [vmem:[%s4155_s16 + $0x28] sm:$0xff] }
  0x19   : > { %v316_v11 = vld [vmem:[%s4155_s16 + $0x38] sm:$0xff]  ;;  %v3838_v13 = vpack.c.bf16 %v320_v7, %v320_v7  ;;  %v311_v18 = vld [vmem:[%s4155_s16 + $0x10] sm:$0xff]  ;;  %1615 = vmatprep.subr.bf16.mxu0 %v4052_v1  ;;  %v3831_v19 = vpack.c.bf16 %v313_v15, %v313_v15  ;;  %v3832_v20 = vpack.c.bf16 %v314_v16, %v314_v16  ;;  %v309_v23 = vld [vmem:[%s4155_s16] sm:$0xff]  ;;  %s4778_s8 = scalar_lea.vmem %s5879_s1, %s3895_s20 }
  0x1a   : > { %v312_v12 = vld [vmem:[%s4155_s16 + $0x18] sm:$0xff]  ;;  %v3834_v14 = vpack.c.bf16 %v316_v11, %v316_v11  ;;  %498 = vst.msk [vmem:[#allocation2 + $0x20] sm:$0xf] %vm489_vm0, %v3835_v8  ;;  %499 = vst.msk [vmem:[#allocation2 + $0x24] sm:$0xf] %vm489_vm0, %v3836_v9  ;;  %v3829_v21 = vpack.c.bf16 %v311_v18, %v311_v18  ;;  %v315_v22 = vld [vmem:[%s4155_s16 + $0x30] sm:$0xff]  ;;  %v3827_v26 = vpack.c.bf16 %v309_v23, %v309_v23 }
  0x1b   : > { %v3830_v17 = vpack.c.bf16 %v312_v12, %v312_v12  ;;  %500 = vst.msk [vmem:[#allocation2 + $0x28] sm:$0xf] %vm489_vm0, %v3837_v10  ;;  %v310_v24 = vld [vmem:[%s4155_s16 + $0x8] sm:$0xff]  ;;  %501 = vst.msk [vmem:[#allocation2 + $0x2c] sm:$0xf] %vm489_vm0, %v3838_v13  ;;  %v3833_v25 = vpack.c.bf16 %v315_v22, %v315_v22  ;;  %v321_v28 = vld [vmem:[%s4155_s16 + $0x60] sm:$0xff] }
  0x1c   : > { %497 = vst.msk [vmem:[#allocation2 + $0x1c] sm:$0xf] %vm489_vm0, %v3834_v14  ;;  %v3828_v27 = vpack.c.bf16 %v310_v24, %v310_v24  ;;  %v322_v29 = vld [vmem:[%s4155_s16 + $0x68] sm:$0xff]  ;;  %v323_v30 = vld [vmem:[%s4155_s16 + $0x70] sm:$0xff]  ;;  %494 = vst.msk [vmem:[#allocation2 + $0x10] sm:$0xf] %vm489_vm0, %v3831_v19  ;;  %v3839_v31 = vpack.c.bf16 %v321_v28, %v321_v28  ;;  %1616 = vmatpush1.bf16.msra.mxu0 %v3964_v52 }
  0x1d   : > { %493 = vst.msk [vmem:[#allocation2 + $0xc] sm:$0xf] %vm489_vm0, %v3830_v17  ;;  %495 = vst.msk [vmem:[#allocation2 + $0x14] sm:$0xf] %vm489_vm0, %v3832_v20  ;;  %v3840_v32 = vpack.c.bf16 %v322_v29, %v322_v29  ;;  %v324_v33 = vld [vmem:[%s4155_s16 + $0x78] sm:$0xff]  ;;  %v3841_v34 = vpack.c.bf16 %v323_v30, %v323_v30  ;;  %v325_v35 = vld [vmem:[%s4155_s16 + $0x80] sm:$0xff]  ;;  %1617 = vmatprep.subr.bf16.mxu0 %v4052_v1 }
  0x1e   : > { %492 = vst.msk [vmem:[#allocation2 + $0x8] sm:$0xf] %vm489_vm0, %v3829_v21  ;;  %v326_v36 = vld [vmem:[%s4155_s16 + $0x88] sm:$0xff]  ;;  %496 = vst.msk [vmem:[#allocation2 + $0x18] sm:$0xf] %vm489_vm0, %v3833_v25  ;;  %v3842_v37 = vpack.c.bf16 %v324_v33, %v324_v33  ;;  %v3843_v38 = vpack.c.bf16 %v325_v35, %v325_v35  ;;  %v327_v40 = vld [vmem:[%s4155_s16 + $0x90] sm:$0xff] }
  0x1f   : > { %490 = vst.msk [vmem:[#allocation2] sm:$0xf] %vm489_vm0, %v3827_v26  ;;  %491 = vst.msk [vmem:[#allocation2 + $0x4] sm:$0xf] %vm489_vm0, %v3828_v27  ;;  %v3844_v39 = vpack.c.bf16 %v326_v36, %v326_v36  ;;  %v328_v41 = vld [vmem:[%s4155_s16 + $0x98] sm:$0xff]  ;;  %v329_v42 = vld [vmem:[%s4155_s16 + $0xa0] sm:$0xff]  ;;  %v3845_v43 = vpack.c.bf16 %v327_v40, %v327_v40 }
  0x20   : > { %502 = vst.msk [vmem:[#allocation2 + $0x30] sm:$0xf] %vm489_vm0, %v3839_v31  ;;  %503 = vst.msk [vmem:[#allocation2 + $0x34] sm:$0xf] %vm489_vm0, %v3840_v32  ;;  %v3846_v44 = vpack.c.bf16 %v328_v41, %v328_v41  ;;  %v330_v45 = vld [vmem:[%s4155_s16 + $0xa8] sm:$0xff]  ;;  %v3847_v46 = vpack.c.bf16 %v329_v42, %v329_v42  ;;  %v331_v47 = vld [vmem:[%s4155_s16 + $0xb0] sm:$0xff]  ;;  %1618 = vmatpush1.bf16.msra.mxu0 %v3965_v58 }
  0x21   : > { %504 = vst.msk [vmem:[#allocation2 + $0x38] sm:$0xf] %vm489_vm0, %v3841_v34  ;;  %v332_v48 = vld [vmem:[%s4155_s16 + $0xb8] sm:$0xff]  ;;  %505 = vst.msk [vmem:[#allocation2 + $0x3c] sm:$0xf] %vm489_vm0, %v3842_v37  ;;  %v3848_v49 = vpack.c.bf16 %v330_v45, %v330_v45  ;;  %v3849_v50 = vpack.c.bf16 %v331_v47, %v331_v47  ;;  %v333_v53 = vld [vmem:[%s4155_s16 + $0xc0] sm:$0xff]  ;;  %1619 = vmatprep.subr.bf16.mxu0 %v4052_v1 }
  0x22   : > { %506 = vst.msk [vmem:[#allocation2 + $0x40] sm:$0xf] %vm489_vm0, %v3843_v38  ;;  %507 = vst.msk [vmem:[#allocation2 + $0x44] sm:$0xf] %vm489_vm0, %v3844_v39  ;;  %v3850_v51 = vpack.c.bf16 %v332_v48, %v332_v48  ;;  %v334_v54 = vld [vmem:[%s4155_s16 + $0xc8] sm:$0xff]  ;;  %v3851_v55 = vpack.c.bf16 %v333_v53, %v333_v53  ;;  %v3966_v14 = vld [vmem:[%s5880_s2 + $0x10] sm:$0xff]  }
  0x23   : > { %508 = vst.msk [vmem:[#allocation2 + $0x48] sm:$0xf] %vm489_vm0, %v3845_v43  ;;  %509 = vst.msk [vmem:[#allocation2 + $0x4c] sm:$0xf] %vm489_vm0, %v3846_v44  ;;  %v535_v56 = vld [vmem:[#allocation2 + $0x20] sm:$0xf]  ;;  %v3852_v59 = vpack.c.bf16 %v334_v54, %v334_v54 }
  0x24   : > { %510 = vst.msk [vmem:[#allocation2 + $0x50] sm:$0xf] %vm489_vm0, %v3847_v46  ;;  %v4208_v57 = vld [vmem:[#allocation2 + $0x24] sm:$0xf]  ;;  %511 = vst.msk [vmem:[#allocation2 + $0x54] sm:$0xf] %vm489_vm0, %v3848_v49  ;;  %1620 = vmatpush1.bf16.msra.mxu0 %v3966_v14 }
  0x25   : > { %512 = vst.msk [vmem:[#allocation2 + $0x58] sm:$0xf] %vm489_vm0, %v3849_v50  ;;  %513 = vst.msk [vmem:[#allocation2 + $0x5c] sm:$0xf] %vm489_vm0, %v3850_v51  ;;  %v4217_v60 = vcombine.low %v535_v56, %v4208_v57  ;;  %v4219_v61 = vld [vmem:[#allocation2 + $0x1c] sm:$0xf]  ;;  %1621 = vmatprep.subr.bf16.mxu0 %v4052_v1 }
  0x26   : > { %v530_v62 = vld [vmem:[#allocation2 + $0xc] sm:$0xf]  ;;  %514 = vst.msk [vmem:[#allocation2 + $0x60] sm:$0xf] %vm489_vm0, %v3851_v55  ;;  %v531_v63 = vld [vmem:[#allocation2 + $0x10] sm:$0xf]  ;;  %v4231_v8 = vcombine.low %v4219_v61, %v535_v56 }
  0x27   : > { %v532_v0 = vld [vmem:[#allocation2 + $0x14] sm:$0xf]  ;;  %v529_v2 = vld [vmem:[#allocation2 + $0x8] sm:$0xf]  ;;  %515 = vst.msk [vmem:[#allocation2 + $0x64] sm:$0xf] %vm489_vm0, %v3852_v59  ;;  %1150 = vrot.lane.b32.xlu0 %v4217_v60, %s4053_s28  ;;  %v4226_v3 = vcombine.low %v530_v62, %v531_v63 }
  0x28   : > { %v4228_v4 = vcombine.low %v529_v2, %v530_v62  ;;  %v533_v5 = vld [vmem:[#allocation2 + $0x18] sm:$0xf]  ;;  %v528_v6 = vld [vmem:[#allocation2 + $0x4] sm:$0xf]  ;;  %v558_v7 = vld [vmem:[#allocation2] sm:$0xe]  ;;  %v4233_v9 = vcombine.low %v531_v63, %v532_v0 }
  0x29   : > { %v3687_v10 = vcombine.low %v558_v7, %v528_v6  ;;  %v527_v11 = vld [vmem:[#allocation2] sm:$0xf]  ;;  %v4235_v12 = vcombine.low %v532_v0, %v533_v5  ;;  %v563_v13 = vld [vmem:[#allocation2 + $0xc] sm:$0xe]  ;;  %888 = vrot.lane.b32.xlu1 %v4226_v3, %s4054_s7  ;;  %v4243_v15 = vcombine.low %v533_v5, %v4219_v61  ;;  %v1081_v24 = vrot.slane %v4231_v8, 1 }
  0x2a   : > { %v807_v16 = vrot.slane %v4228_v4, 1  ;;  %v4246_v17 = vcombine.low %v527_v11, %v528_v6  ;;  %v3704_v18 = vcombine.low %v563_v13, %v531_v63  ;;  %v809_v25 = vrot.slane %v4233_v9, 1  ;;  %v3968_v26 = vld [vmem:[%s5880_s2 + $0x8] sm:$0xff]   ;;  %v3969_v37 = vld [vmem:[%s5880_s2] sm:$0xff]   ;;  %v539_v14 = vld [vmem:[#allocation2 + $0x30] sm:$0xf] }
  0x2b   : > { %v806_v19 = vrot.slane %v3687_v10, 1  ;;  %v1079_v20 = vrot.slane %v4235_v12, 1  ;;  %v924_v27 = vshll.u32 %v4226_v3, 16  ;;  %v656_v28 = vshll.u32 %v4228_v4, 16  ;;  %v537_v33 = vld [vmem:[#allocation2 + $0x28] sm:$0xf]  ;;  %1622 = vmatpush1.bf16.msra.mxu0 %v3968_v26 }
  0x2c   : > { %v1078_v21 = vrot.slane %v3704_v18, 1  ;;  %v651_v22 = vshll.u32 %v4246_v17, 16  ;;  %v649_v30 = vshrl.u32 %v4246_v17, 16  ;;  %v672_v32 = vshll.u32 %v4243_v15, 16  ;;  %v4274_v38 = vld [vmem:[#allocation2 + $0x2c] sm:$0xf]  ;;  %1623 = vmatprep.subr.bf16.mxu0 %v4052_v1 }
  0x2d   : > { %v808_v23 = vsel %vm805_vm1, %v806_v19, %v807_v16  ;;  %1148 = vrot.lane.b32.xlu1 %v4243_v15, %s4053_s28  ;;  %v1082_v34 = vsel %vm805_vm1, %v1079_v20, %v1081_v24  ;;  %v810_v35 = vsel %vm805_vm1, %v807_v16, %v809_v25  ;;  %v811_v36 = vrot.slane %v4243_v15, 1  ;;  %v3970_v50 = vld [vmem:[%s5880_s2 + $0x40] sm:$0xff]  }
  0x2e   : > { %837 = vrot.lane.b32.xlu0 %v808_v23, %s4055_s10  ;;  %v1080_v29 = vsel %vm805_vm1, %v1078_v21, %v1079_v20  ;;  %v653_v31 = vrot.slane %v651_v22, 1  ;;  %v658_v39 = vrot.slane %v656_v28, 1  ;;  %v922_v40 = vshrl.u32 %v4226_v3, 16  ;;  %v540_v21 = vld [vmem:[#allocation2 + $0x34] sm:$0xf] }
  0x2f   : > { %v926_v41 = vrot.slane %v924_v27, 1  ;;  %v929_v42 = vshll.u32 %v4235_v12, 16  ;;  %v674_v44 = vrot.slane %v672_v32, 1  ;;  %v676_v45 = vshrl.u32 %v4243_v15, 16  ;;  %1624 = vmatpush1.bf16.msra.mxu0 %v3969_v37  ;;  %v541_v37 = vld [vmem:[#allocation2 + $0x38] sm:$0xf] }
  0x30   : > { %v654_v43 = vor.u32 %v653_v31, %v649_v30  ;;  %v680_v46 = vshll.u32 %v4217_v60, 16  ;;  %v4285_v47 = vcombine.low %v537_v33, %v4274_v38  ;;  %v660_v48 = vshrl.u32 %v4228_v4, 16  ;;  %1639 = vmatprep.subr.bf16.mxu0 %v4052_v1 }
  0x31   : > { %890 = vrot.lane.b32.xlu1 %v4235_v12, %s4054_s7  ;;  %v664_v49 = vshll.u32 %v4233_v9, 16  ;;  %v812_v51 = vsel %vm805_vm1, %v809_v25, %v811_v36  ;;  %v927_v52 = vor.u32 %v926_v41, %v922_v40  ;;  %v931_v53 = vrot.slane %v929_v42, 1  ;;  %v335_v42 = vld [vmem:[%s4155_s16 + $0xd0] sm:$0xff] }
  0x32   : > { %1109 = vrot.lane.b32.xlu0 %v1080_v29, %s4056_s13  ;;  %v933_v54 = vshrl.u32 %v4235_v12, 16  ;;  %v659_v55 = vsel %vm647_vm2, %v654_v43, %v658_v39  ;;  %v678_v56 = vor.u32 %v676_v45, %v674_v44  ;;  %v682_v58 = vrot.slane %v680_v46, 1  ;;  %v336_v45 = vld [vmem:[%s4155_s16 + $0xd8] sm:$0xff] }
  0x33   : > { %v937_v59 = vshll.u32 %v4231_v8, 16  ;;  %v4302_v62 = vcombine.low %v4208_v57, %v537_v33  ;;  %v662_v63 = vor.u32 %v660_v48, %v658_v39  ;;  %1640 = vmatpush2.bf16.msra.mxu0 %v3970_v50  ;;  %v932_v0 = vsel %vm647_vm2, %v927_v52, %v931_v53  ;;  %v4341_v39 = vld [vmem:[#allocation2 + $0x3c] sm:$0xf] }
  0x34   : > { %v666_v2 = vrot.slane %v664_v49, 1  ;;  %v935_v3 = vor.u32 %v933_v54, %v931_v53  ;;  %v684_v5 = vshrl.u32 %v4217_v60, 16  ;;  %v683_v6 = vsel %vm647_vm2, %v678_v56, %v682_v58  ;;  %v338_v56 = vld [vmem:[%s4155_s16 + $0xe8] sm:$0xff] }
  0x35   : > { %1111 = vrot.lane.b32.xlu1 %v1082_v34, %s4056_s13  ;;  %v939_v7 = vrot.slane %v937_v59, 1  ;;  %v688_v10 = vshll.u32 %v4285_v47, 16  ;;  %v668_v57 = vshrl.u32 %v4233_v9, 16  ;;  %v941_v12 = vshrl.u32 %v4231_v8, 16 }
  0x36   : > { %839 = vrot.lane.b32.xlu0 %v810_v35, %s4055_s10  ;;  %v667_v11 = vsel %vm647_vm2, %v662_v63, %v666_v2  ;;  %v945_v13 = vshll.u32 %v4302_v62, 16  ;;  %v686_v18 = vor.u32 %v684_v5, %v682_v58  ;;  %v4323_v27 = vcombine.low %v539_v14, %v540_v21  ;;  %v339_v58 = vld [vmem:[%s4155_s16 + $0xf0] sm:$0xff]  ;;  %v341_v5 = vld [vmem:[%s4155_s16 + $0x100] sm:$0xff] }
  0x37   : > { %v940_v16 = vsel %vm647_vm2, %v935_v3, %v939_v7  ;;  %v690_v19 = vrot.slane %v688_v10, 1  ;;  %v670_v20 = vor.u32 %v668_v57, %v666_v2  ;;  %v943_v22 = vor.u32 %v941_v12, %v939_v7  ;;  %v340_v3 = vld [vmem:[%s4155_s16 + $0xf8] sm:$0xff]  ;;  %v342_v10 = vld [vmem:[%s4155_s16 + $0x108] sm:$0xff] }
  0x38   : > { %v947_v26 = vrot.slane %v945_v13, 1  ;;  %v1083_v29 = vrot.slane %v4302_v62, 1  ;;  %v692_v30 = vshrl.u32 %v4285_v47, 16  ;;  %v696_v31 = vshll.u32 %v4323_v27, 16 }
  0x39   : > { %841 = vrot.lane.b32.xlu1 %v812_v51, %s4055_s10  ;;  %v4320_v23 = vsel %vm647_vm2, %v686_v18, %v690_v19  ;;  %v675_v25 = vsel %vm647_vm2, %v670_v20, %v674_v44  ;;  %v4339_v35 = vcombine.low %v4274_v38, %v539_v14  ;;  %v4347_v40 = vrot.slane %v4217_v60, 1  ;;  %v568_v51 = vld [vmem:[#allocation2 + $0x18] sm:$0xe]  ;;  %v343_v18 = vld [vmem:[%s4155_s16 + $0x110] sm:$0xff] }
  0x3a   : > { %772 = vrot.lane.b32.xlu0 %v659_v55, %s4057_s17  ;;  %v948_v28 = vsel %vm647_vm2, %v943_v22, %v947_v26  ;;  %v1084_v32 = vsel %vm805_vm1, %v1081_v24, %v1083_v29  ;;  %v694_v33 = vor.u32 %v692_v30, %v690_v19  ;;  %v698_v34 = vrot.slane %v696_v31, 1  ;;  %v337_v55 = vld [vmem:[%s4155_s16 + $0xe0] sm:$0xff]  ;;  %v344_v19 = vld [vmem:[%s4155_s16 + $0x118] sm:$0xff] }
  0x3b   : > { %v949_v24 = vshrl.u32 %v4302_v62, 16  ;;  %v953_v41 = vshll.u32 %v4339_v35, 16  ;;  %v4355_v38 = vcombine.low %v541_v37, %v4341_v39  ;;  %v814_v43 = vsel %vm805_vm1, %v811_v36, %v4347_v40 }
  0x3c   : > { %v700_v44 = vshrl.u32 %v4323_v27, 16  ;;  %v1085_v46 = vrot.slane %v4339_v35, 1  ;;  %v3853_v52 = vpack.c.bf16 %v335_v42, %v335_v42  ;;  %v4369_v53 = vcombine.low %v540_v21, %v541_v37 }
  0x3d   : > { %1045 = vrot.lane.b32.xlu1 %v932_v0, %s4058_s18  ;;  %v951_v48 = vor.u32 %v949_v24, %v947_v26  ;;  %v955_v49 = vrot.slane %v953_v41, 1  ;;  %v704_v50 = vshll.u32 %v4355_v38, 16  ;;  %v3854_v54 = vpack.c.bf16 %v336_v45, %v336_v45  ;;  %v543_v26 = vld [vmem:[#allocation2 + $0x40] sm:$0xf] }
  0x3e   : > { %1210 = vrot.lane.b32.xlu0 %v683_v6, %s4059_s19  ;;  %516 = vst.msk [vmem:[#allocation2 + $0x68] sm:$0xf] %vm489_vm0, %v3853_v52  ;;  %v3709_v36 = vcombine.low %v568_v51, %v4219_v61  ;;  %v1086_v59 = vsel %vm805_vm1, %v1083_v29, %v1085_v46  ;;  %v702_v0 = vor.u32 %v700_v44, %v698_v34  ;;  %v815_v61 = vrot.slane %v4285_v47, 1  ;;  %v546_v44 = vld [vmem:[#allocation2 + $0x4c] sm:$0xf] }
  0x3f   : > { %v956_v63 = vsel %vm647_vm2, %v951_v48, %v955_v49  ;;  %v706_v2 = vrot.slane %v704_v50, 1  ;;  %517 = vst.msk [vmem:[#allocation2 + $0x6c] sm:$0xf] %vm489_vm0, %v3854_v54  ;;  %v3856_v7 = vpack.c.bf16 %v338_v56, %v338_v56  ;;  %v957_v57 = vshrl.u32 %v4339_v35, 16 }
  0x40   : > { %v3857_v12 = vpack.c.bf16 %v339_v58, %v339_v58  ;;  %v3858_v14 = vpack.c.bf16 %v340_v3, %v340_v3  ;;  %v3860_v21 = vpack.c.bf16 %v342_v10, %v342_v10  ;;  %v3861_v22 = vpack.c.bf16 %v343_v18, %v343_v18  ;;  %v547_v3 = vld [vmem:[#allocation2 + $0x50] sm:$0xf] }
  0x41   : > { %774 = vrot.lane.b32.xlu1 %v667_v11, %s4057_s17  ;;  %v961_v11 = vshll.u32 %v4369_v53, 16  ;;  %519 = vst.msk [vmem:[#allocation2 + $0x74] sm:$0xf] %vm489_vm0, %v3856_v7  ;;  %v4399_v20 = vsel %vm647_vm2, %v702_v0, %v706_v2  ;;  %v4414_v29 = vsel %vm805_vm1, %v4347_v40, %v815_v61  ;;  %v959_v30 = vor.u32 %v957_v57, %v955_v49 }
  0x42   : > { %1047 = vrot.lane.b32.xlu0 %v940_v16, %s4058_s18  ;;  %v3859_v16 = vpack.c.bf16 %v341_v5, %v341_v5  ;;  %520 = vst.msk [vmem:[#allocation2 + $0x78] sm:$0xf] %vm489_vm0, %v3857_v12  ;;  %521 = vst.msk [vmem:[#allocation2 + $0x7c] sm:$0xf] %vm489_vm0, %v3858_v14  ;;  %v708_v37 = vshrl.u32 %v4355_v38, 16  ;;  %v817_v45 = vrot.slane %v4323_v27, 1  ;;  %v3696_v18 = vcombine.low %v546_v44, %v547_v3 }
  0x43   : > { %523 = vst.msk [vmem:[#allocation2 + $0x84] sm:$0xf] %vm489_vm0, %v3860_v21  ;;  %524 = vst.msk [vmem:[#allocation2 + $0x88] sm:$0xf] %vm489_vm0, %v3861_v22  ;;  %v963_v31 = vrot.slane %v961_v11, 1  ;;  %v965_v49 = vshrl.u32 %v4369_v53, 16 }
  0x44   : > { %522 = vst.msk [vmem:[#allocation2 + $0x80] sm:$0xf] %vm489_vm0, %v3859_v16  ;;  %v710_v41 = vor.u32 %v708_v37, %v706_v2  ;;  %v819_v0 = vrot.slane %v4355_v38, 1  ;;  %v548_v5 = vld [vmem:[#allocation2 + $0x54] sm:$0xf] }
  0x45   : > { %1212 = vrot.lane.b32.xlu1 %v4320_v23, %s4059_s19  ;;  %v967_v51 = vor.u32 %v965_v49, %v963_v31  ;;  %v4465_v10 = vcombine.low %v547_v3, %v548_v5  ;;  %v550_v21 = vld [vmem:[#allocation2 + $0x5c] sm:$0xf] }
  0x46   : > { %776 = vrot.lane.b32.xlu0 %v675_v25, %s4057_s17  ;;  %v3862_v25 = vpack.c.bf16 %v344_v19, %v344_v19  ;;  %v549_v19 = vld [vmem:[#allocation2 + $0x58] sm:$0xf] }
  0x47   : > { %v728_v12 = vshll.u32 %v4465_v10, 16  ;;  %v732_v37 = vshrl.u32 %v4465_v10, 16 }
  0x48   : > { %525 = vst.msk [vmem:[#allocation2 + $0x8c] sm:$0xf] %vm489_vm0, %v3862_v25 }
  0x49   : > { %1049 = vrot.lane.b32.xlu1 %v948_v28, %s4058_s18  ;;  %v544_v28 = vld [vmem:[#allocation2 + $0x44] sm:$0xf]  ;;  %v730_v16 = vrot.slane %v728_v12, 1 }
  0x4a   : > { %892 = vrot.lane.b32.xlu0 %v4231_v8, %s4054_s7  ;;  %v4350_v8 = vsel %vm647_vm2, %v694_v33, %v698_v34  ;;  %v964_v33 = vsel %vm647_vm2, %v959_v30, %v963_v31  ;;  %v1087_v34 = vrot.slane %v4369_v53, 1  ;;  %v1093_v31 = vrot.slane %v3696_v18, 1 }
  0x4d   : > { %1152 = vrot.lane.b32.xlu1 %v4285_v47, %s4053_s28 }
  0x4e   : > { %1113 = vrot.lane.b32.xlu0 %v1084_v32, %s4056_s13  ;;  %v4416_v32 = vcombine.low %v543_v26, %v544_v28 }
  0x50   : > { %v712_v24 = vshll.u32 %v4416_v32, 16  ;;  %v716_v54 = vshrl.u32 %v4416_v32, 16 }
  0x51   : > { %778 = vrot.lane.b32.xlu1 %v683_v6, %s4057_s17  ;;  %v3855_v6 = vpack.c.bf16 %v337_v55, %v337_v55 }
  0x52   : > { %1214 = vrot.lane.b32.xlu0 %v4350_v8, %s4059_s19  ;;  %v714_v42 = vrot.slane %v712_v24, 1 }
  0x53   : > { %518 = vst.msk [vmem:[#allocation2 + $0x70] sm:$0xf] %vm489_vm0, %v3855_v6 }
  0x54   : > { %v715_v48 = vsel %vm647_vm2, %v710_v41, %v714_v42  ;;  %v718_v58 = vor.u32 %v716_v54, %v714_v42 }
  0x55   : > { %894 = vrot.lane.b32.xlu1 %v4302_v62, %s4054_s7  ;;  %v1243_v62 = vrot.slane %v3709_v36, 1 }
  0x56   : > { %843 = vrot.lane.b32.xlu0 %v814_v43, %s4055_s10  ;;  %v545_v43 = vld [vmem:[#allocation2 + $0x48] sm:$0xf] }
  0x57   : > { %v1244_v13 = vsel %vm805_vm1, %v1243_v62, %v4347_v40  ;;  %v1088_v40 = vsel %vm805_vm1, %v1085_v46, %v1087_v34  ;;  %v4439_v50 = vcombine.low %v545_v43, %v546_v44  ;;  %v3695_v56 = vcombine.low %v544_v28, %v545_v43 }
  0x58   : > { %3720 = vmatprep.mubr.msk.bf16.mxu0 %vm1253_vm3, %v1244_v13  ;;  %v4463_v62 = vsel %vm805_vm1, %v817_v45, %v819_v0  ;;  %v4482_v28 = vcombine.low %v549_v19, %v550_v21 }
  0x59   : > { %1115 = vrot.lane.b32.xlu1 %v1086_v59, %s4056_s13  ;;  %v720_v55 = vshll.u32 %v4439_v50, 16  ;;  %v1091_v57 = vrot.slane %v3695_v56, 1  ;;  %v724_v11 = vshrl.u32 %v4439_v50, 16  ;;  %v981_v25 = vshrl.u32 %v3695_v56, 16 }
  0x5a   : > { %1051 = vrot.lane.b32.xlu0 %v956_v63, %s4058_s18  ;;  %v736_v24 = vshll.u32 %v4482_v28, 16 }
  0x5b   : > { %v722_v59 = vrot.slane %v720_v55, 1  ;;  %v1094_v41 = vsel %vm805_vm1, %v1091_v57, %v1093_v31 }
  0x5c   : > { %v738_v43 = vrot.slane %v736_v24, 1 }
  0x5d   : > { %1216 = vrot.lane.b32.xlu1 %v4399_v20, %s4059_s19  ;;  %v723_v63 = vsel %vm647_vm2, %v718_v58, %v722_v59  ;;  %v726_v14 = vor.u32 %v724_v11, %v722_v59  ;;  %v740_v58 = vshrl.u32 %v4482_v28, 16 }
  0x5e   : > { %1154 = vrot.lane.b32.xlu0 %v4323_v27, %s4053_s28 }
  0x5f   : > { %v731_v22 = vsel %vm647_vm2, %v726_v14, %v730_v16 }
  0x61   : > { %845 = vrot.lane.b32.xlu1 %v4414_v29, %s4055_s10 }
  0x62   : > { %780 = vrot.lane.b32.xlu0 %v4320_v23, %s4057_s17  ;;  %v3694_v23 = vcombine.low %v4341_v39, %v543_v26  ;;  %v4445_v39 = vsel %vm805_vm1, %v815_v61, %v817_v45  ;;  %v985_v26 = vshll.u32 %v3696_v18, 16  ;;  %v823_v45 = vrot.slane %v4439_v50, 1 }
  0x64   : > { %v1089_v46 = vrot.slane %v3694_v23, 1  ;;  %v973_v2 = vshrl.u32 %v3694_v23, 16 }
  0x65   : > { %1053 = vrot.lane.b32.xlu1 %v964_v33, %s4058_s18 }
  0x66   : > { %896 = vrot.lane.b32.xlu0 %v4339_v35, %s4054_s7  ;;  %v969_v35 = vshll.u32 %v3694_v23, 16  ;;  %v1092_v13 = vsel %vm805_vm1, %v1089_v46, %v1091_v57  ;;  %v825_v57 = vrot.slane %v4465_v10, 1 }
  0x68   : > { %v971_v52 = vrot.slane %v969_v35, 1  ;;  %v551_v35 = vld [vmem:[#allocation2 + $0x60] sm:$0xf] }
  0x69   : > { %1156 = vrot.lane.b32.xlu1 %v4355_v38, %s4053_s28 }
  0x6a   : > { %1117 = vrot.lane.b32.xlu0 %v1088_v40, %s4056_s13  ;;  %v972_v36 = vsel %vm647_vm2, %v967_v51, %v971_v52  ;;  %v975_v6 = vor.u32 %v973_v2, %v971_v52  ;;  %v3697_v40 = vcombine.low %v548_v5, %v549_v19  ;;  %v4522_v5 = vcombine.low %v550_v21, %v551_v35 }
  0x6b   : > { %v4541_v19 = vsel %vm805_vm1, %v823_v45, %v825_v57 }
  0x6c   : > { %v993_v49 = vshll.u32 %v3697_v40, 16  ;;  %v997_v12 = vshrl.u32 %v3697_v40, 16  ;;  %v1097_v21 = vrot.slane %v4522_v5, 1 }
  0x6d   : > { %782 = vrot.lane.b32.xlu1 %v4350_v8, %s4057_s17  ;;  %v1090_v8 = vsel %vm805_vm1, %v1087_v34, %v1089_v46  ;;  %v987_v34 = vrot.slane %v985_v26, 1  ;;  %v552_v46 = vld [vmem:[#allocation2 + $0x64] sm:$0xf] }
  0x6e   : > { %1218 = vrot.lane.b32.xlu0 %v715_v48, %s4059_s19  ;;  %v995_v54 = vrot.slane %v993_v49, 1  ;;  %v4509_v55 = vcombine.low %v551_v35, %v552_v46 }
  0x70   : > { %v744_v59 = vshll.u32 %v4509_v55, 16  ;;  %v748_v26 = vshrl.u32 %v4509_v55, 16 }
  0x71   : > { %898 = vrot.lane.b32.xlu1 %v4369_v53, %s4054_s7  ;;  %v977_v53 = vshll.u32 %v3695_v56, 16 }
  0x72   : > { %847 = vrot.lane.b32.xlu0 %v4445_v39, %s4055_s10  ;;  %v746_v3 = vrot.slane %v744_v59, 1 }
  0x73   : > { %v979_v7 = vrot.slane %v977_v53, 1  ;;  %v742_v53 = vor.u32 %v740_v58, %v738_v43 }
  0x74   : > { %v750_v24 = vor.u32 %v748_v26, %v746_v3 }
  0x75   : > { %1119 = vrot.lane.b32.xlu1 %v1090_v8, %s4056_s13  ;;  %v980_v61 = vsel %vm647_vm2, %v975_v6, %v979_v7  ;;  %v983_v33 = vor.u32 %v981_v25, %v979_v7  ;;  %v553_v7 = vld [vmem:[#allocation2 + $0x68] sm:$0xf]  ;;  %v4531_v11 = vsel %vm647_vm2, %v742_v53, %v746_v3 }
  0x76   : > { %1055 = vrot.lane.b32.xlu0 %v972_v36, %s4058_s18  ;;  %v1095_v36 = vrot.slane %v3697_v40, 1 }
  0x77   : > { %v988_v42 = vsel %vm647_vm2, %v983_v33, %v987_v34 }
  0x78   : > { %v1096_v2 = vsel %vm805_vm1, %v1093_v31, %v1095_v36 }
  0x79   : > { %1220 = vrot.lane.b32.xlu1 %v723_v63, %s4059_s19 }
  0x7a   : > { %1158 = vrot.lane.b32.xlu0 %v4416_v32, %s4053_s28 }
  0x7d   : > { %849 = vrot.lane.b32.xlu1 %v4463_v62, %s4055_s10 }
  0x7e   : > { %784 = vrot.lane.b32.xlu0 %v4399_v20, %s4057_s17  ;;  %v821_v20 = vrot.slane %v4416_v32, 1 }
  0x80   : > { %v4487_v30 = vsel %vm805_vm1, %v819_v0, %v821_v20  ;;  %v4507_v51 = vsel %vm805_vm1, %v821_v20, %v823_v45  ;;  %v999_v20 = vor.u32 %v997_v12, %v995_v54 }
  0x81   : > { %1057 = vrot.lane.b32.xlu1 %v980_v61, %s4058_s18  ;;  %v4524_v61 = vld [vmem:[#allocation2 + $0x6c] sm:$0xf] }
  0x82   : > { %900 = vrot.lane.b32.xlu0 %v3694_v23, %s4054_s7  ;;  %v734_v23 = vor.u32 %v732_v37, %v730_v16  ;;  %v4535_v14 = vcombine.low %v553_v7, %v4524_v61 }
  0x84   : > { %v4499_v44 = vsel %vm647_vm2, %v734_v23, %v738_v43  ;;  %v752_v31 = vshll.u32 %v4535_v14, 16 }
  0x85   : > { %1160 = vrot.lane.b32.xlu1 %v4439_v50, %s4053_s28 }
  0x86   : > { %1121 = vrot.lane.b32.xlu0 %v1092_v13, %s4056_s13  ;;  %v1001_v13 = vshll.u32 %v4522_v5, 16 }
  0x88   : > { %v1003_v25 = vrot.slane %v1001_v13, 1 }
  0x89   : > { %786 = vrot.lane.b32.xlu1 %v715_v48, %s4057_s17  ;;  %v989_v48 = vshrl.u32 %v3696_v18, 16 }
  0x8a   : > { %1222 = vrot.lane.b32.xlu0 %v731_v22, %s4059_s19  ;;  %v1004_v37 = vsel %vm647_vm2, %v999_v20, %v1003_v25 }
  0x8b   : > { %v991_v52 = vor.u32 %v989_v48, %v987_v34  ;;  %v827_v48 = vrot.slane %v4482_v28, 1 }
  0x8d   : > { %902 = vrot.lane.b32.xlu1 %v3695_v56, %s4054_s7  ;;  %v996_v8 = vsel %vm647_vm2, %v991_v52, %v995_v54 }
  0x8e   : > { %851 = vrot.lane.b32.xlu0 %v4487_v30, %s4055_s10 }
  0x91   : > { %1123 = vrot.lane.b32.xlu1 %v1094_v41, %s4056_s13  ;;  %v754_v41 = vrot.slane %v752_v31, 1 }
  0x92   : > { %1059 = vrot.lane.b32.xlu0 %v988_v42, %s4058_s18  ;;  %v4553_v42 = vcombine.low %v552_v46, %v553_v7  ;;  %v1005_v46 = vshrl.u32 %v4522_v5, 16 }
  0x93   : > { %v4563_v35 = vsel %vm647_vm2, %v750_v24, %v754_v41 }
  0x94   : > { %v1009_v52 = vshll.u32 %v4553_v42, 16  ;;  %v1007_v53 = vor.u32 %v1005_v46, %v1003_v25  ;;  %v559_v46 = vld [vmem:[#allocation2 + $0x78] sm:$0xf] }
  0x95   : > { %1224 = vrot.lane.b32.xlu1 %v4499_v44, %s4059_s19 }
  0x96   : > { %1162 = vrot.lane.b32.xlu0 %v4465_v10, %s4053_s28  ;;  %v1011_v3 = vrot.slane %v1009_v52, 1  ;;  %v4616_v52 = vld [vmem:[#allocation2 + $0x7c] sm:$0xf] }
  0x98   : > { %v1012_v25 = vsel %vm647_vm2, %v1007_v53, %v1011_v3 }
  0x99   : > { %853 = vrot.lane.b32.xlu1 %v4507_v51, %s4055_s10  ;;  %v4514_v56 = vpop.permute.xlu0 %1150 }
  0x9a   : > { %788 = vrot.lane.b32.xlu0 %v723_v63, %s4057_s17 }
  0x9b   : > { %v889_v0 = vpop.permute.xlu1 %888 }
  0x9d   : > { %1061 = vrot.lane.b32.xlu1 %v996_v8, %s4058_s18  ;;  %v555_v8 = vld [vmem:[#allocation2 + $0x70] sm:$0xf] }
  0x9e   : > { %904 = vrot.lane.b32.xlu0 %v3696_v18, %s4054_s7 }
  0x9f   : > { %v1149_v63 = vpop.permute.xlu1 %1148 }
  0xa0   : > { %v838_v6 = vpop.permute.xlu0 %837 }
  0xa1   : > { %1164 = vrot.lane.b32.xlu1 %v4482_v28, %s4053_s28 }
  0xa2   : > { %1125 = vrot.lane.b32.xlu0 %v1096_v2, %s4056_s13 }
  0xa3   : > { %v891_v16 = vpop.permute.xlu1 %890 }
  0xa4   : > { %v1110_v18 = vpop.permute.xlu0 %1109 }
  0xa5   : > { %790 = vrot.lane.b32.xlu1 %v731_v22, %s4057_s17  ;;  %v1098_v22 = vsel %vm805_vm1, %v1095_v36, %v1097_v21  ;;  %v4567_v36 = vld [vmem:[#allocation2 + $0x74] sm:$0xf] }
  0xa6   : > { %1226 = vrot.lane.b32.xlu0 %v4531_v11, %s4059_s19 }
  0xa7   : > { %v1112_v33 = vpop.permute.xlu1 %1111 }
  0xa8   : > { %v840_v34 = vpop.permute.xlu0 %839 }
  0xa9   : > { %906 = vrot.lane.b32.xlu1 %v3697_v40, %s4054_s7 }
  0xaa   : > { %855 = vrot.lane.b32.xlu0 %v4541_v19, %s4055_s10 }
  0xab   : > { %v842_v23 = vpop.permute.xlu1 %841 }
  0xac   : > { %v773_v43 = vpop.permute.xlu0 %772 }
  0xad   : > { %v1255_v40 = vsel %vm1253_vm3, %v4246_v17, %v773_v43  ;;  %1127 = vrot.lane.b32.xlu1 %v1098_v22, %s4056_s13 }
  0xae   : > { %v1286_v45 = vsel %vm1284_vm4, %v1255_v40, %v838_v6  ;;  %1063 = vrot.lane.b32.xlu0 %v1004_v37, %s4058_s18  ;;  %v4582_v6 = vcombine.low %v555_v8, %v4567_v36 }
  0xaf   : > { %v1317_v49 = vsel %vm1315_vm5, %v1286_v45, %v889_v0  ;;  %v1046_v17 = vpop.permute.xlu1 %1045  ;;  %v4578_v0 = vsel %vm805_vm1, %v825_v57, %v827_v48 }
  0xb0   : > { %v1211_v54 = vpop.permute.xlu0 %1210  ;;  %v1348_v58 = vsel %vm1346_vm6, %v1317_v49, %v1046_v17  ;;  %v760_v26 = vshll.u32 %v4582_v6, 16 }
  0xb1   : > { %v1379_v59 = vsel %vm1377_vm7, %v1348_v58, %v1110_v18  ;;  %1228 = vrot.lane.b32.xlu1 %v4563_v35, %s4059_s19 }
  0xb2   : > { %1166 = vrot.lane.b32.xlu0 %v4509_v55, %s4053_s28  ;;  %v1410_v2 = vsel %vm1408_vm8, %v1379_v59, %v1149_v63  ;;  %v1099_v63 = vrot.slane %v4553_v42, 1  ;;  %v762_v40 = vrot.slane %v760_v26, 1 }
  0xb3   : > { %v775_v7 = vpop.permute.xlu1 %774  ;;  %v1441_v13 = vsel %vm1439_vm9, %v1410_v2, %v1211_v54 }
  0xb4   : > { %v1048_v12 = vpop.permute.xlu0 %1047  ;;  %v1257_v18 = vsel %vm1253_vm3, %v4228_v4, %v775_v7  ;;  %1642 = vmatmul.mubr.bf16.vlgmr.msra.gmra.mxu0 %v1441_v13  ;;  %v756_v4 = vshrl.u32 %v4535_v14, 16  ;;  %v764_v7 = vshrl.u32 %v4582_v6, 16 }
  0xb5   : > { %v1288_v20 = vsel %vm1284_vm4, %v1257_v18, %v840_v34  ;;  %857 = vrot.lane.b32.xlu1 %v4578_v0, %s4055_s10  ;;  %3721 = vmatprep.mubr.msk.bf16.mxu0 %vm1253_vm3, %v4414_v29 }
  0xb6   : > { %792 = vrot.lane.b32.xlu0 %v4499_v44, %s4057_s17  ;;  %v1319_v57 = vsel %vm1315_vm5, %v1288_v20, %v891_v16  ;;  %v1100_v16 = vsel %vm805_vm1, %v1097_v21, %v1099_v63  ;;  %v758_v43 = vor.u32 %v756_v4, %v754_v41  ;;  %v1013_v21 = vshrl.u32 %v4553_v42, 16 }
  0xb7   : > { %v1350_v31 = vsel %vm1346_vm6, %v1319_v57, %v1048_v12  ;;  %v1213_v22 = vpop.permute.xlu1 %1212  ;;  %v4660_v4 = vor.u32 %v764_v7, %v762_v40 }
  0xb8   : > { %v777_v34 = vpop.permute.xlu0 %776  ;;  %v1381_v37 = vsel %vm1377_vm7, %v1350_v31, %v1112_v33  ;;  %v4613_v33 = vcombine.low %v4524_v61, %v555_v8  ;;  %v4624_v61 = vsel %vm647_vm2, %v758_v43, %v762_v40  ;;  %v1015_v2 = vor.u32 %v1013_v21, %v1011_v3 }
  0xb9   : > { %v1259_v44 = vsel %vm1253_vm3, %v4233_v9, %v777_v34  ;;  %1065 = vrot.lane.b32.xlu1 %v1012_v25, %s4058_s18  ;;  %v1412_v29 = vsel %vm1408_vm8, %v1381_v37, %v4514_v56 }
  0xba   : > { %908 = vrot.lane.b32.xlu0 %v4522_v5, %s4054_s7  ;;  %v1444_v24 = vsel %vm1439_vm9, %v1412_v29, %v1213_v22  ;;  %v1290_v9 = vsel %vm1284_vm4, %v1259_v44, %v842_v23  ;;  %v829_v5 = vrot.slane %v4509_v55, 1  ;;  %v1017_v41 = vshll.u32 %v4613_v33, 16 }
  0xbb   : > { %v1050_v49 = vpop.permute.xlu1 %1049  ;;  %v4631_v23 = vcombine.low %v559_v46, %v4616_v52  ;;  %v1101_v59 = vrot.slane %v4613_v33, 1 }
  0xbc   : > { %v893_v45 = vpop.permute.xlu0 %892  ;;  %1650 = vmatmul.mubr.bf16.gmra.mxu0 %v1444_v24  ;;  %v1019_v53 = vrot.slane %v1017_v41, 1 }
  0xbd   : > { %v1321_v56 = vsel %vm1315_vm5, %v1290_v9, %v893_v45  ;;  %1168 = vrot.lane.b32.xlu1 %v4535_v14, %s4053_s28  ;;  %3722 = vmatprep.mubr.msk.bf16.mxu0 %vm1253_vm3, %v4445_v39  ;;  %v4642_v39 = vsel %vm805_vm1, %v827_v48, %v829_v5  ;;  %v1182_v12 = vshll.u32 %v4631_v23, 16  ;;  %v4656_v48 = vcombine.low %v4567_v36, %v559_v46 }
  0xbe   : > { %1129 = vrot.lane.b32.xlu0 %v1100_v16, %s4056_s13  ;;  %v1352_v17 = vsel %vm1346_vm6, %v1321_v56, %v1050_v49  ;;  %v1102_v3 = vsel %vm805_vm1, %v1099_v63, %v1101_v59  ;;  %v1020_v25 = vsel %vm647_vm2, %v1015_v2, %v1019_v53  ;;  %v831_v36 = vrot.slane %v4535_v14, 1  ;;  %v564_v16 = vld [vmem:[#allocation2 + $0x84] sm:$0xf] }
  0xbf   : > { %v1153_v8 = vpop.permute.xlu1 %1152  ;;  %v1184_v26 = vrot.slane %v1182_v12, 1  ;;  %v1021_v63 = vshrl.u32 %v4613_v33, 16  ;;  %v1025_v22 = vshll.u32 %v4656_v48, 16 }
  0xc0   : > { %v1114_v54 = vpop.permute.xlu0 %1113  ;;  %v4678_v43 = vsel %vm805_vm1, %v829_v5, %v831_v36 }
  0xc1   : > { %v1383_v58 = vsel %vm1377_vm7, %v1352_v17, %v1114_v54  ;;  %794 = vrot.lane.b32.xlu1 %v4531_v11, %s4057_s17  ;;  %v1023_v40 = vor.u32 %v1021_v63, %v1019_v53  ;;  %v1027_v9 = vrot.slane %v1025_v22, 1  ;;  %v1103_v17 = vrot.slane %v4656_v48, 1 }
  0xc2   : > { %1230 = vrot.lane.b32.xlu0 %v4624_v61, %s4059_s19  ;;  %v1414_v13 = vsel %vm1408_vm8, %v1383_v58, %v1153_v8  ;;  %v1186_v54 = vshrl.u32 %v4631_v23, 16 }
  0xc3   : > { %v779_v11 = vpop.permute.xlu1 %778  ;;  %v1028_v5 = vsel %vm647_vm2, %v1023_v40, %v1027_v9 }
  0xc4   : > { %v1215_v18 = vpop.permute.xlu0 %1214  ;;  %v1261_v57 = vsel %vm1253_vm3, %v4243_v15, %v779_v11  ;;  %v1188_v7 = vor.u32 %v1186_v54, %v1184_v26 }
  0xc5   : > { %v1447_v20 = vsel %vm1439_vm9, %v1414_v13, %v1215_v18  ;;  %910 = vrot.lane.b32.xlu1 %v4553_v42, %s4054_s7  ;;  %v1185_v42 = vsel %vm647_vm2, %v4660_v4, %v1184_v26 }
  0xc6   : > { %859 = vrot.lane.b32.xlu0 %v4642_v39, %s4055_s10  ;;  %1658 = vmatmul.mubr.bf16.gmra.mxu0 %v1447_v20 }
  0xc7   : > { %v895_v34 = vpop.permute.xlu1 %894  ;;  %3723 = vmatprep.mubr.msk.bf16.mxu0 %vm1253_vm3, %v4463_v62  ;;  %v561_v62 = vld [vmem:[#allocation2 + $0x80] sm:$0xf] }
  0xc8   : > { %v844_v31 = vpop.permute.xlu0 %843  ;;  %v4680_v45 = vcombine.low %v561_v62, %v564_v16  ;;  %v4702_v13 = vcombine.low %v4616_v52, %v561_v62 }
  0xc9   : > { %v1292_v15 = vsel %vm1284_vm4, %v1261_v57, %v844_v31  ;;  %1131 = vrot.lane.b32.xlu1 %v1102_v3, %s4056_s13  ;;  %v4715_v57 = vld [vmem:[#allocation2 + $0x88] sm:$0xff]  }
  0xca   : > { %1067 = vrot.lane.b32.xlu0 %v1020_v25, %s4058_s18  ;;  %v1323_v37 = vsel %vm1315_vm5, %v1292_v15, %v895_v34  ;;  %v1190_v8 = vshll.u32 %v4680_v45, 16  ;;  %v1033_v52 = vshll.u32 %v4702_v13, 16  ;;  %v1194_v15 = vshrl.u32 %v4680_v45, 16 }
  0xcb   : > { %v1116_v29 = vpop.permute.xlu1 %1115  ;;  %v1037_v54 = vshrl.u32 %v4702_v13, 16 }
  0xcc   : > { %v1052_v44 = vpop.permute.xlu0 %1051  ;;  %v1192_v12 = vrot.slane %v1190_v8, 1  ;;  %v1035_v22 = vrot.slane %v1033_v52, 1 }
  0xcd   : > { %v1354_v24 = vsel %vm1346_vm6, %v1323_v37, %v1052_v44  ;;  %1232 = vrot.lane.b32.xlu1 %v1185_v42, %s4059_s19  ;;  %v1105_v42 = vrot.slane %v4702_v13, 1  ;;  %v1198_v37 = vshll.u32 %v4715_v57, 16  ;;  %v3976_v44 = vld [vmem:[#allocation2 + $0x78] ss:$0 sps:$4 sm:$0x11]  }
  0xce   : > { %1170 = vrot.lane.b32.xlu0 %v4582_v6, %s4053_s28  ;;  %v1385_v49 = vsel %vm1377_vm7, %v1354_v24, %v1116_v29 }
  0xcf   : > { %v1217_v56 = vpop.permute.xlu1 %1216  ;;  %v1106_v40 = vsel %vm805_vm1, %v1103_v17, %v1105_v42 }
  0xd0   : > { %v1155_v46 = vpop.permute.xlu0 %1154 }
  0xd1   : > { %v1416_v21 = vsel %vm1408_vm8, %v1385_v49, %v1155_v46  ;;  %861 = vrot.lane.b32.xlu1 %v4678_v43, %s4055_s10  ;;  %v1200_v49 = vrot.slane %v1198_v37, 1  ;;  %v768_v46 = vshll.u32 %v3976_v44, 16 }
  0xd2   : > { %796 = vrot.lane.b32.xlu0 %v4563_v35, %s4057_s17  ;;  %v1450_v41 = vsel %vm1439_vm9, %v1416_v21, %v1217_v56  ;;  %v1104_v35 = vsel %vm805_vm1, %v1101_v59, %v1103_v17  ;;  %v1029_v59 = vshrl.u32 %v4656_v48, 16  ;;  %v3977_v56 = vld [vmem:[#allocation2 + $0x84] ss:$0 sps:$4 sm:$0x11]  }
  0xd3   : > { %1666 = vmatmul.mubr.bf16.gmra.mxu0 %v1450_v41  ;;  %v846_v2 = vpop.permute.xlu1 %845  ;;  %v770_v17 = vrot.slane %v768_v46, 1  ;;  %v1041_v8 = vshll.u32 %v3977_v56, 16 }
  0xd4   : > { %v781_v58 = vpop.permute.xlu0 %780  ;;  %3724 = vmatprep.mubr.msk.bf16.mxu0 %vm1253_vm3, %v4487_v30  ;;  %v1031_v63 = vor.u32 %v1029_v59, %v1027_v9 }
  0xd5   : > { %v1263_v53 = vsel %vm1253_vm3, %v4217_v60, %v781_v58  ;;  %1069 = vrot.lane.b32.xlu1 %v1028_v5, %s4058_s18  ;;  %v4710_v60 = vrot.slane %v4582_v6, 1 }
  0xd6   : > { %912 = vrot.lane.b32.xlu0 %v4613_v33, %s4054_s7  ;;  %v1294_v18 = vsel %vm1284_vm4, %v1263_v53, %v846_v2  ;;  %v1193_v33 = vsel %vm647_vm2, %v1188_v7, %v1192_v12  ;;  %v1036_v9 = vsel %vm647_vm2, %v1031_v63, %v1035_v22  ;;  %v771_v7 = vsel %vm647_vm2, %v4660_v4, %v770_v17 }
  0xd7   : > { %v1054_v20 = vpop.permute.xlu1 %1053  ;;  %v4724_v34 = vsel %vm805_vm1, %v831_v36, %v4710_v60  ;;  %v1196_v36 = vor.u32 %v1194_v15, %v1192_v12  ;;  %v1039_v12 = vor.u32 %v1037_v54, %v1035_v22 }
  0xd8   : > { %v897_v11 = vpop.permute.xlu0 %896 }
  0xd9   : > { %v1325_v30 = vsel %vm1315_vm5, %v1294_v18, %v897_v11  ;;  %1172 = vrot.lane.b32.xlu1 %v4631_v23, %s4053_s28  ;;  %v1201_v5 = vsel %vm647_vm2, %v1196_v36, %v1200_v49  ;;  %v1043_v18 = vrot.slane %v1041_v8, 1  ;;  %v4755_v11 = vld [vmem:[#allocation2 + $0x90] ss:$0 sps:$4 sm:$0x11]   ;;  %v1797_v8 = vld [vmem:[%s4778_s8 + $0x28] sm:$0xff] }
  0xda   : > { %1133 = vrot.lane.b32.xlu0 %v1104_v35, %s4056_s13  ;;  %v1356_v3 = vsel %vm1346_vm6, %v1325_v30, %v1054_v20 }
  0xdb   : > { %v1157_v26 = vpop.permute.xlu1 %1156  ;;  %v1044_v4 = vsel %vm647_vm2, %v1039_v12, %v1043_v18 }
  0xdc   : > { %v1118_v25 = vpop.permute.xlu0 %1117 }
  0xdd   : > { %v1387_v31 = vsel %vm1377_vm7, %v1356_v3, %v1118_v25  ;;  %798 = vrot.lane.b32.xlu1 %v4624_v61, %s4057_s17  ;;  %v1107_v3 = vrot.slane %v3977_v56, 1  ;;  %v1202_v25 = vshrl.u32 %v4715_v57, 16 }
  0xde   : > { %1234 = vrot.lane.b32.xlu0 %v1193_v33, %s4059_s19  ;;  %v1418_v29 = vsel %vm1408_vm8, %v1387_v31, %v1157_v26  ;;  %v1206_v26 = vshll.u32 %v4755_v11, 16 }
  0xdf   : > { %v783_v16 = vpop.permute.xlu1 %782  ;;  %v1108_v22 = vsel %vm805_vm1, %v1105_v42, %v1107_v3  ;;  %v1204_v37 = vor.u32 %v1202_v25, %v1200_v49  ;;  %v1803_v25 = vld [vmem:[%s4778_s8 + $0x58] sm:$0xff] }
  0xe0   : > { %v1219_v62 = vpop.permute.xlu0 %1218  ;;  %v1265_v24 = vsel %vm1253_vm3, %v4285_v47, %v783_v16 }
  0xe1   : > { %v1453_v61 = vsel %vm1439_vm9, %v1418_v29, %v1219_v62  ;;  %914 = vrot.lane.b32.xlu1 %v4656_v48, %s4054_s7  ;;  %v835_v48 = vrot.slane %v3976_v44, 1  ;;  %v1208_v44 = vrot.slane %v1206_v26, 1  ;;  %v1804_v26 = vld [vmem:[%s4778_s8 + $0x60] sm:$0xff] }
  0xe2   : > { %863 = vrot.lane.b32.xlu0 %v4724_v34, %s4055_s10  ;;  %1674 = vmatmul.mubr.bf16.gmra.mxu0 %v1453_v61 }
  0xe3   : > { %v899_v41 = vpop.permute.xlu1 %898  ;;  %3725 = vmatprep.mubr.msk.bf16.mxu0 %vm1253_vm3, %v4507_v51  ;;  %v836_v51 = vsel %vm805_vm1, %v4710_v60, %v835_v48  ;;  %v1796_v48 = vld [vmem:[%s4778_s8 + $0x20] sm:$0xff] }
  0xe4   : > { %v848_v21 = vpop.permute.xlu0 %847 }
  0xe5   : > { %v1296_v47 = vsel %vm1284_vm4, %v1265_v24, %v848_v21  ;;  %1135 = vrot.lane.b32.xlu1 %v1106_v40, %s4056_s13  ;;  %v1794_v40 = vld [vmem:[%s4778_s8 + $0x10] sm:$0xff] }
  0xe6   : > { %1071 = vrot.lane.b32.xlu0 %v1036_v9, %s4058_s18  ;;  %v1327_v58 = vsel %vm1315_vm5, %v1296_v47, %v899_v41  ;;  %v1793_v9 = vld [vmem:[%s4778_s8 + $0x8] sm:$0xff]  ;;  %v1795_v47 = vld [vmem:[%s4778_s8 + $0x18] sm:$0xff] }
  0xe7   : > { %v1120_v53 = vpop.permute.xlu1 %1119 }
  0xe8   : > { %v1056_v2 = vpop.permute.xlu0 %1055 }
  0xe9   : > { %v1358_v35 = vsel %vm1346_vm6, %v1327_v58, %v1056_v2  ;;  %1236 = vrot.lane.b32.xlu1 %v1201_v5, %s4059_s19  ;;  %v1798_v58 = vld [vmem:[%s4778_s8 + $0x30] sm:$0xff] }
  0xea   : > { %1174 = vrot.lane.b32.xlu0 %v4680_v45, %s4053_s28  ;;  %v1389_v20 = vsel %vm1377_vm7, %v1358_v35, %v1120_v53 }
  0xeb   : > { %v1221_v33 = vpop.permute.xlu1 %1220 }
  0xec   : > { %v1159_v30 = vpop.permute.xlu0 %1158 }
  0xed   : > { %v1420_v59 = vsel %vm1408_vm8, %v1389_v20, %v1159_v30  ;;  %865 = vrot.lane.b32.xlu1 %v836_v51, %s4055_s10  ;;  %v1799_v51 = vld [vmem:[%s4778_s8 + $0x38] sm:$0xff] }
  0xee   : > { %800 = vrot.lane.b32.xlu0 %v771_v7, %s4057_s17  ;;  %v1456_v52 = vsel %vm1439_vm9, %v1420_v59, %v1221_v33  ;;  %v1800_v7 = vld [vmem:[%s4778_s8 + $0x40] sm:$0xff]  ;;  %v1801_v33 = vld [vmem:[%s4778_s8 + $0x48] sm:$0xff]  ;;  %v1802_v59 = vld [vmem:[%s4778_s8 + $0x50] sm:$0xff] }
  0xef   : > { %1682 = vmatmul.mubr.bf16.gmra.mxu0 %v1456_v52  ;;  %v850_v15 = vpop.permute.xlu1 %849 }
  0xf0   : > { %v785_v31 = vpop.permute.xlu0 %784  ;;  %3726 = vmatprep.mubr.msk.bf16.mxu0 %vm1253_vm3, %v4541_v19  ;;  %v1792_v19 = vld [vmem:[%s4778_s8] sm:$0xff] }
  0xf1   : > { %v1267_v63 = vsel %vm1253_vm3, %v4323_v27, %v785_v31  ;;  %1073 = vrot.lane.b32.xlu1 %v1044_v4, %s4058_s18 }
  0xf2   : > { %916 = vrot.lane.b32.xlu0 %v4702_v13, %s4054_s7  ;;  %v1298_v29 = vsel %vm1284_vm4, %v1267_v63, %v850_v15  ;;  %v1209_v13 = vsel %vm647_vm2, %v1204_v37, %v1208_v44  ;;  %v1805_v37 = vld [vmem:[%s4778_s8 + $0x68] sm:$0xff]  ;;  %v1806_v44 = vld [vmem:[%s4778_s8 + $0x70] sm:$0xff] }
  0xf3   : > { %v1058_v16 = vpop.permute.xlu1 %1057 }
  0xf4   : > { %v901_v62 = vpop.permute.xlu0 %900 }
  0xf5   : > { %v1329_v27 = vsel %vm1315_vm5, %v1298_v29, %v901_v62  ;;  %1176 = vrot.lane.b32.xlu1 %v4715_v57, %s4053_s28 }
  0xf6   : > { %1137 = vrot.lane.b32.xlu0 %v1108_v22, %s4056_s13  ;;  %v1360_v42 = vsel %vm1346_vm6, %v1329_v27, %v1058_v16  ;;  %v1807_v16 = vld [vmem:[%s4778_s8 + $0x78] sm:$0xff]  ;;  %v1808_v27 = vld [vmem:[%s4778_s8 + $0x80] sm:$0xff] }
  0xf7   : > { %v1161_v24 = vpop.permute.xlu1 %1160 }
  0xf8   : > { %v1122_v61 = vpop.permute.xlu0 %1121 }
  0xf9   : > { %v1391_v36 = vsel %vm1377_vm7, %v1360_v42, %v1122_v61  ;;  %1824 = vperm.xlu1 %3946, %v1792_v19  }
  0xfa   : > { %1238 = vrot.lane.b32.xlu0 %v1209_v13, %s4059_s19  ;;  %v1422_v49 = vsel %vm1408_vm8, %v1391_v36, %v1161_v24  ;;  %v1809_v36 = vld [vmem:[%s4778_s8 + $0x88] sm:$0xff] }
  0xfb   : > { %v787_v56 = vpop.permute.xlu1 %786 }
  0xfc   : > { %v1223_v46 = vpop.permute.xlu0 %1222  ;;  %v1269_v41 = vsel %vm1253_vm3, %v4355_v38, %v787_v56  ;;  %v1811_v56 = vld [vmem:[%s4778_s8 + $0x98] sm:$0xff] }
  0xfd   : > { %v1459_v21 = vsel %vm1439_vm9, %v1422_v49, %v1223_v46  ;;  %1834 = vperm.xlu1 %3946, %v1794_v40   ;;  %v1810_v40 = vld [vmem:[%s4778_s8 + $0x90] sm:$0xff] }
  0xfe   : > { %1829 = vperm.xlu0 %3947, %v1793_v9   ;;  %1690 = vmatmul.mubr.bf16.gmra.mxu0 %v1459_v21  ;;  %v1812_v21 = vld [vmem:[%s4778_s8 + $0xa0] sm:$0xff] }
  0xff   : > { %v903_v17 = vpop.permute.xlu1 %902  ;;  %3727 = vmatprep.mubr.msk.bf16.mxu0 %vm1253_vm3, %v4578_v0 }
 0x100   : > { %v852_v5 = vpop.permute.xlu0 %851 }
 0x101   : > { %v1300_v54 = vsel %vm1284_vm4, %v1269_v41, %v852_v5  ;;  %1839 = vperm.xlu1 %3946, %v1795_v47   ;;  %v1813_v5 = vld [vmem:[%s4778_s8 + $0xa8] sm:$0xff] }
 0x102   : > { %1844 = vperm.xlu0 %3947, %v1796_v48   ;;  %v1331_v38 = vsel %vm1315_vm5, %v1300_v54, %v903_v17  ;;  %v1814_v17 = vld [vmem:[%s4778_s8 + $0xb0] sm:$0xff] }
 0x103   : > { %v1124_v53 = vpop.permute.xlu1 %1123 }
 0x104   : > { %v1060_v2 = vpop.permute.xlu0 %1059 }
 0x105   : > { %v1362_v35 = vsel %vm1346_vm6, %v1331_v38, %v1060_v2  ;;  %1849 = vperm.xlu1 %3946, %v1797_v8   ;;  %v1815_v2 = vld [vmem:[%s4778_s8 + $0xb8] sm:$0xff] }
 0x106   : > { %1854 = vperm.xlu0 %3947, %v1798_v58   ;;  %v1393_v0 = vsel %vm1377_vm7, %v1362_v35, %v1124_v53  ;;  %v1816_v53 = vld [vmem:[%s4778_s8 + $0xc0] sm:$0xff] }
 0x107   : > { %v1225_v18 = vpop.permute.xlu1 %1224 }
 0x108   : > { %v1163_v12 = vpop.permute.xlu0 %1162 }
 0x109   : > { %v1424_v20 = vsel %vm1408_vm8, %v1393_v0, %v1163_v12  ;;  %1859 = vperm.xlu1 %3946, %v1799_v51   ;;  %v1817_v0 = vld [vmem:[%s4778_s8 + $0xc8] sm:$0xff]  ;;  %v1818_v12 = vld [vmem:[%s4778_s8 + $0xd0] sm:$0xff] }
 0x10a   : > { %1864 = vperm.xlu0 %3947, %v1800_v7   ;;  %v1462_v30 = vsel %vm1439_vm9, %v1424_v20, %v1225_v18 }
 0x10b   : > { %1698 = vmatmul.mubr.bf16.gmra.mxu0 %v1462_v30  ;;  %v854_v4 = vpop.permute.xlu1 %853 }
 0x10c   : > { %v789_v52 = vpop.permute.xlu0 %788  ;;  %3728 = vmatprep.mubr.msk.bf16.mxu0 %vm1253_vm3, %v4642_v39 }
 0x10d   : > { %v1271_v3 = vsel %vm1253_vm3, %v4416_v32, %v789_v52  ;;  %1869 = vperm.xlu1 %3946, %v1801_v33   ;;  %v1820_v52 = vld [vmem:[%s4778_s8 + $0xe0] sm:$0xff] }
 0x10e   : > { %1874 = vperm.xlu0 %3947, %v1802_v59   ;;  %v1302_v31 = vsel %vm1284_vm4, %v1271_v3, %v854_v4  ;;  %v1819_v59 = vld [vmem:[%s4778_s8 + $0xd8] sm:$0xff] }
 0x10f   : > { %v1062_v63 = vpop.permute.xlu1 %1061 }
 0x110   : > { %v905_v15 = vpop.permute.xlu0 %904 }
 0x111   : > { %v1333_v22 = vsel %vm1315_vm5, %v1302_v31, %v905_v15  ;;  %1879 = vperm.xlu1 %3946, %v1803_v25  }
 0x112   : > { %1884 = vperm.xlu0 %3947, %v1804_v26   ;;  %v1364_v39 = vsel %vm1346_vm6, %v1333_v22, %v1062_v63  ;;  %v1821_v26 = vld [vmem:[%s4778_s8 + $0xe8] sm:$0xff] }
 0x113   : > { %v1165_v29 = vpop.permute.xlu1 %1164 }
 0x114   : > { %v1126_v32 = vpop.permute.xlu0 %1125 }
 0x115   : > { %v1395_v62 = vsel %vm1377_vm7, %v1364_v39, %v1126_v32  ;;  %1889 = vperm.xlu1 %3946, %v1805_v37  }
 0x116   : > { %1894 = vperm.xlu0 %3947, %v1806_v44   ;;  %v1426_v19 = vsel %vm1408_vm8, %v1395_v62, %v1165_v29 }
 0x117   : > { %v791_v42 = vpop.permute.xlu1 %790 }
 0x118   : > { %v1227_v13 = vpop.permute.xlu0 %1226  ;;  %v1273_v24 = vsel %vm1253_vm3, %v4439_v50, %v791_v42 }
 0x119   : > { %v1465_v61 = vsel %vm1439_vm9, %v1426_v19, %v1227_v13  ;;  %1899 = vperm.xlu1 %3946, %v1807_v16  }
 0x11a   : > { %1904 = vperm.xlu0 %3947, %v1808_v27   ;;  %1706 = vmatmul.mubr.bf16.gmra.mxu0 %v1465_v61 }
 0x11b   : > { %v907_v49 = vpop.permute.xlu1 %906  ;;  %3729 = vmatprep.mubr.msk.bf16.mxu0 %vm1253_vm3, %v4678_v43 }
 0x11c   : > { %v856_v9 = vpop.permute.xlu0 %855 }
 0x11d   : > { %v1304_v46 = vsel %vm1284_vm4, %v1273_v24, %v856_v9  ;;  %1909 = vperm.xlu1 %3946, %v1809_v36  }
 0x11e   : > { %1914 = vperm.xlu0 %3947, %v1810_v40   ;;  %v1335_v50 = vsel %vm1315_vm5, %v1304_v46, %v907_v49 }
 0x11f   : > { %v1128_v47 = vpop.permute.xlu1 %1127 }
 0x120   : > { %v1064_v41 = vpop.permute.xlu0 %1063 }
 0x121   : > { %v1366_v48 = vsel %vm1346_vm6, %v1335_v50, %v1064_v41  ;;  %1919 = vperm.xlu1 %3946, %v1811_v56  }
 0x122   : > { %1924 = vperm.xlu0 %3947, %v1812_v21   ;;  %v1397_v43 = vsel %vm1377_vm7, %v1366_v48, %v1128_v47  ;;  %v1249_v47 = vrot.slane %v4715_v57, 1 }
 0x123   : > { %v1229_v8 = vpop.permute.xlu1 %1228 }
 0x124   : > { %v1167_v54 = vpop.permute.xlu0 %1166 }
 0x125   : > { %v1428_v58 = vsel %vm1408_vm8, %v1397_v43, %v1167_v54  ;;  %1929 = vperm.xlu1 %3946, %v1813_v5  }
 0x126   : > { %1934 = vperm.xlu0 %3947, %v1814_v17   ;;  %v1468_v38 = vsel %vm1439_vm9, %v1428_v58, %v1229_v8 }
 0x127   : > { %1714 = vmatmul.mubr.bf16.gmra.mxu0 %v1468_v38  ;;  %v858_v51 = vpop.permute.xlu1 %857 }
 0x128   : > { %v793_v35 = vpop.permute.xlu0 %792  ;;  %3730 = vmatprep.mubr.msk.bf16.mxu0 %vm1253_vm3, %v4724_v34 }
 0x129   : > { %v1275_v7 = vsel %vm1253_vm3, %v4465_v10, %v793_v35  ;;  %1939 = vperm.xlu1 %3946, %v1815_v2   ;;  %v1245_v10 = vrot.slane %v4631_v23, 1 }
 0x12a   : > { %1944 = vperm.xlu0 %3947, %v1816_v53   ;;  %v1306_v18 = vsel %vm1284_vm4, %v1275_v7, %v858_v51  ;;  %v1251_v7 = vrot.slane %v4755_v11, 1 }
 0x12b   : > { %v1066_v30 = vpop.permute.xlu1 %1065  ;;  %v1246_v22 = vsel %vm805_vm1, %v4710_v60, %v1245_v10  ;;  %v1247_v60 = vrot.slane %v4680_v45, 1 }
 0x12c   : > { %v909_v20 = vpop.permute.xlu0 %908 }
 0x12d   : > { %v1337_v33 = vsel %vm1315_vm5, %v1306_v18, %v909_v20  ;;  %1949 = vperm.xlu1 %3946, %v1817_v0   ;;  %v1248_v61 = vsel %vm805_vm1, %v1245_v10, %v1247_v60  ;;  %v1252_v20 = vsel %vm805_vm1, %v1249_v47, %v1251_v7 }
 0x12e   : > { %1954 = vperm.xlu0 %3947, %v1818_v12   ;;  %v1368_v34 = vsel %vm1346_vm6, %v1337_v33, %v1066_v30 }
 0x12f   : > { %v1169_v3 = vpop.permute.xlu1 %1168 }
 0x130   : > { %v1130_v4 = vpop.permute.xlu0 %1129 }
 0x131   : > { %v1399_v25 = vsel %vm1377_vm7, %v1368_v34, %v1130_v4  ;;  %1959 = vperm.xlu1 %3946, %v1819_v59  }
 0x132   : > { %1964 = vperm.xlu0 %3947, %v1820_v52   ;;  %v1430_v31 = vsel %vm1408_vm8, %v1399_v25, %v1169_v3 }
 0x133   : > { %v795_v63 = vpop.permute.xlu1 %794 }
 0x134   : > { %v1231_v15 = vpop.permute.xlu0 %1230  ;;  %v1277_v44 = vsel %vm1253_vm3, %v4482_v28, %v795_v63 }
 0x135   : > { %v1471_v37 = vsel %vm1439_vm9, %v1430_v31, %v1231_v15  ;;  %1969 = vperm.xlu1 %3946, %v1821_v26  }
 0x136   : > { %1722 = vmatmul.mubr.bf16.gmra.mxu0 %v1471_v37 }
 0x137   : > { %3731 = vmatprep.mubr.msk.bf16.mxu0 %vm1253_vm3, %v1246_v22  ;;  %v911_v39 = vpop.permute.xlu1 %910 }
 0x138   : > { %v860_v23 = vpop.permute.xlu0 %859 }
 0x139   : > { %v1308_v32 = vsel %vm1284_vm4, %v1277_v44, %v860_v23 }
 0x13a   : > { %v1339_v29 = vsel %vm1315_vm5, %v1308_v32, %v911_v39 }
 0x13b   : > { %v1132_v16 = vpop.permute.xlu1 %1131 }
 0x13c   : > { %v1068_v62 = vpop.permute.xlu0 %1067 }
 0x13d   : > { %v1370_v27 = vsel %vm1346_vm6, %v1339_v29, %v1068_v62 }
 0x13e   : > { %v1401_v19 = vsel %vm1377_vm7, %v1370_v27, %v1132_v16 }
 0x13f   : > { %v1233_v28 = vpop.permute.xlu1 %1232 }
 0x140   : > { %v1171_v13 = vpop.permute.xlu0 %1170 }
 0x141   : > { %v1432_v42 = vsel %vm1408_vm8, %v1401_v19, %v1171_v13 }
 0x142   : > { %v1474_v24 = vsel %vm1439_vm9, %v1432_v42, %v1233_v28 }
 0x143   : > { %1730 = vmatmul.mubr.bf16.gmra.mxu0 %v1474_v24  ;;  %v862_v40 = vpop.permute.xlu1 %861 }
 0x144   : > { %v797_v36 = vpop.permute.xlu0 %796  ;;  %3732 = vmatprep.mubr.msk.bf16.mxu0 %vm1253_vm3, %v1248_v61 }
 0x145   : > { %v1279_v9 = vsel %vm1253_vm3, %v4509_v55, %v797_v36  ;;  %v1250_v55 = vsel %vm805_vm1, %v1247_v60, %v1249_v47 }
 0x146   : > { %v1310_v45 = vsel %vm1284_vm4, %v1279_v9, %v862_v40 }
 0x147   : > { %v1070_v46 = vpop.permute.xlu1 %1069 }
 0x148   : > { %v913_v49 = vpop.permute.xlu0 %912 }
 0x149   : > { %v1341_v56 = vsel %vm1315_vm5, %v1310_v45, %v913_v49 }
 0x14a   : > { %v1372_v21 = vsel %vm1346_vm6, %v1341_v56, %v1070_v46 }
 0x14b   : > { %v1173_v41 = vpop.permute.xlu1 %1172 }
 0x14c   : > { %v1134_v50 = vpop.permute.xlu0 %1133 }
 0x14d   : > { %v1403_v48 = vsel %vm1377_vm7, %v1372_v21, %v1134_v50 }
 0x14e   : > { %v1434_v5 = vsel %vm1408_vm8, %v1403_v48, %v1173_v41 }
 0x14f   : > { %v799_v43 = vpop.permute.xlu1 %798 }
 0x150   : > { %v1235_v17 = vpop.permute.xlu0 %1234  ;;  %v1281_v8 = vsel %vm1253_vm3, %v4535_v14, %v799_v43 }
 0x151   : > { %v1477_v54 = vsel %vm1439_vm9, %v1434_v5, %v1235_v17 }
 0x152   : > { %1738 = vmatmul.mubr.bf16.gmra.mxu0 %v1477_v54 }
 0x153   : > { %3733 = vmatprep.mubr.msk.bf16.mxu0 %vm1253_vm3, %v1250_v55  ;;  %v915_v38 = vpop.permute.xlu1 %914 }
 0x154   : > { %v864_v58 = vpop.permute.xlu0 %863 }
 0x155   : > { %v1312_v57 = vsel %vm1284_vm4, %v1281_v8, %v864_v58 }
 0x156   : > { %v1343_v2 = vsel %vm1315_vm5, %v1312_v57, %v915_v38 }
 0x157   : > { %v1136_v35 = vpop.permute.xlu1 %1135 }
 0x158   : > { %v1072_v53 = vpop.permute.xlu0 %1071 }
 0x159   : > { %v1374_v51 = vsel %vm1346_vm6, %v1343_v2, %v1072_v53 }
 0x15a   : > { %v1405_v0 = vsel %vm1377_vm7, %v1374_v51, %v1136_v35 }
 0x15b   : > { %v1237_v18 = vpop.permute.xlu1 %1236 }
 0x15c   : > { %v1175_v12 = vpop.permute.xlu0 %1174 }
 0x15d   : > { %v1436_v14 = vsel %vm1408_vm8, %v1405_v0, %v1175_v12 }
 0x15e   : > { %v1480_v30 = vsel %vm1439_vm9, %v1436_v14, %v1237_v18 }
 0x15f   : > { %1746 = vmatmul.mubr.bf16.gmra.mxu0 %v1480_v30  ;;  %v866_v59 = vpop.permute.xlu1 %865 }
 0x160   : > { %v801_v33 = vpop.permute.xlu0 %800  ;;  %3734 = vmatprep.mubr.msk.bf16.mxu0 %vm1253_vm3, %v1252_v20 }
 0x161   : > { %v1283_v52 = vsel %vm1253_vm3, %v4582_v6, %v801_v33  ;;  %v4908_v6 = vld [vmem:[%s5881_s3] ss:$0 sm:$0xff] }
 0x162   : > { %v1314_v11 = vsel %vm1284_vm4, %v1283_v52, %v866_v59 }
 0x163   : > { %v1074_v4 = vpop.permute.xlu1 %1073 }
 0x164   : > { %v917_v34 = vpop.permute.xlu0 %916 }
 0x165   : > { %v1345_v3 = vsel %vm1315_vm5, %v1314_v11, %v917_v34 }
 0x166   : > { %v1376_v10 = vsel %vm1346_vm6, %v1345_v3, %v1074_v4 }
 0x167   : > { %v1177_v31 = vpop.permute.xlu1 %1176 }
 0x168   : > { %v1138_v25 = vpop.permute.xlu0 %1137 }
 0x169   : > { %v1407_v26 = vsel %vm1377_vm7, %v1376_v10, %v1138_v25 }
 0x16a   : > { %v1438_v15 = vsel %vm1408_vm8, %v1407_v26, %v1177_v31 }
 0x16c   : > { %v1239_v63 = vpop.permute.xlu0 %1238 }
 0x16d   : > { %v1483_v22 = vsel %vm1439_vm9, %v1438_v15, %v1239_v63 }
 0x16e   : > { %1754 = vmatmul.mubr.bf16.gmra.mxu0 %v1483_v22 }
 0x174   : > { %v1643_v37 = vpop.f32.mrf.mxu0  ;;  %v1825_v32 = vpop.permute.xlu1 %1824 }
 0x175   : > { %v1644_v44 = vadd.f32 %v4908_v6, %v1643_v37 }
 0x176   : > { %v1645_v23 = vpop.f32.mrf.mxu0 }
 0x177   : > { %v1762_v39 = vmax.f32 %v1644_v44, 0.0 }
 0x178   : > { %v1646_v29 = vpop.f32.mrf.mxu0  ;;  %v1835_v24 = vpop.permute.xlu1 %1834 }
 0x179   : > { %v1972_v62 = vmul.f32 %v1825_v32, %v1762_v39  ;;  %v1647_v16 = vadd.f32 %v4908_v6, %v1646_v29  ;;  %v1830_v13 = vpop.permute.xlu0 %1829 }
 0x17a   : > { %v1648_v27 = vpop.f32.mrf.mxu0 }
 0x17b   : > { %v3863_v60 = vpack.c.bf16 %v1972_v62, %v1972_v62  ;;  %v1763_v19 = vmax.f32 %v1647_v16, 0.0 }
 0x17c   : > { %v1651_v28 = vpop.f32.mrf.mxu0  ;;  %v1840_v41 = vpop.permute.xlu1 %1839 }
 0x17d   : > { %2128 = vst.msk [vmem:[#allocation3 + $0xc] sm:$0xf] %vm489_vm0, %v3863_v60  ;;  %v1973_v42 = vmul.f32 %v1830_v13, %v1763_v19  ;;  %v1652_v61 = vadd.f32 %v4908_v6, %v1651_v28  ;;  %v1845_v38 = vpop.permute.xlu0 %1844 }
 0x17e   : > { %v1653_v36 = vpop.f32.mrf.mxu0 }
 0x17f   : > { %v3864_v40 = vpack.c.bf16 %v1973_v42, %v1973_v42  ;;  %v1764_v9 = vmax.f32 %v1652_v61, 0.0 }
 0x180   : > { %v1654_v45 = vpop.f32.mrf.mxu0  ;;  %v1850_v33 = vpop.permute.xlu1 %1849 }
 0x181   : > { %2129 = vst.msk [vmem:[#allocation3 + $0x10] sm:$0xf] %vm489_vm0, %v3864_v40  ;;  %v1974_v49 = vmul.f32 %v1835_v24, %v1764_v9  ;;  %v1655_v46 = vadd.f32 %v4908_v6, %v1654_v45  ;;  %v1855_v29 = vpop.permute.xlu0 %1854 }
 0x182   : > { %v1656_v56 = vpop.f32.mrf.mxu0 }
 0x183   : > { %v3865_v21 = vpack.c.bf16 %v1974_v49, %v1974_v49  ;;  %v1765_v50 = vmax.f32 %v1655_v46, 0.0 }
 0x184   : > { %v2159_v55 = vld [vmem:[#allocation3 + $0xc] sm:$0xf]  ;;  %v1860_v40 = vpop.permute.xlu1 %1859 }
 0x185   : > { %2130 = vst.msk [vmem:[#allocation3 + $0x14] sm:$0xf] %vm489_vm0, %v3865_v21  ;;  %v1975_v47 = vmul.f32 %v1840_v41, %v1765_v50 }
 0x186   : > { %v1659_v48 = vpop.f32.mrf.mxu0 }
 0x187   : > { %v3866_v5 = vpack.c.bf16 %v1975_v47, %v1975_v47  ;;  %v1660_v17 = vadd.f32 %v4908_v6, %v1659_v48 }
 0x188   : > { %v1661_v43 = vpop.f32.mrf.mxu0  ;;  %v4918_v54 = vld [vmem:[#allocation3 + $0x10] sm:$0xf] }
 0x189   : > { %2131 = vst.msk [vmem:[#allocation3 + $0x18] sm:$0xf] %vm489_vm0, %v3866_v5  ;;  %v1766_v8 = vmax.f32 %v1660_v17, 0.0  ;;  %v3778_v58 = vcombine.low %v2159_v55, %v4918_v54 }
 0x18a   : > { %v1662_v57 = vpop.f32.mrf.mxu0 }
 0x18b   : > { %v1976_v2 = vmul.f32 %v1845_v38, %v1766_v8  ;;  %v1663_v53 = vadd.f32 %v4908_v6, %v1662_v57  ;;  %v2407_v35 = vrot.slane %v3778_v58, 5  ;;  %v2271_v51 = vshrl.u32 %v3778_v58, 16 }
 0x18c   : > { %v1664_v7 = vpop.f32.mrf.mxu0  ;;  %v2274_v0 = vshll.u32 %v3778_v58, 16  ;;  %v4923_v12 = vld [vmem:[#allocation3 + $0x14] sm:$0xf] }
 0x18d   : > { %v3867_v18 = vpack.c.bf16 %v1976_v2, %v1976_v2  ;;  %v1767_v14 = vmax.f32 %v1663_v53, 0.0  ;;  %2432 = vrot.lane.b32.xlu0 %v2407_v35, %s4055_s10  ;;  %v2273_v20 = vrot.slane %v2271_v51, 4  ;;  %v2184_v26 = vld [vmem:[#allocation3 + $0x14] sm:$0x8] }
 0x18e   : > { %v2276_v59 = vrot.slane %v2274_v0, 5  ;;  %v3992_v0 = vld [vmem:[%s5882_s4 + $0x38] sm:$0xff]  }
 0x18f   : > { %2132 = vst.msk [vmem:[#allocation3 + $0x1c] sm:$0xf] %vm489_vm0, %v3867_v18  ;;  %v1977_v52 = vmul.f32 %v1850_v33, %v1767_v14  ;;  %3320 = vmatpush1.bf16.msra.mxu1 %v3992_v0 }
 0x190   : > { %v2277_v11 = vor.u32 %v2276_v59, %v2273_v20  ;;  %v2162_v34 = vld [vmem:[#allocation3 + $0x18] sm:$0xf]  ;;  %v1865_v59 = vpop.permute.xlu0 %1864  ;;  %3321 = vmatprep.subr.bf16.mxu1 %v4052_v1 }
 0x191   : > { %v3868_v4 = vpack.c.bf16 %v1977_v52, %v1977_v52  ;;  %v3779_v3 = vcombine.low %v4923_v12, %v2162_v34  ;;  %v3791_v37 = vcombine.low %v2184_v26, %v2162_v34 }
 0x192   : > { %2377 = vrot.lane.b32.xlu0 %v2277_v11, %s4057_s17 }
 0x193   : > { %v1667_v10 = vpop.f32.mrf.mxu0  ;;  %2133 = vst.msk [vmem:[#allocation3 + $0x20] sm:$0xf] %vm489_vm0, %v3868_v4  ;;  %v2408_v31 = vrot.slane %v3779_v3, 5  ;;  %v2279_v15 = vshrl.u32 %v3779_v3, 16  ;;  %v2282_v63 = vshll.u32 %v3779_v3, 16 }
 0x194   : > { %v1668_v25 = vadd.f32 %v4908_v6, %v1667_v10 }
 0x195   : > { %v1669_v22 = vpop.f32.mrf.mxu0  ;;  %v2409_v23 = vsel %vm2406_vm10, %v2407_v35, %v2408_v31  ;;  %v2281_v39 = vrot.slane %v2279_v15, 4  ;;  %v2284_v32 = vrot.slane %v2282_v63, 5  ;;  %v3993_v63 = vld [vmem:[%s5882_s4 + $0x30] sm:$0xff]  }
 0x196   : > { %v1768_v44 = vmax.f32 %v1668_v25, 0.0  ;;  %2469 = vrot.lane.b32.xlu0 %v3791_v37, %s4054_s7  ;;  %v2163_v62 = vld [vmem:[#allocation3 + $0x1c] sm:$0xf]  ;;  %2434 = vrot.lane.b32.xlu1 %v2409_v23, %s4055_s10 }
 0x197   : > { %v1670_v16 = vpop.f32.mrf.mxu0  ;;  %v4936_v60 = vcombine.low %v2162_v34, %v2163_v62  ;;  %v2285_v13 = vor.u32 %v2284_v32, %v2281_v39  ;;  %3322 = vmatpush1.bf16.msra.mxu1 %v3993_v63  ;;  %v3999_v63 = vld [vmem:[%s5882_s4 + $0x8] sm:$0xff]  }
 0x198   : > { %v1978_v27 = vmul.f32 %v1855_v29, %v1768_v44  ;;  %v1671_v19 = vadd.f32 %v4908_v6, %v1670_v16  ;;  %v1870_v44 = vpop.permute.xlu1 %1869  ;;  %3323 = vmatprep.subr.bf16.mxu1 %v4052_v1 }
 0x199   : > { %v1672_v28 = vpop.f32.mrf.mxu0  ;;  %v2286_v24 = vsel %vm2269_vm11, %v2277_v11, %v2285_v13  ;;  %v2633_v36 = vrot.slane %v4936_v60, 5  ;;  %v2498_v45 = vshrl.u32 %v4936_v60, 16  ;;  %v2501_v49 = vshll.u32 %v4936_v60, 16 }
 0x19a   : > { %v3869_v42 = vpack.c.bf16 %v1978_v27, %v1978_v27  ;;  %v1769_v61 = vmax.f32 %v1671_v19, 0.0  ;;  %2379 = vrot.lane.b32.xlu1 %v2286_v24, %s4057_s17  ;;  %v2164_v9 = vld [vmem:[#allocation3 + $0x20] sm:$0xf]  ;;  %v3994_v27 = vld [vmem:[%s5882_s4 + $0x28] sm:$0xff]  }
 0x19b   : > { %2658 = vrot.lane.b32.xlu0 %v2633_v36, %s4056_s13  ;;  %v4946_v56 = vcombine.low %v2163_v62, %v2164_v9  ;;  %v2500_v21 = vrot.slane %v2498_v45, 4  ;;  %v2503_v50 = vrot.slane %v2501_v49, 5  ;;  %v2189_v57 = vld [vmem:[#allocation3 + $0x20] sm:$0x8]  ;;  %3324 = vmatpush1.bf16.msra.mxu1 %v3994_v27  ;;  %v1875_v45 = vpop.permute.xlu0 %1874 }
 0x19c   : > { %2134 = vst.msk [vmem:[#allocation3 + $0x24] sm:$0xf] %vm489_vm0, %v3869_v42  ;;  %v1979_v46 = vmul.f32 %v1860_v40, %v1769_v61  ;;  %3325 = vmatprep.subr.bf16.mxu1 %v4052_v1  ;;  %v3995_v40 = vld [vmem:[%s5882_s4 + $0x20] sm:$0xff]  }
 0x19d   : > { %v2410_v47 = vrot.slane %v4946_v56, 5  ;;  %v2288_v48 = vshrl.u32 %v4946_v56, 16  ;;  %v2291_v5 = vshll.u32 %v4946_v56, 16  ;;  %v2504_v17 = vor.u32 %v2503_v50, %v2500_v21 }
 0x19e   : > { %v3870_v41 = vpack.c.bf16 %v1979_v46, %v1979_v46  ;;  %2471 = vrot.lane.b32.xlu1 %v4946_v56, %s4054_s7 }
 0x19f   : > { %2604 = vrot.lane.b32.xlu0 %v2504_v17, %s4058_s18  ;;  %v2290_v43 = vrot.slane %v2288_v48, 4  ;;  %v2293_v55 = vrot.slane %v2291_v5, 5  ;;  %v2411_v8 = vsel %vm2406_vm10, %v2408_v31, %v2410_v47  ;;  %3326 = vmatpush1.bf16.msra.mxu1 %v3995_v40  ;;  %v1885_v40 = vpop.permute.xlu0 %1884 }
 0x1a0   : > { %2135 = vst.msk [vmem:[#allocation3 + $0x28] sm:$0xf] %vm489_vm0, %v3870_v41  ;;  %3327 = vmatprep.subr.bf16.mxu1 %v4052_v1 }
 0x1a1   : > { %v4962_v7 = vor.u32 %v2293_v55, %v2290_v43 }
 0x1a2   : > { %v1675_v38 = vpop.f32.mrf.mxu0  ;;  %2436 = vrot.lane.b32.xlu1 %v2411_v8, %s4055_s10  ;;  %v1880_v8 = vpop.permute.xlu1 %1879 }
 0x1a3   : > { %v2165_v58 = vld [vmem:[#allocation3 + $0x24] sm:$0xf]  ;;  %v1676_v53 = vadd.f32 %v4908_v6, %v1675_v38  ;;  %v2295_v26 = vsel %vm2269_vm11, %v2285_v13, %v4962_v7 }
 0x1a4   : > { %v4959_v2 = vcombine.low %v2164_v9, %v2165_v58  ;;  %v3797_v35 = vcombine.low %v2189_v57, %v2165_v58  ;;  %v1677_v51 = vpop.f32.mrf.mxu0 }
 0x1a5   : > { %v1770_v18 = vmax.f32 %v1676_v53, 0.0 }
 0x1a6   : > { %2695 = vrot.lane.b32.xlu0 %v3797_v35, %s4053_s28  ;;  %v2634_v14 = vrot.slane %v4959_v2, 5  ;;  %v2506_v20 = vshrl.u32 %v4959_v2, 16  ;;  %v2509_v33 = vshll.u32 %v4959_v2, 16  ;;  %v1678_v52 = vpop.f32.mrf.mxu0 }
 0x1a7   : > { %v2166_v11 = vld [vmem:[#allocation3 + $0x28] sm:$0xf]  ;;  %v1980_v34 = vmul.f32 %v1865_v59, %v1770_v18  ;;  %v1679_v4 = vadd.f32 %v4908_v6, %v1678_v52  ;;  %v3998_v59 = vld [vmem:[%s5882_s4 + $0x10] sm:$0xff]  }
 0x1a8   : > { %v2635_v3 = vsel %vm2406_vm10, %v2633_v36, %v2634_v14  ;;  %v2508_v10 = vrot.slane %v2506_v20, 4  ;;  %v1680_v25 = vpop.f32.mrf.mxu0  ;;  %v2511_v31 = vrot.slane %v2509_v33, 5  ;;  %v3781_v15 = vcombine.low %v2165_v58, %v2166_v11 }
 0x1a9   : > { %2660 = vrot.lane.b32.xlu1 %v2635_v3, %s4056_s13  ;;  %v3871_v22 = vpack.c.bf16 %v1980_v34, %v1980_v34  ;;  %v1771_v37 = vmax.f32 %v1679_v4, 0.0 }
 0x1aa   : > { %2381 = vrot.lane.b32.xlu0 %v2295_v26, %s4057_s17  ;;  %v4983_v23 = vor.u32 %v2511_v31, %v2508_v10  ;;  %v2297_v32 = vshrl.u32 %v3781_v15, 16  ;;  %v2300_v29 = vshll.u32 %v3781_v15, 16  ;;  %v4989_v16 = vrot.slane %v3781_v15, 5 }
 0x1ab   : > { %2136 = vst.msk [vmem:[#allocation3 + $0x2c] sm:$0xf] %vm489_vm0, %v3871_v22  ;;  %v1981_v39 = vmul.f32 %v1870_v44, %v1771_v37 }
 0x1ac   : > { %v2513_v62 = vsel %vm2269_vm11, %v2504_v17, %v4983_v23  ;;  %v2299_v42 = vrot.slane %v2297_v32, 4  ;;  %v2302_v61 = vrot.slane %v2300_v29, 5  ;;  %v2413_v36 = vsel %vm2406_vm10, %v2410_v47, %v4989_v16  ;;  %v3997_v47 = vld [vmem:[%s5882_s4 + $0x18] sm:$0xff]  }
 0x1ad   : > { %v3872_v19 = vpack.c.bf16 %v1981_v39, %v1981_v39  ;;  %2606 = vrot.lane.b32.xlu1 %v2513_v62, %s4058_s18  ;;  %3328 = vmatpush1.bf16.msra.mxu1 %v3997_v47  ;;  %v3014_v35 = vshrl.u32 %v4989_v16, 16  ;;  %v3017_v51 = vshll.u32 %v4989_v16, 16  ;;  %v4005_v47 = vld [vmem:[%s5882_s4 + $0x40] sm:$0xff]  }
 0x1ae   : > { %2473 = vrot.lane.b32.xlu0 %v3781_v15, %s4054_s7  ;;  %v2303_v48 = vor.u32 %v2302_v61, %v2299_v42  ;;  %3329 = vmatprep.subr.bf16.mxu1 %v4052_v1  ;;  %v4000_v42 = vld [vmem:[%s5882_s4] sm:$0xff]  }
 0x1af   : > { %v1683_v13 = vpop.f32.mrf.mxu0  ;;  %2137 = vst.msk [vmem:[#allocation3 + $0x30] sm:$0xf] %vm489_vm0, %v3872_v19  ;;  %v3016_v10 = vrot.slane %v3014_v35, 3  ;;  %v3019_v26 = vrot.slane %v3017_v51, 4 }
 0x1b0   : > { %v1684_v28 = vadd.f32 %v4908_v6, %v1683_v13  ;;  %v2304_v0 = vsel %vm2269_vm11, %v4962_v7, %v2303_v48 }
 0x1b1   : > { %v1685_v24 = vpop.f32.mrf.mxu0  ;;  %3330 = vmatpush1.bf16.msra.mxu1 %v3998_v59  ;;  %v3020_v13 = vor.u32 %v3019_v26, %v3016_v10  ;;  %v1895_v10 = vpop.permute.xlu0 %1894 }
 0x1b2   : > { %v1772_v9 = vmax.f32 %v1684_v28, 0.0  ;;  %2438 = vrot.lane.b32.xlu0 %v2413_v36, %s4055_s10  ;;  %v2167_v49 = vld [vmem:[#allocation3 + $0x2c] sm:$0xf]  ;;  %3331 = vmatprep.subr.bf16.mxu1 %v4052_v1 }
 0x1b3   : > { %v1686_v46 = vpop.f32.mrf.mxu0  ;;  %v5007_v21 = vcombine.low %v2166_v11, %v2167_v49 }
 0x1b4   : > { %v1982_v50 = vmul.f32 %v1875_v45, %v1772_v9  ;;  %v1687_v41 = vadd.f32 %v4908_v6, %v1686_v46 }
 0x1b5   : > { %v1688_v56 = vpop.f32.mrf.mxu0  ;;  %2697 = vrot.lane.b32.xlu1 %v5007_v21, %s4053_s28  ;;  %v2636_v43 = vrot.slane %v5007_v21, 5  ;;  %v2515_v55 = vshrl.u32 %v5007_v21, 16  ;;  %v2518_v38 = vshll.u32 %v5007_v21, 16  ;;  %3332 = vmatpush1.bf16.msra.mxu1 %v3999_v63 }
 0x1b6   : > { %v3873_v5 = vpack.c.bf16 %v1982_v50, %v1982_v50  ;;  %v1773_v17 = vmax.f32 %v1687_v41, 0.0  ;;  %2750 = vrot.lane.b32.xlu0 %v2303_v48, %s4059_s19  ;;  %v2168_v58 = vld [vmem:[#allocation3 + $0x30] sm:$0xf]  ;;  %3333 = vmatprep.subr.bf16.mxu1 %v4052_v1 }
 0x1b7   : > { %v5021_v53 = vcombine.low %v2167_v49, %v2168_v58  ;;  %v2637_v18 = vsel %vm2406_vm10, %v2634_v14, %v2636_v43  ;;  %v2517_v20 = vrot.slane %v2515_v55, 4  ;;  %v2520_v33 = vrot.slane %v2518_v38, 5 }
 0x1b8   : > { %2138 = vst.msk [vmem:[#allocation3 + $0x34] sm:$0xf] %vm489_vm0, %v3873_v5  ;;  %v1983_v57 = vmul.f32 %v1880_v8, %v1773_v17  ;;  %v1890_v8 = vpop.permute.xlu1 %1889 }
 0x1b9   : > { %2383 = vrot.lane.b32.xlu1 %v2304_v0, %s4057_s17  ;;  %v2306_v11 = vshrl.u32 %v5021_v53, 16  ;;  %v2309_v7 = vshll.u32 %v5021_v53, 16  ;;  %v2414_v34 = vrot.slane %v5021_v53, 5  ;;  %v2521_v25 = vor.u32 %v2520_v33, %v2517_v20  ;;  %3334 = vmatpush1.bf16.msra.mxu1 %v4000_v42 }
 0x1ba   : > { %v3874_v52 = vpack.c.bf16 %v1983_v57, %v1983_v57  ;;  %2662 = vrot.lane.b32.xlu0 %v2637_v18, %s4056_s13  ;;  %3349 = vmatprep.subr.bf16.mxu1 %v4052_v1 }
 0x1bb   : > { %v2308_v14 = vrot.slane %v2306_v11, 4  ;;  %v2311_v4 = vrot.slane %v2309_v7, 5  ;;  %v2415_v3 = vsel %vm2406_vm10, %v4989_v16, %v2414_v34  ;;  %v2522_v19 = vsel %vm2269_vm11, %v4983_v23, %v2521_v25 }
 0x1bc   : > { %2139 = vst.msk [vmem:[#allocation3 + $0x38] sm:$0xf] %vm489_vm0, %v3874_v52  ;;  %v3022_v31 = vshrl.u32 %v2415_v3, 16  ;;  %v3025_v15 = vshll.u32 %v2415_v3, 16 }
 0x1bd   : > { %2475 = vrot.lane.b32.xlu1 %v5021_v53, %s4054_s7  ;;  %v5050_v22 = vor.u32 %v2311_v4, %v2308_v14  ;;  %3350 = vmatpush2.bf16.msra.mxu1 %v4005_v47 }
 0x1be   : > { %v1691_v37 = vpop.f32.mrf.mxu0  ;;  %v3024_v44 = vrot.slane %v3022_v31, 3  ;;  %v3027_v39 = vrot.slane %v3025_v15, 4 }
 0x1bf   : > { %v2169_v32 = vld [vmem:[#allocation3 + $0x34] sm:$0xf]  ;;  %v1692_v29 = vadd.f32 %v4908_v6, %v1691_v37  ;;  %v2313_v62 = vsel %vm2269_vm11, %v2303_v48, %v5050_v22 }
 0x1c0   : > { %v5055_v16 = vcombine.low %v2168_v58, %v2169_v32  ;;  %v1693_v27 = vpop.f32.mrf.mxu0  ;;  %2385 = vrot.lane.b32.xlu0 %v2313_v62, %s4057_s17  ;;  %v3028_v28 = vor.u32 %v3027_v39, %v3024_v44 }
 0x1c1   : > { %v1774_v61 = vmax.f32 %v1692_v29, 0.0  ;;  %2608 = vrot.lane.b32.xlu1 %v2522_v19, %s4058_s18  ;;  %v1900_v19 = vpop.permute.xlu1 %1899 }
 0x1c2   : > { %v2524_v24 = vshrl.u32 %v5055_v16, 16  ;;  %v2527_v36 = vshll.u32 %v5055_v16, 16  ;;  %v1694_v9 = vpop.f32.mrf.mxu0  ;;  %v3029_v45 = vsel %vm2997_vm12, %v3020_v13, %v3028_v28  ;;  %v2638_v7 = vrot.slane %v5055_v16, 5 }
 0x1c3   : > { %v2170_v49 = vld [vmem:[#allocation3 + $0x38] sm:$0xf]  ;;  %v1984_v23 = vmul.f32 %v1885_v40, %v1774_v61  ;;  %v1695_v46 = vadd.f32 %v4908_v6, %v1694_v9  ;;  %3813 = vmatprep.mubr.msk.bf16.mxu1 %vm1253_vm3, %v3029_v45 }
 0x1c4   : > { %v5070_v50 = vcombine.low %v2169_v32, %v2170_v49  ;;  %v2526_v41 = vrot.slane %v2524_v24, 4  ;;  %v1696_v48 = vpop.f32.mrf.mxu0  ;;  %v2529_v56 = vrot.slane %v2527_v36, 5  ;;  %v2639_v39 = vsel %vm2406_vm10, %v2636_v43, %v2638_v7 }
 0x1c5   : > { %v3875_v5 = vpack.c.bf16 %v1984_v23, %v1984_v23  ;;  %v1775_v17 = vmax.f32 %v1695_v46, 0.0  ;;  %2440 = vrot.lane.b32.xlu1 %v2415_v3, %s4055_s10  ;;  %v1905_v46 = vpop.permute.xlu0 %1904 }
 0x1c6   : > { %2477 = vrot.lane.b32.xlu0 %v5070_v50, %s4054_s7  ;;  %v2416_v55 = vrot.slane %v5070_v50, 5  ;;  %v5080_v58 = vor.u32 %v2529_v56, %v2526_v41  ;;  %v2315_v57 = vshrl.u32 %v5070_v50, 16  ;;  %v2318_v0 = vshll.u32 %v5070_v50, 16 }
 0x1c7   : > { %2140 = vst.msk [vmem:[#allocation3 + $0x3c] sm:$0xf] %vm489_vm0, %v3875_v5  ;;  %v1985_v1 = vmul.f32 %v1890_v8, %v1775_v17 }
 0x1c8   : > { %v2417_v38 = vsel %vm2406_vm10, %v2414_v34, %v2416_v55  ;;  %v2531_v53 = vsel %vm2269_vm11, %v2521_v25, %v5080_v58  ;;  %v2317_v34 = vrot.slane %v2315_v57, 4  ;;  %v2320_v14 = vrot.slane %v2318_v0, 5 }
 0x1c9   : > { %v3039_v35 = vshrl.u32 %v2417_v38, 16  ;;  %v3042_v51 = vshll.u32 %v2417_v38, 16  ;;  %v3876_v18 = vpack.c.bf16 %v1985_v1, %v1985_v1  ;;  %2699 = vrot.lane.b32.xlu1 %v5055_v16, %s4053_s28 }
 0x1ca   : > { %2610 = vrot.lane.b32.xlu0 %v2531_v53, %s4058_s18  ;;  %v2321_v32 = vor.u32 %v2320_v14, %v2317_v34 }
 0x1cb   : > { %v1699_v20 = vpop.f32.mrf.mxu0  ;;  %v3041_v33 = vrot.slane %v3039_v35, 3  ;;  %v3044_v59 = vrot.slane %v3042_v51, 4  ;;  %2141 = vst.msk [vmem:[#allocation3 + $0x40] sm:$0xf] %vm489_vm0, %v3876_v18 }
 0x1cc   : > { %v1700_v52 = vadd.f32 %v4908_v6, %v1699_v20  ;;  %v2322_v43 = vsel %vm2269_vm11, %v5050_v22, %v2321_v32  ;;  %v1915_v20 = vpop.permute.xlu0 %1914 }
 0x1cd   : > { %v1701_v11 = vpop.f32.mrf.mxu0  ;;  %v5096_v4 = vor.u32 %v3044_v59, %v3041_v33  ;;  %2752 = vrot.lane.b32.xlu1 %v2313_v62, %s4059_s19 }
 0x1ce   : > { %v1776_v3 = vmax.f32 %v1700_v52, 0.0  ;;  %2442 = vrot.lane.b32.xlu0 %v2417_v38, %s4055_s10  ;;  %v2171_v25 = vld [vmem:[#allocation3 + $0x3c] sm:$0xf] }
 0x1cf   : > { %v1702_v26 = vpop.f32.mrf.mxu0  ;;  %v5102_v31 = vsel %vm2997_vm12, %v3028_v28, %v5096_v4  ;;  %v5104_v15 = vcombine.low %v2170_v49, %v2171_v25 }
 0x1d0   : > { %v1986_v63 = vmul.f32 %v1895_v10, %v1776_v3  ;;  %v1703_v37 = vadd.f32 %v4908_v6, %v1702_v26 }
 0x1d1   : > { %v1704_v44 = vpop.f32.mrf.mxu0  ;;  %2664 = vrot.lane.b32.xlu1 %v2639_v39, %s4056_s13  ;;  %v2533_v27 = vshrl.u32 %v5104_v15, 16  ;;  %v2536_v28 = vshll.u32 %v5104_v15, 16  ;;  %v2640_v24 = vrot.slane %v5104_v15, 5 }
 0x1d2   : > { %v3877_v29 = vpack.c.bf16 %v1986_v63, %v1986_v63  ;;  %v1777_v62 = vmax.f32 %v1703_v37, 0.0  ;;  %2701 = vrot.lane.b32.xlu0 %v5104_v15, %s4053_s28  ;;  %v2172_v13 = vld [vmem:[#allocation3 + $0x40] sm:$0xf]  ;;  %v1910_v63 = vpop.permute.xlu1 %1909 }
 0x1d3   : > { %v3784_v61 = vcombine.low %v2171_v25, %v2172_v13  ;;  %v2535_v36 = vrot.slane %v2533_v27, 4  ;;  %v2538_v40 = vrot.slane %v2536_v28, 5  ;;  %v2641_v56 = vsel %vm2406_vm10, %v2638_v7, %v2640_v24 }
 0x1d4   : > { %2142 = vst.msk [vmem:[#allocation3 + $0x44] sm:$0xf] %vm489_vm0, %v3877_v29  ;;  %v1987_v42 = vmul.f32 %v1900_v19, %v1777_v62 }
 0x1d5   : > { %2387 = vrot.lane.b32.xlu1 %v2322_v43, %s4057_s17  ;;  %v2324_v45 = vshrl.u32 %v3784_v61, 16  ;;  %v2327_v49 = vshll.u32 %v3784_v61, 16  ;;  %v2418_v23 = vrot.slane %v3784_v61, 5  ;;  %v2539_v47 = vor.u32 %v2538_v40, %v2535_v36 }
 0x1d6   : > { %v3878_v9 = vpack.c.bf16 %v1987_v42, %v1987_v42  ;;  %2754 = vrot.lane.b32.xlu0 %v2322_v43, %s4059_s19 }
 0x1d7   : > { %v2326_v41 = vrot.slane %v2324_v45, 4  ;;  %v2329_v48 = vrot.slane %v2327_v49, 5  ;;  %v2419_v22 = vsel %vm2406_vm10, %v2416_v55, %v2418_v23  ;;  %v2540_v51 = vsel %vm2269_vm11, %v5080_v58, %v2539_v47 }
 0x1d8   : > { %2143 = vst.msk [vmem:[#allocation3 + $0x48] sm:$0xf] %vm489_vm0, %v3878_v9  ;;  %v3056_v5 = vshrl.u32 %v2419_v22, 16  ;;  %v3059_v17 = vshll.u32 %v2419_v22, 16  ;;  %v1920_v9 = vpop.permute.xlu1 %1919 }
 0x1d9   : > { %2479 = vrot.lane.b32.xlu1 %v3784_v61, %s4054_s7  ;;  %v5130_v8 = vor.u32 %v2329_v48, %v2326_v41 }
 0x1da   : > { %2666 = vrot.lane.b32.xlu0 %v2641_v56, %s4056_s13  ;;  %v1707_v1 = vpop.f32.mrf.mxu0  ;;  %v3058_v38 = vrot.slane %v3056_v5, 3  ;;  %v3061_v57 = vrot.slane %v3059_v17, 4 }
 0x1db   : > { %v2173_v53 = vld [vmem:[#allocation3 + $0x44] sm:$0xf]  ;;  %v1708_v50 = vadd.f32 %v4908_v6, %v1707_v1  ;;  %v2331_v0 = vsel %vm2269_vm11, %v2321_v32, %v5130_v8  ;;  %v5156_v32 = vpop.permute.xlu0 %1924 }
 0x1dc   : > { %v5133_v55 = vcombine.low %v2172_v13, %v2173_v53  ;;  %v1709_v35 = vpop.f32.mrf.mxu0  ;;  %v3062_v18 = vor.u32 %v3061_v57, %v3058_v38 }
 0x1dd   : > { %v1778_v33 = vmax.f32 %v1708_v50, 0.0  ;;  %2612 = vrot.lane.b32.xlu1 %v2540_v51, %s4058_s18  ;;  %v5188_v51 = vpop.permute.xlu1 %1929 }
 0x1de   : > { %2389 = vrot.lane.b32.xlu0 %v2331_v0, %s4057_s17  ;;  %v2542_v59 = vshrl.u32 %v5133_v55, 16  ;;  %v2545_v52 = vshll.u32 %v5133_v55, 16  ;;  %v1710_v11 = vpop.f32.mrf.mxu0  ;;  %v5145_v34 = vsel %vm2997_vm12, %v5096_v4, %v3062_v18 }
 0x1df   : > { %v2174_v7 = vld [vmem:[#allocation3 + $0x48] sm:$0xf]  ;;  %v1988_v58 = vmul.f32 %v1905_v46, %v1778_v33  ;;  %v1711_v14 = vadd.f32 %v4908_v6, %v1710_v11 }
 0x1e0   : > { %v5148_v3 = vcombine.low %v2173_v53, %v2174_v7  ;;  %v2544_v10 = vrot.slane %v2542_v59, 4  ;;  %v1712_v25 = vpop.f32.mrf.mxu0  ;;  %v2547_v26 = vrot.slane %v2545_v52, 5 }
 0x1e1   : > { %v3879_v37 = vpack.c.bf16 %v1988_v58, %v1988_v58  ;;  %v1779_v44 = vmax.f32 %v1711_v14, 0.0  ;;  %2444 = vrot.lane.b32.xlu1 %v2419_v22, %s4055_s10  ;;  %v5174_v22 = vpop.permute.xlu0 %1934 }
 0x1e2   : > { %2481 = vrot.lane.b32.xlu0 %v5148_v3, %s4054_s7  ;;  %v2420_v39 = vrot.slane %v5148_v3, 5  ;;  %v5154_v4 = vor.u32 %v2547_v26, %v2544_v10  ;;  %v2333_v27 = vshrl.u32 %v5148_v3, 16  ;;  %v2336_v42 = vshll.u32 %v5148_v3, 16 }
 0x1e3   : > { %2144 = vst.msk [vmem:[#allocation3 + $0x4c] sm:$0xf] %vm489_vm0, %v3879_v37  ;;  %v1989_v29 = vmul.f32 %v1910_v63, %v1779_v44  ;;  %v5208_v44 = vpop.permute.xlu1 %1939 }
 0x1e4   : > { %v2421_v62 = vsel %vm2406_vm10, %v2418_v23, %v2420_v39  ;;  %v2549_v19 = vsel %vm2269_vm11, %v2539_v47, %v5154_v4  ;;  %v2642_v23 = vrot.slane %v5133_v55, 5  ;;  %v2335_v46 = vrot.slane %v2333_v27, 4 }
 0x1e5   : > { %v3073_v13 = vshrl.u32 %v2421_v62, 16  ;;  %v3076_v28 = vshll.u32 %v2421_v62, 16  ;;  %v3880_v61 = vpack.c.bf16 %v1989_v29, %v1989_v29  ;;  %2703 = vrot.lane.b32.xlu1 %v5133_v55, %s4053_s28  ;;  %v2338_v41 = vrot.slane %v2336_v42, 5  ;;  %v5195_v52 = vpop.permute.xlu0 %1944 }
 0x1e6   : > { %2614 = vrot.lane.b32.xlu0 %v2549_v19, %s4058_s18  ;;  %v2643_v50 = vsel %vm2406_vm10, %v2640_v24, %v2642_v23 }
 0x1e7   : > { %v1715_v43 = vpop.f32.mrf.mxu0  ;;  %v3075_v36 = vrot.slane %v3073_v13, 3  ;;  %v3078_v40 = vrot.slane %v3076_v28, 4  ;;  %2145 = vst.msk [vmem:[#allocation3 + $0x50] sm:$0xf] %vm489_vm0, %v3880_v61  ;;  %v2339_v35 = vor.u32 %v2338_v41, %v2335_v46 }
 0x1e8   : > { %v1716_v45 = vadd.f32 %v4908_v6, %v1715_v43 }
 0x1e9   : > { %v1717_v49 = vpop.f32.mrf.mxu0  ;;  %v5172_v48 = vor.u32 %v3078_v40, %v3075_v36  ;;  %2756 = vrot.lane.b32.xlu1 %v2331_v0, %s4059_s19  ;;  %v5217_v42 = vpop.permute.xlu0 %1954 }
 0x1ea   : > { %v1780_v56 = vmax.f32 %v1716_v45, 0.0  ;;  %2446 = vrot.lane.b32.xlu0 %v2421_v62, %s4055_s10  ;;  %v2175_v47 = vld [vmem:[#allocation3 + $0x4c] sm:$0xf] }
 0x1eb   : > { %v1718_v5 = vpop.f32.mrf.mxu0  ;;  %v5180_v17 = vsel %vm2997_vm12, %v3062_v18, %v5172_v48  ;;  %v5182_v1 = vcombine.low %v2174_v7, %v2175_v47  ;;  %v2340_v7 = vsel %vm2269_vm11, %v5130_v8, %v2339_v35 }
 0x1ec   : > { %v1990_v38 = vmul.f32 %v1915_v20, %v1780_v56  ;;  %v1719_v57 = vadd.f32 %v4908_v6, %v1718_v5  ;;  %v5231_v56 = vpop.permute.xlu1 %1949 }
 0x1ed   : > { %v1720_v53 = vpop.f32.mrf.mxu0  ;;  %2668 = vrot.lane.b32.xlu1 %v2643_v50, %s4056_s13  ;;  %v2551_v18 = vshrl.u32 %v5182_v1, 16  ;;  %v2554_v59 = vshll.u32 %v5182_v1, 16  ;;  %v2644_v58 = vrot.slane %v5182_v1, 5 }
 0x1ee   : > { %v3881_v0 = vpack.c.bf16 %v1990_v38, %v1990_v38  ;;  %v1781_v33 = vmax.f32 %v1719_v57, 0.0  ;;  %2705 = vrot.lane.b32.xlu0 %v5182_v1, %s4053_s28  ;;  %v2176_v20 = vld [vmem:[#allocation3 + $0x50] sm:$0xf] }
 0x1ef   : > { %v5198_v11 = vcombine.low %v2175_v47, %v2176_v20  ;;  %v2553_v14 = vrot.slane %v2551_v18, 4  ;;  %v2556_v10 = vrot.slane %v2554_v59, 5  ;;  %v2645_v27 = vsel %vm2406_vm10, %v2642_v23, %v2644_v58 }
 0x1f0   : > { %2146 = vst.msk [vmem:[#allocation3 + $0x54] sm:$0xf] %vm489_vm0, %v3881_v0  ;;  %v1991_v24 = vmul.f32 %v1920_v9, %v1781_v33 }
 0x1f1   : > { %2391 = vrot.lane.b32.xlu1 %v2340_v7, %s4057_s17  ;;  %v2342_v26 = vshrl.u32 %v5198_v11, 16  ;;  %v2345_v63 = vshll.u32 %v5198_v11, 16  ;;  %v2422_v37 = vrot.slane %v5198_v11, 5  ;;  %v2557_v19 = vor.u32 %v2556_v10, %v2553_v14 }
 0x1f2   : > { %v3882_v25 = vpack.c.bf16 %v1991_v24, %v1991_v24  ;;  %2758 = vrot.lane.b32.xlu0 %v2340_v7, %s4059_s19  ;;  %v5255_v7 = vpop.permute.xlu1 %1959 }
 0x1f3   : > { %v2344_v8 = vrot.slane %v2342_v26, 4  ;;  %v2347_v29 = vrot.slane %v2345_v63, 5  ;;  %v2423_v62 = vsel %vm2406_vm10, %v2420_v39, %v2422_v37  ;;  %v2558_v23 = vsel %vm2269_vm11, %v5154_v4, %v2557_v19 }
 0x1f4   : > { %2147 = vst.msk [vmem:[#allocation3 + $0x58] sm:$0xf] %vm489_vm0, %v3882_v25  ;;  %v3090_v13 = vshrl.u32 %v2423_v62, 16  ;;  %v3093_v28 = vshll.u32 %v2423_v62, 16 }
 0x1f5   : > { %2483 = vrot.lane.b32.xlu1 %v5198_v11, %s4054_s7  ;;  %v5222_v43 = vor.u32 %v2347_v29, %v2344_v8 }
 0x1f6   : > { %v1723_v61 = vpop.f32.mrf.mxu0  ;;  %2670 = vrot.lane.b32.xlu0 %v2645_v27, %s4056_s13  ;;  %v3092_v39 = vrot.slane %v3090_v13, 3  ;;  %v3095_v36 = vrot.slane %v3093_v28, 4 }
 0x1f7   : > { %v1724_v3 = vadd.f32 %v4908_v6, %v1723_v61  ;;  %v2177_v40 = vld [vmem:[#allocation3 + $0x54] sm:$0xf]  ;;  %v2349_v46 = vsel %vm2269_vm11, %v2339_v35, %v5222_v43  ;;  %v5243_v35 = vpop.permute.xlu0 %1964 }
 0x1f8   : > { %v1725_v9 = vpop.f32.mrf.mxu0  ;;  %v5225_v45 = vcombine.low %v2176_v20, %v2177_v40  ;;  %v3096_v41 = vor.u32 %v3095_v36, %v3092_v39 }
 0x1f9   : > { %v1782_v49 = vmax.f32 %v1724_v3, 0.0  ;;  %2616 = vrot.lane.b32.xlu1 %v2558_v23, %s4058_s18 }
 0x1fa   : > { %5891 = vst [vmem:[#allocation4_spill] sm:$0xff] %v5225_v45  ;;  %v1726_v47 = vpop.f32.mrf.mxu0  ;;  %2393 = vrot.lane.b32.xlu0 %v2349_v46, %s4057_s17  ;;  %v2560_v5 = vshrl.u32 %v5225_v45, 16  ;;  %v2563_v38 = vshll.u32 %v5225_v45, 16  ;;  %v5241_v50 = vsel %vm2997_vm12, %v5172_v48, %v3096_v41  ;;  %v2646_v39 = vrot.slane %v5225_v45, 5 }
 0x1fb   : > { %v1992_v57 = vmul.f32 %v5156_v32, %v1782_v49  ;;  %v1727_v53 = vadd.f32 %v4908_v6, %v1726_v47  ;;  %v2178_v4 = vld [vmem:[#allocation3 + $0x58] sm:$0xf] }
 0x1fc   : > { %v1728_v0 = vpop.f32.mrf.mxu0  ;;  %v5245_v33 = vcombine.low %v2177_v40, %v2178_v4  ;;  %v2562_v18 = vrot.slane %v2560_v5, 4  ;;  %v2565_v20 = vrot.slane %v2563_v38, 5  ;;  %v5276_v40 = vpop.permute.xlu1 %1969 }
 0x1fd   : > { %v3883_v59 = vpack.c.bf16 %v1992_v57, %v1992_v57  ;;  %v1783_v24 = vmax.f32 %v1727_v53, 0.0  ;;  %2448 = vrot.lane.b32.xlu1 %v2423_v62, %s4055_s10 }
 0x1fe   : > { %2485 = vrot.lane.b32.xlu0 %v5245_v33, %s4054_s7  ;;  %v5250_v32 = vor.u32 %v2565_v20, %v2562_v18  ;;  %v2424_v11 = vrot.slane %v5245_v33, 5  ;;  %v2351_v26 = vshrl.u32 %v5245_v33, 16  ;;  %v2354_v63 = vshll.u32 %v5245_v33, 16 }
 0x1ff   : > { %2148 = vst.msk [vmem:[#allocation3 + $0x5c] sm:$0xf] %vm489_vm0, %v3883_v59  ;;  %v1993_v48 = vmul.f32 %v5188_v51, %v1783_v24  ;;  %v5257_v14 = vpop.permute.xlu0 %2432 }
 0x200   : > { %v2567_v10 = vsel %vm2269_vm11, %v2557_v19, %v5250_v32  ;;  %v2425_v25 = vsel %vm2406_vm10, %v2422_v37, %v2424_v11  ;;  %v2353_v37 = vrot.slane %v2351_v26, 4  ;;  %v2356_v28 = vrot.slane %v2354_v63, 5 }
 0x201   : > { %v3884_v8 = vpack.c.bf16 %v1993_v48, %v1993_v48  ;;  %v3107_v29 = vshrl.u32 %v2425_v25, 16  ;;  %v3110_v62 = vshll.u32 %v2425_v25, 16  ;;  %2707 = vrot.lane.b32.xlu1 %v5225_v45, %s4053_s28 }
 0x202   : > { %2618 = vrot.lane.b32.xlu0 %v2567_v10, %s4058_s18  ;;  %v2357_v53 = vor.u32 %v2356_v28, %v2353_v37 }
 0x203   : > { %2149 = vst.msk [vmem:[#allocation3 + $0x60] sm:$0xf] %vm489_vm0, %v3884_v8  ;;  %v1731_v51 = vpop.f32.mrf.mxu0  ;;  %v3109_v27 = vrot.slane %v3107_v29, 3  ;;  %v3112_v19 = vrot.slane %v3110_v62, 4 }
 0x204   : > { %v1732_v13 = vadd.f32 %v4908_v6, %v1731_v51  ;;  %v5271_v61 = vpop.permute.xlu0 %2377  ;;  %v2358_v48 = vsel %vm2269_vm11, %v5222_v43, %v2357_v53 }
 0x205   : > { %v1733_v3 = vpop.f32.mrf.mxu0  ;;  %v5274_v36 = vor.u32 %v3112_v19, %v3109_v27  ;;  %2760 = vrot.lane.b32.xlu1 %v2349_v46, %s4059_s19  ;;  %v2647_v46 = vsel %vm2406_vm10, %v2644_v58, %v2646_v39 }
 0x206   : > { %v2179_v9 = vld [vmem:[#allocation3 + $0x5c] sm:$0xf]  ;;  %v1784_v49 = vmax.f32 %v1732_v13, 0.0  ;;  %2450 = vrot.lane.b32.xlu0 %v2425_v25, %s4055_s10 }
 0x207   : > { %v5280_v23 = vcombine.low %v2178_v4, %v2179_v9  ;;  %v1734_v47 = vpop.f32.mrf.mxu0  ;;  %v5284_v5 = vsel %vm2997_vm12, %v3096_v41, %v5274_v36 }
 0x208   : > { %v1994_v38 = vmul.f32 %v5174_v22, %v1784_v49  ;;  %v1735_v57 = vadd.f32 %v4908_v6, %v1734_v47  ;;  %v5288_v0 = vpop.permute.xlu0 %2469  ;;  %v5295_v41 = vpop.permute.xlu1 %2434 }
 0x209   : > { %5892 = vst [vmem:[#allocation5_spill] sm:$0xff] %v5280_v23  ;;  %v1736_v18 = vpop.f32.mrf.mxu0  ;;  %v2569_v4 = vshrl.u32 %v5280_v23, 16  ;;  %v2572_v20 = vshll.u32 %v5280_v23, 16  ;;  %2672 = vrot.lane.b32.xlu1 %v2647_v46, %s4056_s13  ;;  %v2648_v10 = vrot.slane %v5280_v23, 5 }
 0x20a   : > { %v3885_v59 = vpack.c.bf16 %v1994_v38, %v1994_v38  ;;  %v1785_v24 = vmax.f32 %v1735_v57, 0.0  ;;  %2709 = vrot.lane.b32.xlu0 %v5280_v23, %s4053_s28  ;;  %v2180_v6 = vld [vmem:[#allocation3 + $0x60] sm:$0xf] }
 0x20b   : > { %v5300_v22 = vcombine.low %v2179_v9, %v2180_v6  ;;  %v2571_v25 = vrot.slane %v2569_v4, 4  ;;  %v2574_v26 = vrot.slane %v2572_v20, 5  ;;  %v2649_v19 = vsel %vm2406_vm10, %v2646_v39, %v2648_v10  ;;  %v5333_v39 = vld [vmem:[%s5881_s3] ss:$0 sm:$0xff] }
 0x20c   : > { %2150 = vst.msk [vmem:[#allocation3 + $0x64] sm:$0xf] %vm489_vm0, %v3885_v59  ;;  %v1995_v58 = vmul.f32 %v5208_v44, %v1785_v24  ;;  %v5310_v51 = vpop.permute.xlu1 %2379 }
 0x20d   : > { %v2360_v63 = vshrl.u32 %v5300_v22, 16  ;;  %v2363_v8 = vshll.u32 %v5300_v22, 16  ;;  %v2426_v29 = vrot.slane %v5300_v22, 5  ;;  %2395 = vrot.lane.b32.xlu1 %v2358_v48, %s4057_s17  ;;  %v5313_v27 = vpop.permute.xlu0 %2658  ;;  %v2575_v37 = vor.u32 %v2574_v26, %v2571_v25 }
 0x20e   : > { %v3886_v62 = vpack.c.bf16 %v1995_v58, %v1995_v58  ;;  %2762 = vrot.lane.b32.xlu0 %v2358_v48, %s4059_s19 }
 0x20f   : > { %v2362_v44 = vrot.slane %v2360_v63, 4  ;;  %v2365_v43 = vrot.slane %v2363_v8, 5  ;;  %v2427_v13 = vsel %vm2406_vm10, %v2424_v11, %v2426_v29  ;;  %v2576_v59 = vsel %vm2269_vm11, %v5250_v32, %v2575_v37 }
 0x210   : > { %2151 = vst.msk [vmem:[#allocation3 + $0x68] sm:$0xf] %vm489_vm0, %v3886_v62  ;;  %v3124_v3 = vshrl.u32 %v2427_v13, 16  ;;  %v3127_v9 = vshll.u32 %v2427_v13, 16  ;;  %v5328_v47 = vpop.permute.xlu1 %2471 }
 0x211   : > { %v5323_v28 = vor.u32 %v2365_v43, %v2362_v44  ;;  %2487 = vrot.lane.b32.xlu1 %v5300_v22, %s4054_s7  ;;  %v5336_v57 = vpop.permute.xlu0 %2604 }
 0x212   : > { %v1739_v49 = vpop.f32.mrf.mxu0  ;;  %2674 = vrot.lane.b32.xlu0 %v2649_v19, %s4056_s13  ;;  %v3126_v11 = vrot.slane %v3124_v3, 3  ;;  %v3129_v46 = vrot.slane %v3127_v9, 4 }
 0x213   : > { %v1740_v33 = vadd.f32 %v5333_v39, %v1739_v49  ;;  %v2181_v38 = vld [vmem:[#allocation3 + $0x64] sm:$0xf]  ;;  %v2367_v24 = vsel %vm2269_vm11, %v2357_v53, %v5323_v28 }
 0x214   : > { %v1741_v18 = vpop.f32.mrf.mxu0  ;;  %v5338_v4 = vcombine.low %v2180_v6, %v2181_v38  ;;  %v3130_v25 = vor.u32 %v3129_v46, %v3126_v11  ;;  %v5359_v9 = vpop.permute.xlu1 %2436 }
 0x215   : > { %v1786_v20 = vmax.f32 %v1740_v33, 0.0  ;;  %2620 = vrot.lane.b32.xlu1 %v2576_v59, %s4058_s18 }
 0x216   : > { %5893 = vst [vmem:[#allocation6_spill] sm:$0xff] %v5338_v4  ;;  %v1742_v22 = vpop.f32.mrf.mxu0  ;;  %2397 = vrot.lane.b32.xlu0 %v2367_v24, %s4057_s17  ;;  %v2578_v58 = vshrl.u32 %v5338_v4, 16  ;;  %v2581_v48 = vshll.u32 %v5338_v4, 16  ;;  %v5357_v3 = vsel %vm2997_vm12, %v5274_v36, %v3130_v25 }
 0x217   : > { %v1996_v6 = vmul.f32 %v5195_v52, %v1786_v20  ;;  %v1743_v26 = vadd.f32 %v5333_v39, %v1742_v22  ;;  %v5350_v63 = vld [vmem:[#allocation3 + $0x68] sm:$0xf] }
 0x218   : > { %5894 = vst [vmem:[#allocation7_spill] sm:$0xff] %v5350_v63  ;;  %v1744_v32 = vpop.f32.mrf.mxu0  ;;  %v5352_v8 = vpop.permute.xlu0 %2695  ;;  %v3789_v53 = vcombine.low %v2181_v38, %v5350_v63  ;;  %v2580_v62 = vrot.slane %v2578_v58, 4  ;;  %v2583_v44 = vrot.slane %v2581_v48, 5 }
 0x219   : > { %v3887_v43 = vpack.c.bf16 %v1996_v6, %v1996_v6  ;;  %v1787_v19 = vmax.f32 %v1743_v26, 0.0  ;;  %2452 = vrot.lane.b32.xlu1 %v2427_v13, %s4055_s10  ;;  %v2650_v26 = vrot.slane %v5338_v4, 5 }
 0x21a   : > { %2489 = vrot.lane.b32.xlu0 %v3789_v53, %s4054_s7  ;;  %v5363_v52 = vor.u32 %v2583_v44, %v2580_v62  ;;  %v5365_v49 = vrot.slane %v3789_v53, 5  ;;  %v2369_v18 = vshrl.u32 %v3789_v53, 16  ;;  %v2372_v59 = vshll.u32 %v3789_v53, 16 }
 0x21b   : > { %2152 = vst.msk [vmem:[#allocation3 + $0x6c] sm:$0xf] %vm489_vm0, %v3887_v43  ;;  %v1997_v33 = vmul.f32 %v5231_v56, %v1787_v19  ;;  %v5375_v22 = vpop.permute.xlu1 %2660 }
 0x21c   : > { %v5369_v11 = vpop.permute.xlu0 %2381  ;;  %v2585_v36 = vsel %vm2269_vm11, %v2575_v37, %v5363_v52  ;;  %v2429_v38 = vsel %vm2406_vm10, %v2426_v29, %v5365_v49  ;;  %v2371_v32 = vrot.slane %v2369_v18, 4  ;;  %v2374_v53 = vrot.slane %v2372_v59, 5 }
 0x21d   : > { %v3888_v13 = vpack.c.bf16 %v1997_v33, %v1997_v33  ;;  %v3141_v46 = vshrl.u32 %v2429_v38, 16  ;;  %v3144_v20 = vshll.u32 %v2429_v38, 16  ;;  %2711 = vrot.lane.b32.xlu1 %v5338_v4, %s4053_s28 }
 0x21e   : > { %2622 = vrot.lane.b32.xlu0 %v2585_v36, %s4058_s18  ;;  %v5405_v59 = vor.u32 %v2374_v53, %v2371_v32  ;;  %v2158_v53 = vld [vmem:[#allocation3 + $0x8] sm:$0x8] }
 0x21f   : > { %2153 = vst.msk [vmem:[#allocation3 + $0x70] sm:$0xf] %vm489_vm0, %v3888_v13  ;;  %v1747_v56 = vpop.f32.mrf.mxu0  ;;  %v3143_v58 = vrot.slane %v3141_v46, 3  ;;  %v3146_v37 = vrot.slane %v3144_v20, 4  ;;  %v5397_v18 = vpop.permute.xlu1 %2606 }
 0x220   : > { %v1748_v48 = vadd.f32 %v5333_v39, %v1747_v56  ;;  %v5382_v29 = vpop.permute.xlu0 %2473 }
 0x221   : > { %v1749_v6 = vpop.f32.mrf.mxu0  ;;  %v5385_v62 = vor.u32 %v3146_v37, %v3143_v58  ;;  %2764 = vrot.lane.b32.xlu1 %v2367_v24, %s4059_s19 }
 0x222   : > { %v1788_v44 = vmax.f32 %v1748_v48, 0.0  ;;  %2454 = vrot.lane.b32.xlu0 %v2429_v38, %s4055_s10  ;;  %v2185_v43 = vld [vmem:[#allocation3 + $0x6c] sm:$0xf]  ;;  %v2651_v38 = vsel %vm2406_vm10, %v2648_v10, %v2650_v26 }
 0x223   : > { %v1750_v19 = vpop.f32.mrf.mxu0  ;;  %v5390_v33 = vcombine.low %v5350_v63, %v2185_v43  ;;  %v5394_v36 = vsel %vm2997_vm12, %v3130_v25, %v5385_v62 }
 0x224   : > { %5895 = vst [vmem:[#allocation8_spill] sm:$0xff] %v5394_v36  ;;  %v1998_v13 = vmul.f32 %v5217_v42, %v1788_v44  ;;  %v1751_v46 = vadd.f32 %v5333_v39, %v1750_v19  ;;  %v5400_v20 = vpop.permute.xlu0 %2438 }
 0x225   : > { %v1752_v24 = vpop.f32.mrf.mxu0  ;;  %v2587_v56 = vshrl.u32 %v5390_v33, 16  ;;  %v2590_v25 = vshll.u32 %v5390_v33, 16  ;;  %2676 = vrot.lane.b32.xlu1 %v2651_v38, %s4056_s13 }
 0x226   : > { %v3889_v58 = vpack.c.bf16 %v1998_v13, %v1998_v13  ;;  %v1789_v37 = vmax.f32 %v1751_v46, 0.0  ;;  %2713 = vrot.lane.b32.xlu0 %v5390_v33, %s4053_s28  ;;  %v2186_v42 = vld [vmem:[#allocation3 + $0x70] sm:$0xf]  ;;  %v2376_v13 = vsel %vm2269_vm11, %v5323_v28, %v5405_v59  ;;  %v5885_v24 = vrot.slane %v5390_v33, 5  ;;  %v4011_v28 = vld [vmem:[#allocation3 + $0xc] sm:$0xf] }
 0x227   : > { %v2589_v48 = vrot.slane %v2587_v56, 4  ;;  %v2592_v6 = vrot.slane %v2590_v25, 5  ;;  %v5412_v44 = vcombine.low %v2185_v43, %v2186_v42  ;;  %v5416_v32 = vpop.permute.xlu1 %2697 }
 0x228   : > { %2154 = vst.msk [vmem:[#allocation3 + $0x74] sm:$0xf] %vm489_vm0, %v3889_v58  ;;  %v1999_v10 = vmul.f32 %v5255_v7, %v1789_v37  ;;  %v5418_v19 = vpop.permute.xlu0 %2750  ;;  %v3765_v58 = vcombine.low %v2158_v53, %v4011_v28 }
 0x229   : > { %v5423_v46 = vor.u32 %v2592_v6, %v2589_v48  ;;  %v2724_v43 = vshrl.u32 %v5412_v44, 16  ;;  %2399 = vrot.lane.b32.xlu1 %v2376_v13, %s4057_s17  ;;  %v2727_v7 = vshll.u32 %v5412_v44, 16  ;;  %v5886_v25 = vrot.slane %v5412_v44, 5 }
 0x22a   : > { %v3890_v38 = vpack.c.bf16 %v1999_v10, %v1999_v10  ;;  %2766 = vrot.lane.b32.xlu0 %v2376_v13, %s4059_s19  ;;  %v2653_v48 = vsel %vm2406_vm10, %v2650_v26, %v5885_v24 }
 0x22b   : > { %v2594_v56 = vsel %vm2269_vm11, %v5363_v52, %v5423_v46  ;;  %v5435_v37 = vpop.permute.xlu1 %2383  ;;  %v2726_v6 = vrot.slane %v2724_v43, 4  ;;  %v2729_v10 = vrot.slane %v2727_v7, 5  ;;  %v2780_v13 = vsel %vm2406_vm10, %v5365_v49, %v5886_v25 }
 0x22c   : > { %2155 = vst.msk [vmem:[#allocation3 + $0x78] sm:$0xf] %vm489_vm0, %v3890_v38  ;;  %v3158_v53 = vshrl.u32 %v2780_v13, 16  ;;  %v2789_v38 = vsel %vm1253_vm3, %v3765_v58, %v5271_v61  ;;  %v5448_v28 = vpop.permute.xlu0 %2662  ;;  %v3161_v7 = vshll.u32 %v2780_v13, 16 }
 0x22d   : > { %2624 = vrot.lane.b32.xlu1 %v2594_v56, %s4058_s18  ;;  %v2817_v61 = vsel %vm1284_vm4, %v2789_v38, %v5257_v14 }
 0x22e   : > { %v1755_v52 = vpop.f32.mrf.mxu0  ;;  %2678 = vrot.lane.b32.xlu0 %v2653_v48, %s4056_s13  ;;  %v3160_v56 = vrot.slane %v3158_v53, 3  ;;  %v5458_v48 = vor.u32 %v2729_v10, %v2726_v6  ;;  %v3163_v4 = vrot.slane %v3161_v7, 4 }
 0x22f   : > { %v1756_v26 = vadd.f32 %v5333_v39, %v1755_v52  ;;  %v5451_v43 = vld [vmem:[#allocation3 + $0x74] sm:$0xf]  ;;  %v5453_v24 = vpop.permute.xlu1 %2475 }
 0x230   : > { %v1757_v30 = vpop.f32.mrf.mxu0  ;;  %v5456_v25 = vcombine.low %v2186_v42, %v5451_v43  ;;  %v5474_v14 = vor.u32 %v3163_v4, %v3160_v56 }
 0x231   : > { %v1790_v63 = vmax.f32 %v1756_v26, 0.0  ;;  %v2843_v30 = vsel %vm1315_vm5, %v2817_v61, %v5288_v0 }
 0x232   : > { %v1758_v58 = vpop.f32.mrf.mxu0  ;;  %2715 = vrot.lane.b32.xlu1 %v5456_v25, %s4053_s28  ;;  %v2596_v13 = vshrl.u32 %v5456_v25, 16  ;;  %v2599_v52 = vshll.u32 %v5456_v25, 16  ;;  %v5470_v10 = vpop.permute.xlu0 %2385  ;;  %v2869_v38 = vsel %vm1346_vm6, %v2843_v30, %v5336_v57  ;;  %v5493_v57 = vsel %vm2997_vm12, %v5385_v62, %v5474_v14 }
 0x233   : > { %v2000_v42 = vmul.f32 %v5243_v35, %v1790_v63  ;;  %v1759_v6 = vadd.f32 %v5333_v39, %v1758_v58  ;;  %v5472_v53 = vld [vmem:[#allocation3 + $0x78] sm:$0xf]  ;;  %v5478_v26 = vpop.permute.xlu1 %2608  ;;  %v2731_v35 = vsel %vm2269_vm11, %v5405_v59, %v5458_v48  ;;  %v5896_v63 = vcombine.low %v4918_v54, %v4923_v12  ;;  %v4004_v54 = vld [vmem:[#allocation3 + $0x6c] ss:$0 sps:$4 sm:$0x11]  }
 0x234   : > { %v1760_v7 = vpop.f32.mrf.mxu0  ;;  %v2598_v23 = vrot.slane %v2596_v13, 4  ;;  %v2601_v45 = vrot.slane %v2599_v52, 5  ;;  %v5485_v39 = vcombine.low %v5451_v43, %v5472_v53 }
 0x235   : > { %v3891_v36 = vpack.c.bf16 %v2000_v42, %v2000_v42  ;;  %v1791_v0 = vmax.f32 %v1759_v6, 0.0  ;;  %v2792_v56 = vsel %vm1253_vm3, %v5896_v63, %v5310_v51  ;;  %v2794_v6 = vsel %vm1253_vm3, %v4936_v60, %v5369_v11 }
 0x236   : > { %2768 = vrot.lane.b32.xlu1 %v2731_v35, %s4059_s19  ;;  %v5488_v4 = vor.u32 %v2601_v45, %v2598_v23  ;;  %v2781_v58 = vrot.slane %v5485_v39, 5  ;;  %v2895_v45 = vsel %vm1377_vm7, %v2869_v38, %v5313_v27  ;;  %v2733_v12 = vshrl.u32 %v5485_v39, 16 }
 0x237   : > { %2156 = vst.msk [vmem:[#allocation3 + $0x7c] sm:$0xf] %vm489_vm0, %v3891_v36  ;;  %v2001_v61 = vmul.f32 %v5276_v40, %v1791_v0  ;;  %v5505_v23 = vpop.permute.xlu1 %2440  ;;  %v2736_v51 = vshll.u32 %v5485_v39, 16  ;;  %v2921_v40 = vsel %vm1408_vm8, %v2895_v45, %v5352_v8  ;;  %v2654_v27 = vrot.slane %v5456_v25, 5 }
 0x238   : > { %v5507_v13 = vpop.permute.xlu0 %2477  ;;  %v2603_v62 = vsel %vm2269_vm11, %v5423_v46, %v5488_v4  ;;  %v2819_v52 = vsel %vm1284_vm4, %v2792_v56, %v5295_v41  ;;  %v2947_v30 = vsel %vm1439_vm9, %v2921_v40, %v5418_v19  ;;  %v5897_v46 = vrot.slane %v5412_v44, 5 }
 0x239   : > { %v3892_v36 = vpack.c.bf16 %v2001_v61, %v2001_v61  ;;  %2626 = vrot.lane.b32.xlu0 %v2603_v62, %s4058_s18  ;;  %v2845_v42 = vsel %vm1315_vm5, %v2819_v52, %v5328_v47  ;;  %v2735_v35 = vrot.slane %v2733_v12, 4  ;;  %v2738_v63 = vrot.slane %v2736_v51, 5  ;;  %v4009_v51 = vld [vmem:[#allocation3 + $0x84] ss:$0 sps:$4 sm:$0x11]  }
 0x23a   : > { %2491 = vrot.lane.b32.xlu1 %v5412_v44, %s4054_s7  ;;  %v2782_v8 = vsel %vm2406_vm10, %v5897_v46, %v2781_v58  ;;  %v2871_v38 = vsel %vm1346_vm6, %v2845_v42, %v5397_v18  ;;  %v2430_v44 = vrot.slane %v4004_v54, 5  ;;  %v2998_v56 = vshrl.u32 %v2947_v30, 16 }
 0x23b   : > { %2157 = vst.msk [vmem:[#allocation3 + $0x80] sm:$0xf] %vm489_vm0, %v3892_v36  ;;  %v3175_v41 = vshrl.u32 %v2782_v8, 16  ;;  %v3178_v19 = vshll.u32 %v2782_v8, 16  ;;  %v2700_v7 = vpop.permute.xlu1 %2699  ;;  %v3001_v61 = vshll.u32 %v2947_v30, 16  ;;  %v5898_v47 = vrot.slane %v5390_v33, 5 }
 0x23c   : > { %v5537_v0 = vpop.permute.xlu0 %2610  ;;  %v2821_v18 = vsel %vm1284_vm4, %v2794_v6, %v5359_v9  ;;  %v2897_v54 = vsel %vm1377_vm7, %v2871_v38, %v5375_v22  ;;  %v2739_v30 = vor.u32 %v2738_v63, %v2735_v35  ;;  %v3000_v8 = vrot.slane %v2998_v56, 3 }
 0x23d   : > { %v2655_v60 = vsel %vm2406_vm10, %v5898_v47, %v2654_v27  ;;  %v3177_v11 = vrot.slane %v3175_v41, 3  ;;  %v3180_v62 = vrot.slane %v3178_v19, 4  ;;  %v2847_v40 = vsel %vm1315_vm5, %v2821_v18, %v5382_v29 }
 0x23e   : > { %2680 = vrot.lane.b32.xlu1 %v2655_v60, %s4056_s13  ;;  %v2191_v45 = vld [vmem:[#allocation3 + $0x7c] sm:$0xf]  ;;  %v2923_v33 = vsel %vm1408_vm8, %v2897_v54, %v5416_v32  ;;  %v3003_v9 = vrot.slane %v3001_v61, 4  ;;  %v2431_v22 = vsel %vm2406_vm10, %v5365_v49, %v2430_v44  ;;  %v2873_v29 = vsel %vm1346_vm6, %v2847_v40, %v5478_v26  ;;  %v4007_v40 = vld [vmem:[#allocation3 + $0x78] ss:$0 sps:$4 sm:$0x11]  }
 0x23f   : > { %v3798_v12 = vcombine.low %v5472_v53, %v2191_v45  ;;  %v2753_v36 = vpop.permute.xlu1 %2752  ;;  %v5556_v46 = vor.u32 %v3180_v62, %v3177_v11  ;;  %v2785_v38 = vrot.slane %v4009_v51, 5  ;;  %v2740_v26 = vsel %vm2269_vm11, %v5458_v48, %v2739_v30 }
 0x240   : > { %v5554_v52 = vpop.permute.xlu0 %2442  ;;  %v2949_v42 = vsel %vm1439_vm9, %v2923_v33, %v2753_v36  ;;  %v2899_v56 = vsel %vm1377_vm7, %v2873_v29, %v5448_v28  ;;  %v3004_v60 = vor.u32 %v3003_v9, %v3000_v8 }
 0x241   : > { %2717 = vrot.lane.b32.xlu0 %v3798_v12, %s4053_s28  ;;  %v3005_v53 = vshrl.u32 %v2949_v42, 16  ;;  %v3008_v32 = vshll.u32 %v2949_v42, 16  ;;  %v5570_v41 = vsel %vm2997_vm12, %v5474_v14, %v5556_v46  ;;  %v2925_v11 = vsel %vm1408_vm8, %v2899_v56, %v2700_v7 }
 0x242   : > { %v5564_v6 = vld [vmem:[#allocation3 + $0x80] sm:$0xf]  ;;  %2456 = vrot.lane.b32.xlu1 %v2431_v22, %s4055_s10  ;;  %v3793_v22 = vcombine.low %v5451_v43, %v5451_v43  ;;  %v2656_v56 = vrot.slane %v4007_v40, 5 }
 0x243   : > { %v3801_v19 = vcombine.low %v2191_v45, %v5564_v6  ;;  %v3007_v35 = vrot.slane %v3005_v53, 3  ;;  %v3010_v63 = vrot.slane %v3008_v32, 4  ;;  %v5573_v49 = vpop.permute.xlu1 %2664 }
 0x244   : > { %v5575_v44 = vpop.permute.xlu0 %2701 }
 0x245   : > { %v2783_v61 = vrot.slane %v3801_v19, 5  ;;  %2770 = vrot.lane.b32.xlu0 %v2740_v26, %s4059_s19  ;;  %v2742_v14 = vshrl.u32 %v3801_v19, 16  ;;  %v2745_v47 = vshll.u32 %v3801_v19, 16  ;;  %v3011_v45 = vor.u32 %v3010_v63, %v3007_v35 }
 0x247   : > { %v2744_v62 = vrot.slane %v2742_v14, 4  ;;  %v2747_v18 = vrot.slane %v2745_v47, 5  ;;  %v2784_v54 = vsel %vm2406_vm10, %v2781_v58, %v2783_v61  ;;  %v2786_v48 = vsel %vm2406_vm10, %v2783_v61, %v2785_v38  ;;  %v5587_v12 = vpop.permute.xlu1 %2387 }
 0x248   : > { %v3012_v28 = vsel %vm2997_vm12, %v3004_v60, %v3011_v45  ;;  %v2755_v51 = vpop.permute.xlu0 %2754  ;;  %v3192_v33 = vshrl.u32 %v2784_v54, 16  ;;  %v3195_v36 = vshll.u32 %v2784_v54, 16  ;;  %v3209_v8 = vshrl.u32 %v2786_v48, 16 }
 0x249   : > { %3352 = vmatmul.mubr.bf16.vlgmr.msra.gmra.mxu1 %v3012_v28  ;;  %v2951_v7 = vsel %vm1439_vm9, %v2925_v11, %v2755_v51  ;;  %2401 = vrot.lane.b32.xlu0 %v5405_v59, %s4057_s17  ;;  %v2748_v39 = vor.u32 %v2747_v18, %v2744_v62  ;;  %v3212_v9 = vshll.u32 %v2786_v48, 16  ;;  %v2657_v11 = vsel %vm2406_vm10, %v2654_v27, %v2656_v56 }
 0x24a   : > { %v3030_v58 = vshrl.u32 %v2951_v7, 16  ;;  %v3033_v42 = vshll.u32 %v2951_v7, 16  ;;  %3814 = vmatprep.mubr.msk.bf16.mxu1 %vm1253_vm3, %v5102_v31  ;;  %v3194_v29 = vrot.slane %v3192_v33, 3  ;;  %v3197_v32 = vrot.slane %v3195_v36, 4 }
 0x24b   : > { %v2749_v53 = vsel %vm2269_vm11, %v2739_v30, %v2748_v39  ;;  %v3211_v19 = vrot.slane %v3209_v8, 3  ;;  %v3214_v38 = vrot.slane %v3212_v9, 4  ;;  %v5598_v26 = vpop.permute.xlu1 %2479  ;;  %v2800_v56 = vsel %vm1253_vm3, %v5055_v16, %v5587_v12 }
 0x24c   : > { %v3032_v35 = vrot.slane %v3030_v58, 3  ;;  %v3035_v63 = vrot.slane %v3033_v42, 4  ;;  %2772 = vrot.lane.b32.xlu1 %v2749_v53, %s4059_s19  ;;  %v2667_v59 = vpop.permute.xlu0 %2666  ;;  %v3198_v31 = vor.u32 %v3197_v32, %v3194_v29 }
 0x24d   : > { %2493 = vrot.lane.b32.xlu0 %v3793_v22, %s4054_s7  ;;  %v3215_v61 = vor.u32 %v3214_v38, %v3211_v19  ;;  %s3897_s7 = smul.u32 48, %s5915_s22 }
 0x24e   : > { %v3036_v14 = vor.u32 %v3035_v63, %v3032_v35  ;;  %v5604_v43 = vsel %vm2997_vm12, %v5556_v46, %v3198_v31  ;;  %v3799_v46 = vcombine.low %v5564_v6, %v5564_v6 }
 0x24f   : > { %v5607_v30 = vsel %vm2997_vm12, %v3198_v31, %v3215_v61  ;;  %v2613_v47 = vpop.permute.xlu1 %2612 }
 0x250   : > { %2628 = vrot.lane.b32.xlu1 %v5488_v4, %s4058_s18  ;;  %v5611_v60 = vpop.permute.xlu0 %2389  ;;  %v3037_v62 = vsel %vm2997_vm12, %v3011_v45, %v3036_v14  ;;  %v2796_v4 = vsel %vm1253_vm3, %v4959_v2, %v5435_v37  ;;  %v2798_v37 = vsel %vm1253_vm3, %v5007_v21, %v5470_v10 }
 0x251   : > { %2682 = vrot.lane.b32.xlu0 %v2657_v11, %s4056_s13  ;;  %3360 = vmatmul.mubr.bf16.gmra.mxu1 %v3037_v62  ;;  %v2823_v27 = vsel %vm1284_vm4, %v2796_v4, %v5400_v20  ;;  %v2825_v48 = vsel %vm1284_vm4, %v2798_v37, %v5505_v23 }
 0x252   : > { %3815 = vmatprep.mubr.msk.bf16.mxu1 %vm1253_vm3, %v5145_v34  ;;  %v2849_v45 = vsel %vm1315_vm5, %v2823_v27, %v5453_v24 }
 0x253   : > { %v2445_v18 = vpop.permute.xlu1 %2444  ;;  %v2875_v34 = vsel %vm1346_vm6, %v2849_v45, %v5537_v0 }
 0x254   : > { %2719 = vrot.lane.b32.xlu1 %v3799_v46, %s4053_s28  ;;  %v2482_v25 = vpop.permute.xlu0 %2481  ;;  %v2901_v2 = vsel %vm1377_vm7, %v2875_v34, %v5573_v49  ;;  %v2851_v49 = vsel %vm1315_vm5, %v2825_v48, %v5507_v13  ;;  %s3896_s28 = smul.u32 24, %s5917_s21 }
 0x255   : > { %2774 = vrot.lane.b32.xlu0 %v2748_v39, %s4059_s19  ;;  %v2927_v20 = vsel %vm1408_vm8, %v2901_v2, %v5575_v44  ;;  %v2877_v33 = vsel %vm1346_vm6, %v2851_v49, %v2613_v47 }
 0x256   : > { %v2903_v7 = vsel %vm1377_vm7, %v2877_v33, %v2667_v59  ;;  %s305_s10 = sadd.s32 %s3897_s7, %s3896_s28 }
 0x257   : > { %v2704_v6 = vpop.permute.xlu1 %2703  ;;  %s3634_s18 = sshll.u32 %s305_s10, 3 }
 0x258   : > { %v2615_v54 = vpop.permute.xlu0 %2614  ;;  %v2929_v44 = vsel %vm1408_vm8, %v2903_v7, %v2704_v6  ;;  %s5767_s20 = scalar_lea.vmem %s5884_s6, %s3634_s18 }
 0x25b   : > { %v2757_v28 = vpop.permute.xlu1 %2756 }
 0x25c   : > { %v5642_v24 = vpop.permute.xlu0 %2446  ;;  %v2953_v0 = vsel %vm1439_vm9, %v2927_v20, %v2757_v28 }
 0x25d   : > { %v3047_v51 = vshrl.u32 %v2953_v0, 16  ;;  %v3050_v40 = vshll.u32 %v2953_v0, 16 }
 0x25f   : > { %v3049_v36 = vrot.slane %v3047_v51, 3  ;;  %v3052_v21 = vrot.slane %v3050_v40, 4  ;;  %v2669_v10 = vpop.permute.xlu1 %2668 }
 0x260   : > { %v2706_v8 = vpop.permute.xlu0 %2705 }
 0x261   : > { %v3053_v23 = vor.u32 %v3052_v21, %v3049_v36 }
 0x263   : > { %v5650_v39 = vpop.permute.xlu1 %2391  ;;  %v3054_v9 = vsel %vm2997_vm12, %v3036_v14, %v3053_v23 }
 0x264   : > { %v2759_v58 = vpop.permute.xlu0 %2758  ;;  %3368 = vmatmul.mubr.bf16.gmra.mxu1 %v3054_v9 }
 0x265   : > { %v2955_v42 = vsel %vm1439_vm9, %v2929_v44, %v2759_v58  ;;  %3816 = vmatprep.mubr.msk.bf16.mxu1 %vm1253_vm3, %v5180_v17  ;;  %v2827_v17 = vsel %vm1284_vm4, %v2800_v56, %v5554_v52  ;;  %v2804_v44 = vsel %vm1253_vm3, %v5133_v55, %v5650_v39 }
 0x266   : > { %v3064_v13 = vshrl.u32 %v2955_v42, 16  ;;  %v3067_v22 = vshll.u32 %v2955_v42, 16  ;;  %v2853_v14 = vsel %vm1315_vm5, %v2827_v17, %v5598_v26 }
 0x267   : > { %v2484_v32 = vpop.permute.xlu1 %2483  ;;  %v2879_v47 = vsel %vm1346_vm6, %v2853_v14, %v2615_v54 }
 0x268   : > { %v3066_v29 = vrot.slane %v3064_v13, 3  ;;  %v3069_v53 = vrot.slane %v3067_v22, 4  ;;  %v2671_v19 = vpop.permute.xlu0 %2670  ;;  %v2905_v46 = vsel %vm1377_vm7, %v2879_v47, %v2669_v10 }
 0x269   : > { %v2931_v12 = vsel %vm1408_vm8, %v2905_v46, %v2706_v8 }
 0x26a   : > { %v3070_v38 = vor.u32 %v3069_v53, %v3066_v29 }
 0x26b   : > { %v2617_v35 = vpop.permute.xlu1 %2616 }
 0x26c   : > { %v2394_v63 = vpop.permute.xlu0 %2393  ;;  %v3071_v59 = vsel %vm2997_vm12, %v3053_v23, %v3070_v38 }
 0x26d   : > { %3376 = vmatmul.mubr.bf16.gmra.mxu1 %v3071_v59 }
 0x26e   : > { %3817 = vmatprep.mubr.msk.bf16.mxu1 %vm1253_vm3, %v5241_v50  ;;  %v2802_v50 = vsel %vm1253_vm3, %v5104_v15, %v5611_v60 }
 0x26f   : > { %v2449_v31 = vpop.permute.xlu1 %2448  ;;  %v2829_v16 = vsel %vm1284_vm4, %v2802_v50, %v2445_v18 }
 0x270   : > { %v2486_v61 = vpop.permute.xlu0 %2485  ;;  %v2855_v34 = vsel %vm1315_vm5, %v2829_v16, %v2482_v25 }
 0x271   : > { %v2881_v6 = vsel %vm1346_vm6, %v2855_v34, %v2617_v35 }
 0x272   : > { %v2907_v60 = vsel %vm1377_vm7, %v2881_v6, %v2671_v19 }
 0x273   : > { %v2708_v11 = vpop.permute.xlu1 %2707 }
 0x274   : > { %v2619_v62 = vpop.permute.xlu0 %2618  ;;  %v2933_v18 = vsel %vm1408_vm8, %v2907_v60, %v2708_v11 }
 0x277   : > { %v2761_v4 = vpop.permute.xlu1 %2760 }
 0x278   : > { %v5673_v27 = vpop.permute.xlu0 %2450  ;;  %v2957_v52 = vsel %vm1439_vm9, %v2931_v12, %v2761_v4  ;;  %v5899_v4 = vld [vmem:[#allocation8_spill] sm:$0xff] }
 0x279   : > { %v3081_v26 = vshrl.u32 %v2957_v52, 16  ;;  %v3084_v45 = vshll.u32 %v2957_v52, 16  ;;  %v5900_v52 = vld [vmem:[#allocation4_spill] sm:$0xff] }
 0x27b   : > { %v3083_v54 = vrot.slane %v3081_v26, 3  ;;  %v3086_v2 = vrot.slane %v3084_v45, 4  ;;  %v2673_v37 = vpop.permute.xlu1 %2672 }
 0x27c   : > { %v2710_v48 = vpop.permute.xlu0 %2709 }
 0x27d   : > { %v3087_v15 = vor.u32 %v3086_v2, %v3083_v54 }
 0x27f   : > { %v2396_v20 = vpop.permute.xlu1 %2395  ;;  %v3088_v28 = vsel %vm2997_vm12, %v3070_v38, %v3087_v15 }
 0x280   : > { %v2763_v0 = vpop.permute.xlu0 %2762  ;;  %3384 = vmatmul.mubr.bf16.gmra.mxu1 %v3088_v28  ;;  %v2808_v26 = vsel %vm1253_vm3, %v5900_v52, %v2396_v20 }
 0x281   : > { %v2959_v51 = vsel %vm1439_vm9, %v2933_v18, %v2763_v0  ;;  %3818 = vmatprep.mubr.msk.bf16.mxu1 %vm1253_vm3, %v5284_v5  ;;  %v2831_v5 = vsel %vm1284_vm4, %v2804_v44, %v5642_v24  ;;  %v2835_v54 = vsel %vm1284_vm4, %v2808_v26, %v5673_v27 }
 0x282   : > { %v3098_v40 = vshrl.u32 %v2959_v51, 16  ;;  %v3101_v25 = vshll.u32 %v2959_v51, 16  ;;  %v2857_v42 = vsel %vm1315_vm5, %v2831_v5, %v2484_v32 }
 0x283   : > { %v2488_v36 = vpop.permute.xlu1 %2487  ;;  %v2883_v13 = vsel %vm1346_vm6, %v2857_v42, %v2619_v62 }
 0x284   : > { %v3100_v49 = vrot.slane %v3098_v40, 3  ;;  %v3103_v33 = vrot.slane %v3101_v25, 4  ;;  %v2675_v21 = vpop.permute.xlu0 %2674  ;;  %v2909_v53 = vsel %vm1377_vm7, %v2883_v13, %v2673_v37  ;;  %v2861_v37 = vsel %vm1315_vm5, %v2835_v54, %v2488_v36 }
 0x285   : > { %v2935_v55 = vsel %vm1408_vm8, %v2909_v53, %v2710_v48 }
 0x286   : > { %v3104_v10 = vor.u32 %v3103_v33, %v3100_v49  ;;  %v5901_v33 = vld [vmem:[#allocation5_spill] sm:$0xff] }
 0x287   : > { %v2621_v8 = vpop.permute.xlu1 %2620 }
 0x288   : > { %v2398_v23 = vpop.permute.xlu0 %2397  ;;  %v3105_v7 = vsel %vm2997_vm12, %v3087_v15, %v3104_v10 }
 0x289   : > { %3392 = vmatmul.mubr.bf16.gmra.mxu1 %v3105_v7  ;;  %v2810_v36 = vsel %vm1253_vm3, %v5901_v33, %v2398_v23 }
 0x28a   : > { %3819 = vmatprep.mubr.msk.bf16.mxu1 %vm1253_vm3, %v5357_v3  ;;  %v2806_v3 = vsel %vm1253_vm3, %v5182_v1, %v2394_v63 }
 0x28b   : > { %v2453_v9 = vpop.permute.xlu1 %2452  ;;  %v2833_v19 = vsel %vm1284_vm4, %v2806_v3, %v2449_v31 }
 0x28c   : > { %v2490_v58 = vpop.permute.xlu0 %2489  ;;  %v2859_v32 = vsel %vm1315_vm5, %v2833_v19, %v2486_v61 }
 0x28d   : > { %v2885_v56 = vsel %vm1346_vm6, %v2859_v32, %v2621_v8  ;;  %v2837_v8 = vsel %vm1284_vm4, %v2810_v36, %v2453_v9  ;;  %v3449_v36 = vld [vmem:[%s4155_s16 + $0x39] sm:$0xff] }
 0x28e   : > { %v2911_v1 = vsel %vm1377_vm7, %v2885_v56, %v2675_v21  ;;  %v2863_v44 = vsel %vm1315_vm5, %v2837_v8, %v2490_v58  ;;  %v5903_v56 = vld [vmem:[#allocation7_spill] sm:$0xff] }
 0x28f   : > { %v2712_v22 = vpop.permute.xlu1 %2711 }
 0x290   : > { %v2623_v29 = vpop.permute.xlu0 %2622  ;;  %v2937_v63 = vsel %vm1408_vm8, %v2911_v1, %v2712_v22  ;;  %v5902_v22 = vld [vmem:[#allocation6_spill] sm:$0xff] }
 0x291   : > { %v2887_v48 = vsel %vm1346_vm6, %v2861_v37, %v2623_v29 }
 0x293   : > { %v2765_v39 = vpop.permute.xlu1 %2764 }
 0x294   : > { %v2455_v38 = vpop.permute.xlu0 %2454  ;;  %v2961_v35 = vsel %vm1439_vm9, %v2935_v55, %v2765_v39 }
 0x295   : > { %v3115_v24 = vshrl.u32 %v2961_v35, 16  ;;  %v3118_v59 = vshll.u32 %v2961_v35, 16 }
 0x297   : > { %v3117_v17 = vrot.slane %v3115_v24, 3  ;;  %v3120_v14 = vrot.slane %v3118_v59, 4  ;;  %v2677_v47 = vpop.permute.xlu1 %2676 }
 0x298   : > { %v2714_v11 = vpop.permute.xlu0 %2713  ;;  %v2913_v18 = vsel %vm1377_vm7, %v2887_v48, %v2677_v47 }
 0x299   : > { %v3121_v62 = vor.u32 %v3120_v14, %v3117_v17  ;;  %v2939_v20 = vsel %vm1408_vm8, %v2913_v18, %v2714_v11  ;;  %v3777_v17 = vcombine.low %v5903_v56, %v5903_v56  ;;  %v3454_v56 = vld [vmem:[%s4155_s16 + $0x61] sm:$0xff] }
 0x29b   : > { %v2400_v31 = vpop.permute.xlu1 %2399  ;;  %v3122_v46 = vsel %vm2997_vm12, %v3104_v10, %v3121_v62 }
 0x29c   : > { %v2767_v50 = vpop.permute.xlu0 %2766  ;;  %3400 = vmatmul.mubr.bf16.gmra.mxu1 %v3122_v46  ;;  %v2812_v23 = vsel %vm1253_vm3, %v5902_v22, %v2400_v31  ;;  %v3451_v22 = vld [vmem:[%s4155_s16 + $0x49] sm:$0xff] }
 0x29d   : > { %v2963_v16 = vsel %vm1439_vm9, %v2937_v63, %v2767_v50  ;;  %3820 = vmatprep.mubr.msk.bf16.mxu1 %vm1253_vm3, %v5899_v4  ;;  %v2839_v3 = vsel %vm1284_vm4, %v2812_v23, %v2455_v38 }
 0x29e   : > { %v3132_v12 = vshrl.u32 %v2963_v16, 16  ;;  %v3135_v61 = vshll.u32 %v2963_v16, 16 }
 0x29f   : > { %v2625_v6 = vpop.permute.xlu1 %2624 }
 0x2a0   : > { %v3134_v45 = vrot.slane %v3132_v12, 3  ;;  %v3137_v34 = vrot.slane %v3135_v61, 4  ;;  %v2679_v40 = vpop.permute.xlu0 %2678  ;;  %v2889_v5 = vsel %vm1346_vm6, %v2863_v44, %v2625_v6 }
 0x2a1   : > { %v2915_v29 = vsel %vm1377_vm7, %v2889_v5, %v2679_v40  ;;  %v3448_v40 = vld [vmem:[%s4155_s16 + $0x31] sm:$0xff] }
 0x2a2   : > { %v3138_v2 = vor.u32 %v3137_v34, %v3134_v45 }
 0x2a4   : > { %v2716_v15 = vpop.permute.xlu1 %2715  ;;  %v3139_v60 = vsel %vm2997_vm12, %v3121_v62, %v3138_v2 }
 0x2a5   : > { %3408 = vmatmul.mubr.bf16.gmra.mxu1 %v3139_v60  ;;  %v2941_v9 = vsel %vm1408_vm8, %v2915_v29, %v2716_v15 }
 0x2a6   : > { %3821 = vmatprep.mubr.msk.bf16.mxu1 %vm1253_vm3, %v5493_v57 }
 0x2a8   : > { %v2769_v28 = vpop.permute.xlu1 %2768 }
 0x2a9   : > { %v2965_v0 = vsel %vm1439_vm9, %v2939_v20, %v2769_v28 }
 0x2aa   : > { %v3149_v27 = vshrl.u32 %v2965_v0, 16  ;;  %v3152_v51 = vshll.u32 %v2965_v0, 16 }
 0x2ab   : > { %v2627_v7 = vpop.permute.xlu0 %2626 }
 0x2ac   : > { %v3151_v25 = vrot.slane %v3149_v27, 3  ;;  %v3154_v49 = vrot.slane %v3152_v51, 4  ;;  %v2492_v10 = vpop.permute.xlu1 %2491  ;;  %v5760_v27 = vld [vmem:[%s5883_s5] ss:$0 sm:$0xff] }
 0x2ad   : > { %v2865_v58 = vsel %vm1315_vm5, %v2839_v3, %v2492_v10  ;;  %v3452_v3 = vld [vmem:[%s4155_s16 + $0x51] sm:$0xff] }
 0x2ae   : > { %v3155_v21 = vor.u32 %v3154_v49, %v3151_v25  ;;  %v2891_v32 = vsel %vm1346_vm6, %v2865_v58, %v2627_v7 }
 0x2b0   : > { %v3156_v57 = vsel %vm2997_vm12, %v3138_v2, %v3155_v21  ;;  %v2681_v13 = vpop.permute.xlu1 %2680 }
 0x2b1   : > { %3416 = vmatmul.mubr.bf16.gmra.mxu1 %v3156_v57  ;;  %v2917_v14 = vsel %vm1377_vm7, %v2891_v32, %v2681_v13  ;;  %v3450_v57 = vld [vmem:[%s4155_s16 + $0x41] sm:$0xff] }
 0x2b2   : > { %3822 = vmatprep.mubr.msk.bf16.mxu1 %vm1253_vm3, %v5570_v41 }
 0x2b3   : > { %v2718_v42 = vpop.permute.xlu0 %2717 }
 0x2b4   : > { %v2457_v39 = vpop.permute.xlu1 %2456  ;;  %v2943_v38 = vsel %vm1408_vm8, %v2917_v14, %v2718_v42 }
 0x2b7   : > { %v2771_v53 = vpop.permute.xlu0 %2770 }
 0x2b8   : > { %v2967_v19 = vsel %vm1439_vm9, %v2941_v9, %v2771_v53 }
 0x2b9   : > { %v3166_v55 = vshrl.u32 %v2967_v19, 16  ;;  %v3169_v41 = vshll.u32 %v2967_v19, 16 }
 0x2bb   : > { %v3168_v35 = vrot.slane %v3166_v55, 3  ;;  %v3171_v24 = vrot.slane %v3169_v41, 4  ;;  %v2402_v59 = vpop.permute.xlu0 %2401 }
 0x2bc   : > { %v2815_v11 = vsel %vm1253_vm3, %v3777_v17, %v2402_v59 }
 0x2bd   : > { %v3172_v47 = vor.u32 %v3171_v24, %v3168_v35  ;;  %v2841_v16 = vsel %vm1284_vm4, %v2815_v11, %v2457_v39  ;;  %v3453_v39 = vld [vmem:[%s4155_s16 + $0x59] sm:$0xff]  ;;  %v3455_v11 = vld [vmem:[%s4155_s16 + $0x69] sm:$0xff] }
 0x2be   : > { %v2773_v62 = vpop.permute.xlu1 %2772 }
 0x2bf   : > { %v2969_v1 = vsel %vm1439_vm9, %v2943_v38, %v2773_v62  ;;  %v2494_v63 = vpop.permute.xlu0 %2493  ;;  %v3173_v31 = vsel %vm2997_vm12, %v3155_v21, %v3172_v47 }
 0x2c0   : > { %v3183_v46 = vshrl.u32 %v2969_v1, 16  ;;  %v3186_v50 = vshll.u32 %v2969_v1, 16  ;;  %3424 = vmatmul.mubr.bf16.gmra.mxu1 %v3173_v31  ;;  %v2867_v4 = vsel %vm1315_vm5, %v2841_v16, %v2494_v63 }
 0x2c1   : > { %3823 = vmatprep.mubr.msk.bf16.mxu1 %vm1253_vm3, %v5604_v43 }
 0x2c2   : > { %v3185_v12 = vrot.slane %v3183_v46, 3  ;;  %v3188_v61 = vrot.slane %v3186_v50, 4  ;;  %v2629_v52 = vpop.permute.xlu1 %2628  ;;  %v3456_v46 = vld [vmem:[%s4155_s16 + $0x71] sm:$0xff] }
 0x2c3   : > { %v2893_v26 = vsel %vm1346_vm6, %v2867_v4, %v2629_v52  ;;  %v2683_v45 = vpop.permute.xlu0 %2682  ;;  %v3457_v4 = vld [vmem:[%s4155_s16 + $0x79] sm:$0xff] }
 0x2c4   : > { %v3189_v34 = vor.u32 %v3188_v61, %v3185_v12  ;;  %v2919_v6 = vsel %vm1377_vm7, %v2893_v26, %v2683_v45 }
 0x2c6   : > { %v2720_v54 = vpop.permute.xlu1 %2719  ;;  %v3190_v2 = vsel %vm2997_vm12, %v3172_v47, %v3189_v34 }
 0x2c7   : > { %v2945_v37 = vsel %vm1408_vm8, %v2919_v6, %v2720_v54  ;;  %v2775_v48 = vpop.permute.xlu0 %2774  ;;  %v3458_v6 = vld [vmem:[%s4155_s16 + $0x81] sm:$0xff] }
 0x2c8   : > { %v2971_v43 = vsel %vm1439_vm9, %v2945_v37, %v2775_v48  ;;  %3432 = vmatmul.mubr.bf16.gmra.mxu1 %v3190_v2 }
 0x2c9   : > { %v3200_v15 = vshrl.u32 %v2971_v43, 16  ;;  %v3203_v60 = vshll.u32 %v2971_v43, 16  ;;  %3824 = vmatprep.mubr.msk.bf16.mxu1 %vm1253_vm3, %v5607_v30  ;;  %v3459_v43 = vld [vmem:[%s4155_s16 + $0x89] sm:$0xff] }
 0x2cb   : > { %v3202_v18 = vrot.slane %v3200_v15, 3  ;;  %v3205_v20 = vrot.slane %v3203_v60, 4 }
 0x2cd   : > { %v3206_v28 = vor.u32 %v3205_v20, %v3202_v18 }
 0x2cf   : > { %v3207_v0 = vsel %vm2997_vm12, %v3189_v34, %v3206_v28  ;;  %v3460_v28 = vld [vmem:[%s4155_s16 + $0x91] sm:$0xff] }
 0x2d0   : > { %3440 = vmatmul.mubr.bf16.gmra.mxu1 %v3207_v0 }
 0x309   : > { %v3353_v51 = vpop.f32.mrf.mxu1 }
 0x30a   : > { %v3354_v30 = vadd.f32 %v5760_v27, %v3353_v51 }
 0x30b   : > { %v3355_v25 = vpop.f32.mrf.mxu1 }
 0x30c   : > { %v3472_v49 = vadd.f32 %v3448_v40, %v3354_v30  ;;  %v3461_v25 = vld [vmem:[%s4155_s16 + $0x99] sm:$0xff] }
 0x30d   : > { %v3356_v33 = vpop.f32.mrf.mxu1 }
 0x30e   : > { %3496 = vst.msk [vmem:[%s5767_s20] sm:$0xff] %vm1253_vm3, %v3472_v49  ;;  %v3357_v21 = vadd.f32 %v5760_v27, %v3356_v33 }
 0x30f   : > { %v3358_v10 = vpop.f32.mrf.mxu1 }
 0x310   : > { %v3473_v8 = vadd.f32 %v3449_v36, %v3357_v21  ;;  %v3462_v10 = vld [vmem:[%s4155_s16 + $0xa1] sm:$0xff] }
 0x311   : > { %v3361_v7 = vpop.f32.mrf.mxu1 }
 0x312   : > { %3497 = vst.msk [vmem:[%s5767_s20 + $0x8] sm:$0xff] %vm1253_vm3, %v3473_v8  ;;  %v3362_v44 = vadd.f32 %v5760_v27, %v3361_v7 }
 0x313   : > { %v3363_v5 = vpop.f32.mrf.mxu1 }
 0x314   : > { %v3474_v42 = vadd.f32 %v3450_v57, %v3362_v44  ;;  %v3463_v5 = vld [vmem:[%s4155_s16 + $0xa9] sm:$0xff] }
 0x315   : > { %v3364_v13 = vpop.f32.mrf.mxu1 }
 0x316   : > { %3498 = vst.msk [vmem:[%s5767_s20 + $0x10] sm:$0xff] %vm1253_vm3, %v3474_v42  ;;  %v3365_v23 = vadd.f32 %v5760_v27, %v3364_v13 }
 0x317   : > { %v3366_v29 = vpop.f32.mrf.mxu1 }
 0x318   : > { %v3475_v9 = vadd.f32 %v3451_v22, %v3365_v23  ;;  %v3464_v29 = vld [vmem:[%s4155_s16 + $0xb1] sm:$0xff] }
 0x31a   : > { %3499 = vst.msk [vmem:[%s5767_s20 + $0x18] sm:$0xff] %vm1253_vm3, %v3475_v9 }
 0x324   : > { %v3369_v53 = vpop.f32.mrf.mxu1 }
 0x325   : > { %v3370_v19 = vadd.f32 %v5760_v27, %v3369_v53 }
 0x326   : > { %v3371_v58 = vpop.f32.mrf.mxu1 }
 0x327   : > { %v3476_v55 = vadd.f32 %v3452_v3, %v3370_v19  ;;  %v3465_v58 = vld [vmem:[%s4155_s16 + $0xb9] sm:$0xff] }
 0x328   : > { %v3372_v41 = vpop.f32.mrf.mxu1 }
 0x329   : > { %3500 = vst.msk [vmem:[%s5767_s20 + $0x20] sm:$0xff] %vm1253_vm3, %v3476_v55  ;;  %v3373_v35 = vadd.f32 %v5760_v27, %v3372_v41 }
 0x32a   : > { %v3374_v24 = vpop.f32.mrf.mxu1 }
 0x32b   : > { %v3477_v59 = vadd.f32 %v3453_v39, %v3373_v35  ;;  %v3466_v24 = vld [vmem:[%s4155_s16 + $0xc1] sm:$0xff] }
 0x32d   : > { %v3377_v32 = vpop.f32.mrf.mxu1  ;;  %3501 = vst.msk [vmem:[%s5767_s20 + $0x28] sm:$0xff] %vm1253_vm3, %v3477_v59 }
 0x32e   : > { %v3378_v17 = vadd.f32 %v5760_v27, %v3377_v32 }
 0x32f   : > { %v3379_v14 = vpop.f32.mrf.mxu1 }
 0x330   : > { %v3478_v47 = vadd.f32 %v3454_v56, %v3378_v17  ;;  %v3467_v14 = vld [vmem:[%s4155_s16 + $0xc9] sm:$0xff] }
 0x331   : > { %v3380_v38 = vpop.f32.mrf.mxu1 }
 0x332   : > { %3502 = vst.msk [vmem:[%s5767_s20 + $0x30] sm:$0xff] %vm1253_vm3, %v3478_v47  ;;  %v3381_v62 = vadd.f32 %v5760_v27, %v3380_v38 }
 0x333   : > { %v3382_v1 = vpop.f32.mrf.mxu1 }
 0x334   : > { %v3479_v63 = vadd.f32 %v3455_v11, %v3381_v62  ;;  %v3468_v1 = vld [vmem:[%s4155_s16 + $0xd1] sm:$0xff] }
 0x336   : > { %3503 = vst.msk [vmem:[%s5767_s20 + $0x38] sm:$0xff] %vm1253_vm3, %v3479_v63 }
 0x340   : > { %v3385_v31 = vpop.f32.mrf.mxu1 }
 0x341   : > { %v3386_v50 = vadd.f32 %v5760_v27, %v3385_v31 }
 0x342   : > { %v3387_v16 = vpop.f32.mrf.mxu1 }
 0x343   : > { %v3480_v12 = vadd.f32 %v3456_v46, %v3386_v50  ;;  %v3469_v16 = vld [vmem:[%s4155_s16 + $0xd9] sm:$0xff] }
 0x344   : > { %v3388_v61 = vpop.f32.mrf.mxu1 }
 0x345   : > { %3504 = vst.msk [vmem:[%s5767_s20 + $0x40] sm:$0xff] %vm1253_vm3, %v3480_v12  ;;  %v3389_v52 = vadd.f32 %v5760_v27, %v3388_v61 }
 0x346   : > { %v3390_v26 = vpop.f32.mrf.mxu1 }
 0x347   : > { %v3481_v45 = vadd.f32 %v3457_v4, %v3389_v52  ;;  %v3470_v26 = vld [vmem:[%s4155_s16 + $0xe1] sm:$0xff] }
 0x349   : > { %v3393_v34 = vpop.f32.mrf.mxu1  ;;  %3505 = vst.msk [vmem:[%s5767_s20 + $0x48] sm:$0xff] %vm1253_vm3, %v3481_v45 }
 0x34a   : > { %v3394_v54 = vadd.f32 %v5760_v27, %v3393_v34 }
 0x34b   : > { %v3395_v2 = vpop.f32.mrf.mxu1 }
 0x34c   : > { %v3482_v37 = vadd.f32 %v3458_v6, %v3394_v54  ;;  %v3471_v2 = vld [vmem:[%s4155_s16 + $0xe9] sm:$0xff] }
 0x34d   : > { %v3396_v48 = vpop.f32.mrf.mxu1 }
 0x34e   : > { %3506 = vst.msk [vmem:[%s5767_s20 + $0x50] sm:$0xff] %vm1253_vm3, %v3482_v37  ;;  %v3397_v15 = vadd.f32 %v5760_v27, %v3396_v48 }
 0x34f   : > { %v3398_v60 = vpop.f32.mrf.mxu1 }
 0x350   : > { %v3483_v18 = vadd.f32 %v3459_v43, %v3397_v15 }
 0x352   : > { %3507 = vst.msk [vmem:[%s5767_s20 + $0x58] sm:$0xff] %vm1253_vm3, %v3483_v18 }
 0x35c   : > { %v3401_v20 = vpop.f32.mrf.mxu1 }
 0x35d   : > { %v3402_v0 = vadd.f32 %v5760_v27, %v3401_v20 }
 0x35e   : > { %v3403_v51 = vpop.f32.mrf.mxu1 }
 0x35f   : > { %v3484_v40 = vadd.f32 %v3460_v28, %v3402_v0 }
 0x360   : > { %v3404_v30 = vpop.f32.mrf.mxu1 }
 0x361   : > { %3508 = vst.msk [vmem:[%s5767_s20 + $0x60] sm:$0xff] %vm1253_vm3, %v3484_v40  ;;  %v3405_v49 = vadd.f32 %v5760_v27, %v3404_v30 }
 0x362   : > { %v3406_v33 = vpop.f32.mrf.mxu1 }
 0x363   : > { %v3485_v36 = vadd.f32 %v3461_v25, %v3405_v49 }
 0x365   : > { %v3409_v21 = vpop.f32.mrf.mxu1  ;;  %3509 = vst.msk [vmem:[%s5767_s20 + $0x68] sm:$0xff] %vm1253_vm3, %v3485_v36 }
 0x366   : > { %v3410_v8 = vadd.f32 %v5760_v27, %v3409_v21 }
 0x367   : > { %v3411_v7 = vpop.f32.mrf.mxu1 }
 0x368   : > { %v3486_v57 = vadd.f32 %v3462_v10, %v3410_v8 }
 0x369   : > { %v3412_v44 = vpop.f32.mrf.mxu1 }
 0x36a   : > { %3510 = vst.msk [vmem:[%s5767_s20 + $0x70] sm:$0xff] %vm1253_vm3, %v3486_v57  ;;  %v3413_v42 = vadd.f32 %v5760_v27, %v3412_v44 }
 0x36b   : > { %v3414_v13 = vpop.f32.mrf.mxu1 }
 0x36c   : > { %v3487_v22 = vadd.f32 %v3463_v5, %v3413_v42 }
 0x36e   : > { %3511 = vst.msk [vmem:[%s5767_s20 + $0x78] sm:$0xff] %vm1253_vm3, %v3487_v22 }
 0x371   : > { %v3417_v23 = vpop.f32.mrf.mxu1 }
 0x372   : > { %v3418_v9 = vadd.f32 %v5760_v27, %v3417_v23 }
 0x373   : > { %v3419_v53 = vpop.f32.mrf.mxu1 }
 0x374   : > { %v3488_v3 = vadd.f32 %v3464_v29, %v3418_v9 }
 0x375   : > { %v3420_v19 = vpop.f32.mrf.mxu1 }
 0x376   : > { %3512 = vst.msk [vmem:[%s5767_s20 + $0x80] sm:$0xff] %vm1253_vm3, %v3488_v3  ;;  %v3421_v55 = vadd.f32 %v5760_v27, %v3420_v19 }
 0x377   : > { %v3422_v41 = vpop.f32.mrf.mxu1 }
 0x378   : > { %v3489_v39 = vadd.f32 %v3465_v58, %v3421_v55 }
 0x37a   : > { %3513 = vst.msk [vmem:[%s5767_s20 + $0x88] sm:$0xff] %vm1253_vm3, %v3489_v39 }
 0x380   : > { %v3425_v35 = vpop.f32.mrf.mxu1 }
 0x381   : > { %v3426_v59 = vadd.f32 %v5760_v27, %v3425_v35 }
 0x382   : > { %v3427_v32 = vpop.f32.mrf.mxu1 }
 0x383   : > { %v3490_v56 = vadd.f32 %v3466_v24, %v3426_v59 }
 0x384   : > { %v3428_v17 = vpop.f32.mrf.mxu1 }
 0x385   : > { %3514 = vst.msk [vmem:[%s5767_s20 + $0x90] sm:$0xff] %vm1253_vm3, %v3490_v56  ;;  %v3429_v47 = vadd.f32 %v5760_v27, %v3428_v17 }
 0x386   : > { %v3430_v38 = vpop.f32.mrf.mxu1 }
 0x387   : > { %v3491_v11 = vadd.f32 %v3467_v14, %v3429_v47 }
 0x388   : > { %v3433_v62 = vpop.f32.mrf.mxu1 }
 0x389   : > { %3515 = vst.msk [vmem:[%s5767_s20 + $0x98] sm:$0xff] %vm1253_vm3, %v3491_v11  ;;  %v3434_v63 = vadd.f32 %v5760_v27, %v3433_v62 }
 0x38a   : > { %v3435_v31 = vpop.f32.mrf.mxu1 }
 0x38b   : > { %v3492_v46 = vadd.f32 %v3468_v1, %v3434_v63 }
 0x38c   : > { %v3436_v50 = vpop.f32.mrf.mxu1 }
 0x38d   : > { %3516 = vst.msk [vmem:[%s5767_s20 + $0xa0] sm:$0xff] %vm1253_vm3, %v3492_v46  ;;  %v3437_v12 = vadd.f32 %v5760_v27, %v3436_v50 }
 0x38e   : > { %v3438_v61 = vpop.f32.mrf.mxu1 }
 0x38f   : > { %v3493_v4 = vadd.f32 %v3469_v16, %v3437_v12 }
 0x390   : > { %v3441_v52 = vpop.f32.mrf.mxu1 }
 0x391   : > { %3517 = vst.msk [vmem:[%s5767_s20 + $0xa8] sm:$0xff] %vm1253_vm3, %v3493_v4  ;;  %v3442_v45 = vadd.f32 %v5760_v27, %v3441_v52 }
 0x392   : > { %v3443_v34 = vpop.f32.mrf.mxu1 }
 0x393   : > { %v3494_v6 = vadd.f32 %v3470_v26, %v3442_v45 }
 0x394   : > { %v3444_v54 = vpop.f32.mrf.mxu1 }
 0x395   : > { %3518 = vst.msk [vmem:[%s5767_s20 + $0xb0] sm:$0xff] %vm1253_vm3, %v3494_v6  ;;  %v3445_v37 = vadd.f32 %v5760_v27, %v3444_v54 }
 0x396   : > { %v3446_v48 = vpop.f32.mrf.mxu1 }
 0x397   : > { %v3495_v43 = vadd.f32 %v3471_v2, %v3445_v37 }
 0x399   : > { %3519 = vst.msk [vmem:[%s5767_s20 + $0xb8] sm:$0xff] %vm1253_vm3, %v3495_v43 }
 0x39a PF: > { %s16_s25 = sadd.s32 1, %s4050_s25   ;;  %s5904_s21 = smov %s4042_s23 }
 0x39b   : > { %p13_p7 = scmp.ge.s32.totalorder %s16_s25, 6   ;;  %s5905_s22 = smov %s4046_s24 }
 0x39c   : > { %s5906_s23 = smov %s5909_s26  ;;  %s5907_s24 = smov %s5913_s27 }
 0x39d   :  { %15 = sbr.rel (!%p13_p7) target bundleno = 3 (0x3), region = 77 }

</bundles_post_ra>
